<compile_context>
chip_gen: v7x
topology: tpu7x:2x2x1
jax: 0.10.0
libtpu: 0.0.40
codegen_flags: <defaults>
</compile_context>

<pallas_src>
import functools

import jax
import jax.numpy as jnp
from jax.experimental import pallas as pl
from jax.experimental.pallas import tpu as pltpu


def _res_block_kernel(x_ref, w1_ref, b1_ref, w2_ref, b2_ref, o_ref, xp_ref,
                      *, H, W, C, norm, act, eps):
    """One fused ResBlock for a single batch element.

    x_ref : (1, H, W, C)       input block
    w*_ref: (3, 3, C, C)       conv weights (HWIO), VMEM-resident
    b*_ref: (1, C)             conv biases
    o_ref : (1, H, W, C)       output block
    xp_ref: (H+2, W+2, C) f32  zero-padded scratch, shared by both convs
    """
    # Borders of the padded scratch are never written inside the grid, so zero
    # the whole buffer once (zero padding == pad_type='zero').
    @pl.when(pl.program_id(0) == 0)
    def _():
        xp_ref[...] = jnp.zeros_like(xp_ref)

    x = x_ref[0].astype(jnp.float32)                     # (H, W, C)
    xp_ref[1:H + 1, 1:W + 1, :] = x

    def conv3x3(w_ref, b_ref):
        # 3x3 / stride 1 / pad 1 conv as 9 shifted (H*W, C) x (C, C) matmuls.
        acc = jnp.zeros((H * W, C), jnp.float32)
        for ky in range(3):
            for kx in range(3):
                patch = xp_ref[ky:ky + H, kx:kx + W, :].reshape(H * W, C)
                acc = acc + jnp.dot(patch, w_ref[ky, kx],
                                    preferred_element_type=jnp.float32)
        return acc + b_ref[...]                          # bias fused (1, C)

    def apply_norm(h):                                   # h: (H*W, C) f32
        if norm == "in":
            # nn.InstanceNorm2d(affine=False): per-channel stats over H*W.
            mean = jnp.mean(h, axis=0, keepdims=True)
            var = jnp.mean(jnp.square(h - mean), axis=0, keepdims=True)
            return (h - mean) * jax.lax.rsqrt(var + eps)
        elif norm == "none":
            return h
        else:
            raise ValueError(f"Unsupported norm: {norm}")

    def apply_act(h, a):
        if a == "relu":
            return jnp.maximum(h, 0.0)
        elif a == "lrelu":
            return jnp.where(h >= 0.0, h, 0.2 * h)       # LeakyReLU(0.2)
        elif a == "tanh":
            return jnp.tanh(h)
        elif a == "none":
            return h
        else:
            raise ValueError(f"Unsupported activation: {a}")

    # Conv2dBlock #1: conv -> norm -> act
    h = apply_act(apply_norm(conv3x3(w1_ref, b1_ref)), act)
    # Re-fill the padded scratch interior with h (borders stay zero).
    xp_ref[1:H + 1, 1:W + 1, :] = h.reshape(H, W, C)
    # Conv2dBlock #2: conv -> norm, act='none'
    r = apply_norm(conv3x3(w2_ref, b2_ref))
    # Fused residual epilogue: out = x + 0.1 * residual
    o_ref[0] = (x + 0.1 * r.reshape(H, W, C)).astype(o_ref.dtype)


def res_block(x, w1, b1, w2, b2, *, norm="in", act="relu", pad_type="zero",
              eps=1e-5):
    """One ResBlock forward. x: [N, H, W, C]; w*: [3, 3, C, C]; b*: [C]."""
    assert pad_type == "zero", "TODO(synk): only pad_type='zero' implemented"
    assert norm in ("in", "none"), \
        "TODO(synk): only norm in {'in','none'} implemented"
    N, H, W, C = x.shape
    assert w1.shape == (3, 3, C, C) and w2.shape == (3, 3, C, C)
    assert b1.shape == (C,) and b2.shape == (C,)

    kernel = functools.partial(_res_block_kernel, H=H, W=W, C=C,
                               norm=norm, act=act, eps=eps)

    # VMEM budget: x/out blocks (double-buffered) + padded scratch + resident
    # weights/biases + headroom for accumulators / relayout temporaries.
    vmem_elems = (4 * H * W * C
                  + (H + 2) * (W + 2) * C
                  + 2 * (9 * C * C + C)
                  + 8 * H * W * C)
    vmem_limit = min(64 * 1024 * 1024, max(32 * 1024 * 1024, 4 * vmem_elems))

    cost = pl.CostEstimate(
        flops=2 * 2 * 9 * N * H * W * C * C,             # 2 convs, 9 taps, FMA
        transcendentals=(2 * N * C if norm == "in" else 0)
        + (N * H * W * C if act == "tanh" else 0),
        bytes_accessed=4 * (2 * N * H * W * C + 2 * (9 * C * C + C)),
    )

    return pl.pallas_call(
        kernel,
        out_shape=jax.ShapeDtypeStruct((N, H, W, C), x.dtype),
        grid_spec=pltpu.PrefetchScalarGridSpec(
            num_scalar_prefetch=0,
            grid=(N,),
            in_specs=[
                pl.BlockSpec((1, H, W, C), lambda n: (n, 0, 0, 0)),  # x
                pl.BlockSpec((3, 3, C, C), lambda n: (0, 0, 0, 0)),  # w1 (resident)
                pl.BlockSpec((1, C), lambda n: (0, 0)),              # b1
                pl.BlockSpec((3, 3, C, C), lambda n: (0, 0, 0, 0)),  # w2 (resident)
                pl.BlockSpec((1, C), lambda n: (0, 0)),              # b2
            ],
            out_specs=pl.BlockSpec((1, H, W, C), lambda n: (n, 0, 0, 0)),
            scratch_shapes=[pltpu.VMEM((H + 2, W + 2, C), jnp.float32)],
        ),
        compiler_params=pltpu.CompilerParams(
            dimension_semantics=("parallel",),
            vmem_limit_bytes=vmem_limit,
        ),
        cost_estimate=cost,
    )(x, w1, b1.reshape(1, C), w2, b2.reshape(1, C))


def res_blocks(x, params, *, norm="in", act="relu", pad_type="zero"):
    """ResBlocks forward: apply each (w1, b1, w2, b2) ResBlock sequentially."""
    for (w1, b1, w2, b2) in params:
        x = res_block(x, w1, b1, w2, b2, norm=norm, act=act, pad_type=pad_type)
    return x


# ----------------------------- pure-JAX reference ---------------------------
def _res_block_ref(x, w1, b1, w2, b2, *, norm="in", act="relu", eps=1e-5):
    N, H, W, C = x.shape

    def conv(h, w, b):
        hp = jnp.pad(h, ((0, 0), (1, 1), (1, 1), (0, 0)))
        acc = jnp.zeros((N, H, W, C), jnp.float32)
        for ky in range(3):
            for kx in range(3):
                acc = acc + jnp.einsum(
                    "nhwc,co->nhwo", hp[:, ky:ky + H, kx:kx + W, :], w[ky, kx],
                    preferred_element_type=jnp.float32,
                    precision=jax.lax.Precision.HIGHEST)
        return acc + b[None, None, None, :]

    def norm_fn(h):
        if norm == "in":
            mean = h.mean(axis=(1, 2), keepdims=True)
            var = jnp.square(h - mean).mean(axis=(1, 2), keepdims=True)
            return (h - mean) * jax.lax.rsqrt(var + eps)
        return h

    def act_fn(h, a):
        if a == "relu":
            return jnp.maximum(h, 0.0)
        if a == "lrelu":
            return jnp.where(h >= 0.0, h, 0.2 * h)
        if a == "tanh":
            return jnp.tanh(h)
        return h

    h = act_fn(norm_fn(conv(x, w1, b1)), act)
    r = norm_fn(conv(h, w2, b2))
    return x + 0.1 * r


if __name__ == "__main__":
    # Small shapes: ResBlocks(num_blocks=2, dim=32) on a [2, 16, 16, 32] map.
    num_blocks, N, H, W, C = 2, 2, 16, 16, 32

    key = jax.random.PRNGKey(0)
    key, kx = jax.random.split(key)
    x = jax.random.normal(kx, (N, H, W, C), dtype=jnp.float32)

    # Deterministic init matching nn.Conv2d's U(-1/sqrt(fan_in), 1/sqrt(fan_in)).
    bound = 1.0 / ((C * 9) ** 0.5)
    params = []
    for _ in range(num_blocks):
        key, k1, k2, k3, k4 = jax.random.split(key, 5)
        w1 = jax.random.uniform(k1, (3, 3, C, C), jnp.float32, -bound, bound)
        b1 = jax.random.uniform(k2, (C,), jnp.float32, -bound, bound)
        w2 = jax.random.uniform(k3, (3, 3, C, C), jnp.float32, -bound, bound)
        b2 = jax.random.uniform(k4, (C,), jnp.float32, -bound, bound)
        params.append((w1, b1, w2, b2))

    out = res_blocks(x, params, norm="in", act="relu", pad_type="zero")
    out = jax.block_until_ready(out)

    ref = x
    for (w1, b1, w2, b2) in params:
        ref = _res_block_ref(ref, w1, b1, w2, b2, norm="in", act="relu")

    assert out.shape == (N, H, W, C)
    # Loose-ish tolerance: MXU f32 matmul pass-count differences vs. the XLA
    # reference; real bugs (wrong tap/pad/norm) produce O(0.1-1) errors.
    assert jnp.allclose(out, ref, atol=1e-2, rtol=1e-2), "mismatch vs reference"

    print("KERNEL_OK")
</pallas_src>

<mosaic_0001>
module attributes {stable_mosaic.version = 11 : i64} {
  func.func @_res_block_kernel(%arg0: i32, %arg1: memref<1x16x16x32xf32, #tpu.memory_space<vmem>>, %arg2: memref<3x3x32x32xf32, #tpu.memory_space<vmem>>, %arg3: memref<1x32xf32, #tpu.memory_space<vmem>>, %arg4: memref<3x3x32x32xf32, #tpu.memory_space<vmem>>, %arg5: memref<1x32xf32, #tpu.memory_space<vmem>>, %arg6: memref<1x16x16x32xf32, #tpu.memory_space<vmem>>, %arg7: memref<18x18x32xf32, #tpu.memory_space<vmem>>) attributes {dimension_semantics = [#tpu.dimension_semantics<parallel>], iteration_bounds = array<i64: 2>, scalar_prefetch = 0 : i64, scratch_operands = 1 : i64, tpu.core_type = #tpu.core_type<tc>, window_params = [{transform_indices = @transform_0, window_bounds = array<i64: 1, 16, 16, 32>}, {pipeline_mode = #tpu.pipeline_mode<synchronous>, transform_indices = @transform_1, window_bounds = array<i64: 3, 3, 32, 32>}, {pipeline_mode = #tpu.pipeline_mode<synchronous>, transform_indices = @transform_2, window_bounds = array<i64: 1, 32>}, {pipeline_mode = #tpu.pipeline_mode<synchronous>, transform_indices = @transform_3, window_bounds = array<i64: 3, 3, 32, 32>}, {pipeline_mode = #tpu.pipeline_mode<synchronous>, transform_indices = @transform_4, window_bounds = array<i64: 1, 32>}, {transform_indices = @transform_5, window_bounds = array<i64: 1, 16, 16, 32>}]} {
    %c0_i32 = arith.constant 0 : i32
    %0 = arith.cmpi eq, %arg0, %c0_i32 : i32
    %1 = arith.extui %0 : i1 to i32
    %c0_i32_0 = arith.constant 0 : i32
    %2 = arith.cmpi ne, %1, %c0_i32_0 : i32
    scf.if %2 {
      %cst_173 = arith.constant 0.000000e+00 : f32
      %169 = vector.broadcast %cst_173 : f32 to vector<18x18x32xf32>
      %c0_174 = arith.constant 0 : index
      %c0_175 = arith.constant 0 : index
      %c0_176 = arith.constant 0 : index
      %170 = vector.load %arg7[%c0_174, %c0_175, %c0_176] : memref<18x18x32xf32, #tpu.memory_space<vmem>>, vector<18x18x32xf32>
      tpu.vector_store %arg7[%c0_174, %c0_175, %c0_176], %169 {strides = array<i32>} : memref<18x18x32xf32, #tpu.memory_space<vmem>>, vector<18x18x32xf32>,
    } else {
    }
    %c0 = arith.constant 0 : index
    %c0_1 = arith.constant 0 : index
    %c0_2 = arith.constant 0 : index
    %c0_3 = arith.constant 0 : index
    %3 = vector.load %arg1[%c0, %c0_1, %c0_2, %c0_3] : memref<1x16x16x32xf32, #tpu.memory_space<vmem>>, vector<1x16x16x32xf32>
    %4 = vector.shape_cast %3 : vector<1x16x16x32xf32> to vector<16x16x32xf32>
    %c1 = arith.constant 1 : index
    %c1_4 = arith.constant 1 : index
    %c0_5 = arith.constant 0 : index
    %5 = vector.load %arg7[%c1, %c1_4, %c0_5] : memref<18x18x32xf32, #tpu.memory_space<vmem>>, vector<16x16x32xf32>
    tpu.vector_store %arg7[%c1, %c1_4, %c0_5], %4 {strides = array<i32>} : memref<18x18x32xf32, #tpu.memory_space<vmem>>, vector<16x16x32xf32>,
    %cst = arith.constant 0.000000e+00 : f32
    %6 = vector.broadcast %cst : f32 to vector<256x32xf32>
    %c0_6 = arith.constant 0 : index
    %c0_7 = arith.constant 0 : index
    %c0_8 = arith.constant 0 : index
    %7 = vector.load %arg7[%c0_6, %c0_7, %c0_8] : memref<18x18x32xf32, #tpu.memory_space<vmem>>, vector<16x16x32xf32>
    %8 = vector.shape_cast %7 : vector<16x16x32xf32> to vector<256x32xf32>
    %c0_9 = arith.constant 0 : index
    %c0_10 = arith.constant 0 : index
    %c0_11 = arith.constant 0 : index
    %c0_12 = arith.constant 0 : index
    %9 = vector.load %arg2[%c0_9, %c0_10, %c0_11, %c0_12] : memref<3x3x32x32xf32, #tpu.memory_space<vmem>>, vector<1x1x32x32xf32>
    %10 = vector.shape_cast %9 : vector<1x1x32x32xf32> to vector<32x32xf32>
    %cst_13 = arith.constant dense<0.000000e+00> : vector<256x32xf32>
    %11 = tpu.matmul %8, %10, %cst_13 {dimension_numbers = #tpu.dot_dimension_numbers<[1], [0], [0], [1], [0, 0, 1, 1], [], []>} : vector<256x32xf32>, vector<32x32xf32>, vector<256x32xf32> -> vector<256x32xf32>
    %12 = arith.addf %6, %11 : vector<256x32xf32>
    %c0_14 = arith.constant 0 : index
    %c1_15 = arith.constant 1 : index
    %c0_16 = arith.constant 0 : index
    %13 = vector.load %arg7[%c0_14, %c1_15, %c0_16] : memref<18x18x32xf32, #tpu.memory_space<vmem>>, vector<16x16x32xf32>
    %14 = vector.shape_cast %13 : vector<16x16x32xf32> to vector<256x32xf32>
    %c0_17 = arith.constant 0 : index
    %c1_18 = arith.constant 1 : index
    %c0_19 = arith.constant 0 : index
    %c0_20 = arith.constant 0 : index
    %15 = vector.load %arg2[%c0_17, %c1_18, %c0_19, %c0_20] : memref<3x3x32x32xf32, #tpu.memory_space<vmem>>, vector<1x1x32x32xf32>
    %16 = vector.shape_cast %15 : vector<1x1x32x32xf32> to vector<32x32xf32>
    %cst_21 = arith.constant dense<0.000000e+00> : vector<256x32xf32>
    %17 = tpu.matmul %14, %16, %cst_21 {dimension_numbers = #tpu.dot_dimension_numbers<[1], [0], [0], [1], [0, 0, 1, 1], [], []>} : vector<256x32xf32>, vector<32x32xf32>, vector<256x32xf32> -> vector<256x32xf32>
    %18 = arith.addf %12, %17 : vector<256x32xf32>
    %c0_22 = arith.constant 0 : index
    %c2 = arith.constant 2 : index
    %c0_23 = arith.constant 0 : index
    %19 = vector.load %arg7[%c0_22, %c2, %c0_23] : memref<18x18x32xf32, #tpu.memory_space<vmem>>, vector<16x16x32xf32>
    %20 = vector.shape_cast %19 : vector<16x16x32xf32> to vector<256x32xf32>
    %c0_24 = arith.constant 0 : index
    %c2_25 = arith.constant 2 : index
    %c0_26 = arith.constant 0 : index
    %c0_27 = arith.constant 0 : index
    %21 = vector.load %arg2[%c0_24, %c2_25, %c0_26, %c0_27] : memref<3x3x32x32xf32, #tpu.memory_space<vmem>>, vector<1x1x32x32xf32>
    %22 = vector.shape_cast %21 : vector<1x1x32x32xf32> to vector<32x32xf32>
    %cst_28 = arith.constant dense<0.000000e+00> : vector<256x32xf32>
    %23 = tpu.matmul %20, %22, %cst_28 {dimension_numbers = #tpu.dot_dimension_numbers<[1], [0], [0], [1], [0, 0, 1, 1], [], []>} : vector<256x32xf32>, vector<32x32xf32>, vector<256x32xf32> -> vector<256x32xf32>
    %24 = arith.addf %18, %23 : vector<256x32xf32>
    %c1_29 = arith.constant 1 : index
    %c0_30 = arith.constant 0 : index
    %c0_31 = arith.constant 0 : index
    %25 = vector.load %arg7[%c1_29, %c0_30, %c0_31] : memref<18x18x32xf32, #tpu.memory_space<vmem>>, vector<16x16x32xf32>
    %26 = vector.shape_cast %25 : vector<16x16x32xf32> to vector<256x32xf32>
    %c1_32 = arith.constant 1 : index
    %c0_33 = arith.constant 0 : index
    %c0_34 = arith.constant 0 : index
    %c0_35 = arith.constant 0 : index
    %27 = vector.load %arg2[%c1_32, %c0_33, %c0_34, %c0_35] : memref<3x3x32x32xf32, #tpu.memory_space<vmem>>, vector<1x1x32x32xf32>
    %28 = vector.shape_cast %27 : vector<1x1x32x32xf32> to vector<32x32xf32>
    %cst_36 = arith.constant dense<0.000000e+00> : vector<256x32xf32>
    %29 = tpu.matmul %26, %28, %cst_36 {dimension_numbers = #tpu.dot_dimension_numbers<[1], [0], [0], [1], [0, 0, 1, 1], [], []>} : vector<256x32xf32>, vector<32x32xf32>, vector<256x32xf32> -> vector<256x32xf32>
    %30 = arith.addf %24, %29 : vector<256x32xf32>
    %c1_37 = arith.constant 1 : index
    %c1_38 = arith.constant 1 : index
    %c0_39 = arith.constant 0 : index
    %31 = vector.load %arg7[%c1_37, %c1_38, %c0_39] : memref<18x18x32xf32, #tpu.memory_space<vmem>>, vector<16x16x32xf32>
    %32 = vector.shape_cast %31 : vector<16x16x32xf32> to vector<256x32xf32>
    %c1_40 = arith.constant 1 : index
    %c1_41 = arith.constant 1 : index
    %c0_42 = arith.constant 0 : index
    %c0_43 = arith.constant 0 : index
    %33 = vector.load %arg2[%c1_40, %c1_41, %c0_42, %c0_43] : memref<3x3x32x32xf32, #tpu.memory_space<vmem>>, vector<1x1x32x32xf32>
    %34 = vector.shape_cast %33 : vector<1x1x32x32xf32> to vector<32x32xf32>
    %cst_44 = arith.constant dense<0.000000e+00> : vector<256x32xf32>
    %35 = tpu.matmul %32, %34, %cst_44 {dimension_numbers = #tpu.dot_dimension_numbers<[1], [0], [0], [1], [0, 0, 1, 1], [], []>} : vector<256x32xf32>, vector<32x32xf32>, vector<256x32xf32> -> vector<256x32xf32>
    %36 = arith.addf %30, %35 : vector<256x32xf32>
    %c1_45 = arith.constant 1 : index
    %c2_46 = arith.constant 2 : index
    %c0_47 = arith.constant 0 : index
    %37 = vector.load %arg7[%c1_45, %c2_46, %c0_47] : memref<18x18x32xf32, #tpu.memory_space<vmem>>, vector<16x16x32xf32>
    %38 = vector.shape_cast %37 : vector<16x16x32xf32> to vector<256x32xf32>
    %c1_48 = arith.constant 1 : index
    %c2_49 = arith.constant 2 : index
    %c0_50 = arith.constant 0 : index
    %c0_51 = arith.constant 0 : index
    %39 = vector.load %arg2[%c1_48, %c2_49, %c0_50, %c0_51] : memref<3x3x32x32xf32, #tpu.memory_space<vmem>>, vector<1x1x32x32xf32>
    %40 = vector.shape_cast %39 : vector<1x1x32x32xf32> to vector<32x32xf32>
    %cst_52 = arith.constant dense<0.000000e+00> : vector<256x32xf32>
    %41 = tpu.matmul %38, %40, %cst_52 {dimension_numbers = #tpu.dot_dimension_numbers<[1], [0], [0], [1], [0, 0, 1, 1], [], []>} : vector<256x32xf32>, vector<32x32xf32>, vector<256x32xf32> -> vector<256x32xf32>
    %42 = arith.addf %36, %41 : vector<256x32xf32>
    %c2_53 = arith.constant 2 : index
    %c0_54 = arith.constant 0 : index
    %c0_55 = arith.constant 0 : index
    %43 = vector.load %arg7[%c2_53, %c0_54, %c0_55] : memref<18x18x32xf32, #tpu.memory_space<vmem>>, vector<16x16x32xf32>
    %44 = vector.shape_cast %43 : vector<16x16x32xf32> to vector<256x32xf32>
    %c2_56 = arith.constant 2 : index
    %c0_57 = arith.constant 0 : index
    %c0_58 = arith.constant 0 : index
    %c0_59 = arith.constant 0 : index
    %45 = vector.load %arg2[%c2_56, %c0_57, %c0_58, %c0_59] : memref<3x3x32x32xf32, #tpu.memory_space<vmem>>, vector<1x1x32x32xf32>
    %46 = vector.shape_cast %45 : vector<1x1x32x32xf32> to vector<32x32xf32>
    %cst_60 = arith.constant dense<0.000000e+00> : vector<256x32xf32>
    %47 = tpu.matmul %44, %46, %cst_60 {dimension_numbers = #tpu.dot_dimension_numbers<[1], [0], [0], [1], [0, 0, 1, 1], [], []>} : vector<256x32xf32>, vector<32x32xf32>, vector<256x32xf32> -> vector<256x32xf32>
    %48 = arith.addf %42, %47 : vector<256x32xf32>
    %c2_61 = arith.constant 2 : index
    %c1_62 = arith.constant 1 : index
    %c0_63 = arith.constant 0 : index
    %49 = vector.load %arg7[%c2_61, %c1_62, %c0_63] : memref<18x18x32xf32, #tpu.memory_space<vmem>>, vector<16x16x32xf32>
    %50 = vector.shape_cast %49 : vector<16x16x32xf32> to vector<256x32xf32>
    %c2_64 = arith.constant 2 : index
    %c1_65 = arith.constant 1 : index
    %c0_66 = arith.constant 0 : index
    %c0_67 = arith.constant 0 : index
    %51 = vector.load %arg2[%c2_64, %c1_65, %c0_66, %c0_67] : memref<3x3x32x32xf32, #tpu.memory_space<vmem>>, vector<1x1x32x32xf32>
    %52 = vector.shape_cast %51 : vector<1x1x32x32xf32> to vector<32x32xf32>
    %cst_68 = arith.constant dense<0.000000e+00> : vector<256x32xf32>
    %53 = tpu.matmul %50, %52, %cst_68 {dimension_numbers = #tpu.dot_dimension_numbers<[1], [0], [0], [1], [0, 0, 1, 1], [], []>} : vector<256x32xf32>, vector<32x32xf32>, vector<256x32xf32> -> vector<256x32xf32>
    %54 = arith.addf %48, %53 : vector<256x32xf32>
    %c2_69 = arith.constant 2 : index
    %c2_70 = arith.constant 2 : index
    %c0_71 = arith.constant 0 : index
    %55 = vector.load %arg7[%c2_69, %c2_70, %c0_71] : memref<18x18x32xf32, #tpu.memory_space<vmem>>, vector<16x16x32xf32>
    %56 = vector.shape_cast %55 : vector<16x16x32xf32> to vector<256x32xf32>
    %c2_72 = arith.constant 2 : index
    %c2_73 = arith.constant 2 : index
    %c0_74 = arith.constant 0 : index
    %c0_75 = arith.constant 0 : index
    %57 = vector.load %arg2[%c2_72, %c2_73, %c0_74, %c0_75] : memref<3x3x32x32xf32, #tpu.memory_space<vmem>>, vector<1x1x32x32xf32>
    %58 = vector.shape_cast %57 : vector<1x1x32x32xf32> to vector<32x32xf32>
    %cst_76 = arith.constant dense<0.000000e+00> : vector<256x32xf32>
    %59 = tpu.matmul %56, %58, %cst_76 {dimension_numbers = #tpu.dot_dimension_numbers<[1], [0], [0], [1], [0, 0, 1, 1], [], []>} : vector<256x32xf32>, vector<32x32xf32>, vector<256x32xf32> -> vector<256x32xf32>
    %60 = arith.addf %54, %59 : vector<256x32xf32>
    %c0_77 = arith.constant 0 : index
    %c0_78 = arith.constant 0 : index
    %61 = vector.load %arg3[%c0_77, %c0_78] : memref<1x32xf32, #tpu.memory_space<vmem>>, vector<1x32xf32>
    %62 = vector.broadcast %61 : vector<1x32xf32> to vector<256x32xf32>
    %63 = arith.addf %60, %62 : vector<256x32xf32>
    %cst_79 = arith.constant dense<0.000000e+00> : vector<32xf32>
    %64 = vector.multi_reduction <add>, %63, %cst_79 [0] : vector<256x32xf32> to vector<32xf32>
    %65 = vector.shape_cast %64 : vector<32xf32> to vector<1x32xf32>
    %cst_80 = arith.constant 2.560000e+02 : f32
    %66 = vector.broadcast %cst_80 : f32 to vector<1x32xf32>
    %67 = arith.divf %65, %66 : vector<1x32xf32>
    %68 = vector.broadcast %67 : vector<1x32xf32> to vector<256x32xf32>
    %69 = arith.subf %63, %68 : vector<256x32xf32>
    %70 = arith.mulf %69, %69 : vector<256x32xf32>
    %cst_81 = arith.constant dense<0.000000e+00> : vector<32xf32>
    %71 = vector.multi_reduction <add>, %70, %cst_81 [0] : vector<256x32xf32> to vector<32xf32>
    %72 = vector.shape_cast %71 : vector<32xf32> to vector<1x32xf32>
    %cst_82 = arith.constant 2.560000e+02 : f32
    %73 = vector.broadcast %cst_82 : f32 to vector<1x32xf32>
    %74 = arith.divf %72, %73 : vector<1x32xf32>
    %75 = vector.broadcast %67 : vector<1x32xf32> to vector<256x32xf32>
    %76 = arith.subf %63, %75 : vector<256x32xf32>
    %cst_83 = arith.constant 9.99999974E-6 : f32
    %77 = vector.broadcast %cst_83 : f32 to vector<1x32xf32>
    %78 = arith.addf %74, %77 : vector<1x32xf32>
    %79 = math.rsqrt %78 : vector<1x32xf32>
    %80 = vector.broadcast %79 : vector<1x32xf32> to vector<256x32xf32>
    %81 = arith.mulf %76, %80 : vector<256x32xf32>
    %cst_84 = arith.constant 0.000000e+00 : f32
    %82 = vector.broadcast %cst_84 : f32 to vector<256x32xf32>
    %83 = arith.maximumf %81, %82 : vector<256x32xf32>
    %84 = vector.shape_cast %83 : vector<256x32xf32> to vector<16x16x32xf32>
    %c1_85 = arith.constant 1 : index
    %c1_86 = arith.constant 1 : index
    %c0_87 = arith.constant 0 : index
    %85 = vector.load %arg7[%c1_85, %c1_86, %c0_87] : memref<18x18x32xf32, #tpu.memory_space<vmem>>, vector<16x16x32xf32>
    tpu.vector_store %arg7[%c1_85, %c1_86, %c0_87], %84 {strides = array<i32>} : memref<18x18x32xf32, #tpu.memory_space<vmem>>, vector<16x16x32xf32>,
    %cst_88 = arith.constant 0.000000e+00 : f32
    %86 = vector.broadcast %cst_88 : f32 to vector<256x32xf32>
    %c0_89 = arith.constant 0 : index
    %c0_90 = arith.constant 0 : index
    %c0_91 = arith.constant 0 : index
    %87 = vector.load %arg7[%c0_89, %c0_90, %c0_91] : memref<18x18x32xf32, #tpu.memory_space<vmem>>, vector<16x16x32xf32>
    %88 = vector.shape_cast %87 : vector<16x16x32xf32> to vector<256x32xf32>
    %c0_92 = arith.constant 0 : index
    %c0_93 = arith.constant 0 : index
    %c0_94 = arith.constant 0 : index
    %c0_95 = arith.constant 0 : index
    %89 = vector.load %arg4[%c0_92, %c0_93, %c0_94, %c0_95] : memref<3x3x32x32xf32, #tpu.memory_space<vmem>>, vector<1x1x32x32xf32>
    %90 = vector.shape_cast %89 : vector<1x1x32x32xf32> to vector<32x32xf32>
    %cst_96 = arith.constant dense<0.000000e+00> : vector<256x32xf32>
    %91 = tpu.matmul %88, %90, %cst_96 {dimension_numbers = #tpu.dot_dimension_numbers<[1], [0], [0], [1], [0, 0, 1, 1], [], []>} : vector<256x32xf32>, vector<32x32xf32>, vector<256x32xf32> -> vector<256x32xf32>
    %92 = arith.addf %86, %91 : vector<256x32xf32>
    %c0_97 = arith.constant 0 : index
    %c1_98 = arith.constant 1 : index
    %c0_99 = arith.constant 0 : index
    %93 = vector.load %arg7[%c0_97, %c1_98, %c0_99] : memref<18x18x32xf32, #tpu.memory_space<vmem>>, vector<16x16x32xf32>
    %94 = vector.shape_cast %93 : vector<16x16x32xf32> to vector<256x32xf32>
    %c0_100 = arith.constant 0 : index
    %c1_101 = arith.constant 1 : index
    %c0_102 = arith.constant 0 : index
    %c0_103 = arith.constant 0 : index
    %95 = vector.load %arg4[%c0_100, %c1_101, %c0_102, %c0_103] : memref<3x3x32x32xf32, #tpu.memory_space<vmem>>, vector<1x1x32x32xf32>
    %96 = vector.shape_cast %95 : vector<1x1x32x32xf32> to vector<32x32xf32>
    %cst_104 = arith.constant dense<0.000000e+00> : vector<256x32xf32>
    %97 = tpu.matmul %94, %96, %cst_104 {dimension_numbers = #tpu.dot_dimension_numbers<[1], [0], [0], [1], [0, 0, 1, 1], [], []>} : vector<256x32xf32>, vector<32x32xf32>, vector<256x32xf32> -> vector<256x32xf32>
    %98 = arith.addf %92, %97 : vector<256x32xf32>
    %c0_105 = arith.constant 0 : index
    %c2_106 = arith.constant 2 : index
    %c0_107 = arith.constant 0 : index
    %99 = vector.load %arg7[%c0_105, %c2_106, %c0_107] : memref<18x18x32xf32, #tpu.memory_space<vmem>>, vector<16x16x32xf32>
    %100 = vector.shape_cast %99 : vector<16x16x32xf32> to vector<256x32xf32>
    %c0_108 = arith.constant 0 : index
    %c2_109 = arith.constant 2 : index
    %c0_110 = arith.constant 0 : index
    %c0_111 = arith.constant 0 : index
    %101 = vector.load %arg4[%c0_108, %c2_109, %c0_110, %c0_111] : memref<3x3x32x32xf32, #tpu.memory_space<vmem>>, vector<1x1x32x32xf32>
    %102 = vector.shape_cast %101 : vector<1x1x32x32xf32> to vector<32x32xf32>
    %cst_112 = arith.constant dense<0.000000e+00> : vector<256x32xf32>
    %103 = tpu.matmul %100, %102, %cst_112 {dimension_numbers = #tpu.dot_dimension_numbers<[1], [0], [0], [1], [0, 0, 1, 1], [], []>} : vector<256x32xf32>, vector<32x32xf32>, vector<256x32xf32> -> vector<256x32xf32>
    %104 = arith.addf %98, %103 : vector<256x32xf32>
    %c1_113 = arith.constant 1 : index
    %c0_114 = arith.constant 0 : index
    %c0_115 = arith.constant 0 : index
    %105 = vector.load %arg7[%c1_113, %c0_114, %c0_115] : memref<18x18x32xf32, #tpu.memory_space<vmem>>, vector<16x16x32xf32>
    %106 = vector.shape_cast %105 : vector<16x16x32xf32> to vector<256x32xf32>
    %c1_116 = arith.constant 1 : index
    %c0_117 = arith.constant 0 : index
    %c0_118 = arith.constant 0 : index
    %c0_119 = arith.constant 0 : index
    %107 = vector.load %arg4[%c1_116, %c0_117, %c0_118, %c0_119] : memref<3x3x32x32xf32, #tpu.memory_space<vmem>>, vector<1x1x32x32xf32>
    %108 = vector.shape_cast %107 : vector<1x1x32x32xf32> to vector<32x32xf32>
    %cst_120 = arith.constant dense<0.000000e+00> : vector<256x32xf32>
    %109 = tpu.matmul %106, %108, %cst_120 {dimension_numbers = #tpu.dot_dimension_numbers<[1], [0], [0], [1], [0, 0, 1, 1], [], []>} : vector<256x32xf32>, vector<32x32xf32>, vector<256x32xf32> -> vector<256x32xf32>
    %110 = arith.addf %104, %109 : vector<256x32xf32>
    %c1_121 = arith.constant 1 : index
    %c1_122 = arith.constant 1 : index
    %c0_123 = arith.constant 0 : index
    %111 = vector.load %arg7[%c1_121, %c1_122, %c0_123] : memref<18x18x32xf32, #tpu.memory_space<vmem>>, vector<16x16x32xf32>
    %112 = vector.shape_cast %111 : vector<16x16x32xf32> to vector<256x32xf32>
    %c1_124 = arith.constant 1 : index
    %c1_125 = arith.constant 1 : index
    %c0_126 = arith.constant 0 : index
    %c0_127 = arith.constant 0 : index
    %113 = vector.load %arg4[%c1_124, %c1_125, %c0_126, %c0_127] : memref<3x3x32x32xf32, #tpu.memory_space<vmem>>, vector<1x1x32x32xf32>
    %114 = vector.shape_cast %113 : vector<1x1x32x32xf32> to vector<32x32xf32>
    %cst_128 = arith.constant dense<0.000000e+00> : vector<256x32xf32>
    %115 = tpu.matmul %112, %114, %cst_128 {dimension_numbers = #tpu.dot_dimension_numbers<[1], [0], [0], [1], [0, 0, 1, 1], [], []>} : vector<256x32xf32>, vector<32x32xf32>, vector<256x32xf32> -> vector<256x32xf32>
    %116 = arith.addf %110, %115 : vector<256x32xf32>
    %c1_129 = arith.constant 1 : index
    %c2_130 = arith.constant 2 : index
    %c0_131 = arith.constant 0 : index
    %117 = vector.load %arg7[%c1_129, %c2_130, %c0_131] : memref<18x18x32xf32, #tpu.memory_space<vmem>>, vector<16x16x32xf32>
    %118 = vector.shape_cast %117 : vector<16x16x32xf32> to vector<256x32xf32>
    %c1_132 = arith.constant 1 : index
    %c2_133 = arith.constant 2 : index
    %c0_134 = arith.constant 0 : index
    %c0_135 = arith.constant 0 : index
    %119 = vector.load %arg4[%c1_132, %c2_133, %c0_134, %c0_135] : memref<3x3x32x32xf32, #tpu.memory_space<vmem>>, vector<1x1x32x32xf32>
    %120 = vector.shape_cast %119 : vector<1x1x32x32xf32> to vector<32x32xf32>
    %cst_136 = arith.constant dense<0.000000e+00> : vector<256x32xf32>
    %121 = tpu.matmul %118, %120, %cst_136 {dimension_numbers = #tpu.dot_dimension_numbers<[1], [0], [0], [1], [0, 0, 1, 1], [], []>} : vector<256x32xf32>, vector<32x32xf32>, vector<256x32xf32> -> vector<256x32xf32>
    %122 = arith.addf %116, %121 : vector<256x32xf32>
    %c2_137 = arith.constant 2 : index
    %c0_138 = arith.constant 0 : index
    %c0_139 = arith.constant 0 : index
    %123 = vector.load %arg7[%c2_137, %c0_138, %c0_139] : memref<18x18x32xf32, #tpu.memory_space<vmem>>, vector<16x16x32xf32>
    %124 = vector.shape_cast %123 : vector<16x16x32xf32> to vector<256x32xf32>
    %c2_140 = arith.constant 2 : index
    %c0_141 = arith.constant 0 : index
    %c0_142 = arith.constant 0 : index
    %c0_143 = arith.constant 0 : index
    %125 = vector.load %arg4[%c2_140, %c0_141, %c0_142, %c0_143] : memref<3x3x32x32xf32, #tpu.memory_space<vmem>>, vector<1x1x32x32xf32>
    %126 = vector.shape_cast %125 : vector<1x1x32x32xf32> to vector<32x32xf32>
    %cst_144 = arith.constant dense<0.000000e+00> : vector<256x32xf32>
    %127 = tpu.matmul %124, %126, %cst_144 {dimension_numbers = #tpu.dot_dimension_numbers<[1], [0], [0], [1], [0, 0, 1, 1], [], []>} : vector<256x32xf32>, vector<32x32xf32>, vector<256x32xf32> -> vector<256x32xf32>
    %128 = arith.addf %122, %127 : vector<256x32xf32>
    %c2_145 = arith.constant 2 : index
    %c1_146 = arith.constant 1 : index
    %c0_147 = arith.constant 0 : index
    %129 = vector.load %arg7[%c2_145, %c1_146, %c0_147] : memref<18x18x32xf32, #tpu.memory_space<vmem>>, vector<16x16x32xf32>
    %130 = vector.shape_cast %129 : vector<16x16x32xf32> to vector<256x32xf32>
    %c2_148 = arith.constant 2 : index
    %c1_149 = arith.constant 1 : index
    %c0_150 = arith.constant 0 : index
    %c0_151 = arith.constant 0 : index
    %131 = vector.load %arg4[%c2_148, %c1_149, %c0_150, %c0_151] : memref<3x3x32x32xf32, #tpu.memory_space<vmem>>, vector<1x1x32x32xf32>
    %132 = vector.shape_cast %131 : vector<1x1x32x32xf32> to vector<32x32xf32>
    %cst_152 = arith.constant dense<0.000000e+00> : vector<256x32xf32>
    %133 = tpu.matmul %130, %132, %cst_152 {dimension_numbers = #tpu.dot_dimension_numbers<[1], [0], [0], [1], [0, 0, 1, 1], [], []>} : vector<256x32xf32>, vector<32x32xf32>, vector<256x32xf32> -> vector<256x32xf32>
    %134 = arith.addf %128, %133 : vector<256x32xf32>
    %c2_153 = arith.constant 2 : index
    %c2_154 = arith.constant 2 : index
    %c0_155 = arith.constant 0 : index
    %135 = vector.load %arg7[%c2_153, %c2_154, %c0_155] : memref<18x18x32xf32, #tpu.memory_space<vmem>>, vector<16x16x32xf32>
    %136 = vector.shape_cast %135 : vector<16x16x32xf32> to vector<256x32xf32>
    %c2_156 = arith.constant 2 : index
    %c2_157 = arith.constant 2 : index
    %c0_158 = arith.constant 0 : index
    %c0_159 = arith.constant 0 : index
    %137 = vector.load %arg4[%c2_156, %c2_157, %c0_158, %c0_159] : memref<3x3x32x32xf32, #tpu.memory_space<vmem>>, vector<1x1x32x32xf32>
    %138 = vector.shape_cast %137 : vector<1x1x32x32xf32> to vector<32x32xf32>
    %cst_160 = arith.constant dense<0.000000e+00> : vector<256x32xf32>
    %139 = tpu.matmul %136, %138, %cst_160 {dimension_numbers = #tpu.dot_dimension_numbers<[1], [0], [0], [1], [0, 0, 1, 1], [], []>} : vector<256x32xf32>, vector<32x32xf32>, vector<256x32xf32> -> vector<256x32xf32>
    %140 = arith.addf %134, %139 : vector<256x32xf32>
    %c0_161 = arith.constant 0 : index
    %c0_162 = arith.constant 0 : index
    %141 = vector.load %arg5[%c0_161, %c0_162] : memref<1x32xf32, #tpu.memory_space<vmem>>, vector<1x32xf32>
    %142 = vector.broadcast %141 : vector<1x32xf32> to vector<256x32xf32>
    %143 = arith.addf %140, %142 : vector<256x32xf32>
    %cst_163 = arith.constant dense<0.000000e+00> : vector<32xf32>
    %144 = vector.multi_reduction <add>, %143, %cst_163 [0] : vector<256x32xf32> to vector<32xf32>
    %145 = vector.shape_cast %144 : vector<32xf32> to vector<1x32xf32>
    %cst_164 = arith.constant 2.560000e+02 : f32
    %146 = vector.broadcast %cst_164 : f32 to vector<1x32xf32>
    %147 = arith.divf %145, %146 : vector<1x32xf32>
    %148 = vector.broadcast %147 : vector<1x32xf32> to vector<256x32xf32>
    %149 = arith.subf %143, %148 : vector<256x32xf32>
    %150 = arith.mulf %149, %149 : vector<256x32xf32>
    %cst_165 = arith.constant dense<0.000000e+00> : vector<32xf32>
    %151 = vector.multi_reduction <add>, %150, %cst_165 [0] : vector<256x32xf32> to vector<32xf32>
    %152 = vector.shape_cast %151 : vector<32xf32> to vector<1x32xf32>
    %cst_166 = arith.constant 2.560000e+02 : f32
    %153 = vector.broadcast %cst_166 : f32 to vector<1x32xf32>
    %154 = arith.divf %152, %153 : vector<1x32xf32>
    %155 = vector.broadcast %147 : vector<1x32xf32> to vector<256x32xf32>
    %156 = arith.subf %143, %155 : vector<256x32xf32>
    %cst_167 = arith.constant 9.99999974E-6 : f32
    %157 = vector.broadcast %cst_167 : f32 to vector<1x32xf32>
    %158 = arith.addf %154, %157 : vector<1x32xf32>
    %159 = math.rsqrt %158 : vector<1x32xf32>
    %160 = vector.broadcast %159 : vector<1x32xf32> to vector<256x32xf32>
    %161 = arith.mulf %156, %160 : vector<256x32xf32>
    %162 = vector.shape_cast %161 : vector<256x32xf32> to vector<16x16x32xf32>
    %cst_168 = arith.constant 1.000000e-01 : f32
    %163 = vector.broadcast %cst_168 : f32 to vector<16x16x32xf32>
    %164 = arith.mulf %163, %162 : vector<16x16x32xf32>
    %165 = arith.addf %4, %164 : vector<16x16x32xf32>
    %c0_169 = arith.constant 0 : index
    %c0_170 = arith.constant 0 : index
    %c0_171 = arith.constant 0 : index
    %c0_172 = arith.constant 0 : index
    %166 = vector.load %arg6[%c0_169, %c0_170, %c0_171, %c0_172] : memref<1x16x16x32xf32, #tpu.memory_space<vmem>>, vector<1x16x16x32xf32>
    %167 = vector.shape_cast %166 : vector<1x16x16x32xf32> to vector<16x16x32xf32>
    %168 = vector.shape_cast %165 : vector<16x16x32xf32> to vector<1x16x16x32xf32>
    tpu.vector_store %arg6[%c0_169, %c0_170, %c0_171, %c0_172], %168 {strides = array<i32>} : memref<1x16x16x32xf32, #tpu.memory_space<vmem>>, vector<1x16x16x32xf32>,
    return
  }
  func.func @transform_0(%arg0: i32) -> (i32, i32, i32, i32) {
    %c0_i32 = arith.constant 0 : i32
    %c0_i32_0 = arith.constant 0 : i32
    %c0_i32_1 = arith.constant 0 : i32
    %c0_i32_2 = arith.constant 0 : i32
    return %arg0, %c0_i32, %c0_i32_0, %c0_i32_1 : i32, i32, i32, i32
  }
  func.func @transform_1(%arg0: i32) -> (i32, i32, i32, i32) {
    %c0_i32 = arith.constant 0 : i32
    %c0_i32_0 = arith.constant 0 : i32
    %c0_i32_1 = arith.constant 0 : i32
    %c0_i32_2 = arith.constant 0 : i32
    %c0_i32_3 = arith.constant 0 : i32
    return %c0_i32, %c0_i32_0, %c0_i32_1, %c0_i32_2 : i32, i32, i32, i32
  }
  func.func @transform_2(%arg0: i32) -> (i32, i32) {
    %c0_i32 = arith.constant 0 : i32
    %c0_i32_0 = arith.constant 0 : i32
    %c0_i32_1 = arith.constant 0 : i32
    return %c0_i32, %c0_i32_0 : i32, i32
  }
  func.func @transform_3(%arg0: i32) -> (i32, i32, i32, i32) {
    %c0_i32 = arith.constant 0 : i32
    %c0_i32_0 = arith.constant 0 : i32
    %c0_i32_1 = arith.constant 0 : i32
    %c0_i32_2 = arith.constant 0 : i32
    %c0_i32_3 = arith.constant 0 : i32
    return %c0_i32, %c0_i32_0, %c0_i32_1, %c0_i32_2 : i32, i32, i32, i32
  }
  func.func @transform_4(%arg0: i32) -> (i32, i32) {
    %c0_i32 = arith.constant 0 : i32
    %c0_i32_0 = arith.constant 0 : i32
    %c0_i32_1 = arith.constant 0 : i32
    return %c0_i32, %c0_i32_0 : i32, i32
  }
  func.func @transform_5(%arg0: i32) -> (i32, i32, i32, i32) {
    %c0_i32 = arith.constant 0 : i32
    %c0_i32_0 = arith.constant 0 : i32
    %c0_i32_1 = arith.constant 0 : i32
    %c0_i32_2 = arith.constant 0 : i32
    return %arg0, %c0_i32, %c0_i32_0, %c0_i32_1 : i32, i32, i32, i32
  }
}

</mosaic_0001>

<bundles_post_ra>
// kernel: tpu_custom_call.1
= control target key start
LH: loop header
LB: loop body
LE: loop exit
PB: predicated region body
PF: predicated region fallthrough
CT: control target
= control target key end

     0   :  { %10 = vsyncpa [#allocation4], 0  ;;  %s14149_s0 = inlined_call_operand.hbm [shape: f32[2,16,16,32], index: 0, kind: input, shape index: {}]   ;;  %s14150_s1 = inlined_call_operand.hbm [shape: f32[3,3,32,32], index: 1, kind: input, shape index: {}]   ;;  %s14151_s2 = inlined_call_operand.vmem [shape: f32[1,32], index: 2, kind: input, shape index: {}]   ;;  %s14152_s3 = inlined_call_operand.hbm [shape: f32[3,3,32,32], index: 3, kind: input, shape index: {}]   ;;  %s14153_s4 = inlined_call_operand.vmem [shape: f32[1,32], index: 4, kind: input, shape index: {}]   ;;  %s14154_s5 = inlined_call_operand.hbm [shape: f32[2,16,16,32], index: 5, kind: output, shape index: {}]  }
   0x1   :  { %12 = vsyncpa [#allocation4 + $0x1], 0 }
   0x2   :  { %13 = vsyncpa [#allocation7], 0 }
   0x3   :  { %14 = vsyncpa [#allocation5], 0 }
   0x4   :  { %16 = vsyncpa [#allocation5 + $0x1], 0  ;;  %s11294_s18 = smov 0   ;;  %s11296_s19 = smov 0  }
   0x5   :  { %s11298_s20 = smov 0   ;;  %s11300_s21 = smov 0  }
   0x6 LB: > { %s11315_s22 = sadd.s32 4294967295, %s11253_s21   ;;  %s8110_s23 = sadd.s32 4294967294, %s11253_s21   ;;  %s11253_s21 = sphi %s11300_s21, %s14579_s21   ;;  %s11249_s20 = sphi %s11298_s20, %s14578_s20   ;;  %s11245_s19 = sphi %s11296_s19, %s14577_s19   ;;  %s11241_s18 = sphi %s11294_s18, %s14576_s18  }
   0x7   : > { %p42_p0 = scmp.ne.s32.totalorder %s11245_s19, %s11241_s18  ;;  %p14155_p1 = scmp.eq.s32.totalorder %s11315_s22, 0 }
   0x8   : > { %p156_p3 = scmp.eq.s32.totalorder %s8110_s23, 1  ;;  %p8111_p5 = scmp.ge.s32.totalorder %s11253_s21, 1 }
   0x9   : > { %p11324_p4 = por %p14155_p1, %p42_p0  ;;  %p163_p7 = scmp.lt.s32.totalorder %s11253_s21, 3 }
   0xa   : > { %p11329_p6 = por %p156_p3, %p42_p0  ;;  %s11255_s27 = smov [#allocation6]  }
   0xb   : > { %s14321_s24 = scalar_select %p11324_p4, 1, 0 }
   0xc   : > { %s14322_s25 = scalar_select %p11329_p6, 1, 0 }
   0xd   : > { %p11335_p9 = pnand %p8111_p5, %p163_p7  ;;  %s175_s28 = sshll.u32 %s11255_s27, 4  ;;  %s11339_s28 = int_to_ptr.vmem [resolvable:$true] %s175_s28 }
   0xe   : > { %s11256_s30 = smov [#allocation8]   ;;  %s11097_s9 = scalar_lea.hbm %s14150_s1, 4608 }
   0xf   : > { %p11033_p10 = pneg %p11335_p9  ;;  %s191_s6 = sshll.u32 %s11256_s30, 4  ;;  %s11350_s6 = int_to_ptr.vmem [resolvable:$true] %s191_s6 }
  0x10   : > { %p11098_p13 = scmp.ne.s32.totalorder %s14150_s1, %s11097_s9  ;;  %p11104_p7 = scmp.lt.u32.totalorder %s11097_s9, %s14150_s1 }
  0x11   : > { %p11346_p12 = pnand %p11033_p10, %p14155_p1 }
  0x13   : > { %p11099_p0 = pneg %p11346_p12 }
  0x15   : > { %p11100_p3 = pnand %p11099_p0, %p11098_p13 }
  0x17   : > { %p11101_p5 = pneg %p11100_p3 }
  0x19   : > { %p11106_p10 = pnand %p11104_p7, %p11101_p5 }
  0x1b   : > { %11109 = shalt.err (!%p11106_p10)
}
  0x1c   : > { %s11110_s14 = scalar_lea.vmem %s11339_s28, 4608  ;;  %p11118_p2 = scmp.lt.s32.totalorder %s11339_s28, %s11339_s28 }
  0x1d   : > { %p11111_p11 = scmp.ne.s32.totalorder %s11339_s28, %s11110_s14  ;;  %p11119_p13 = scmp.lt.s32.totalorder %s11110_s14, %s11110_s14 }
  0x1f   : > { %p11113_p8 = pnand %p11111_p11, %p11099_p0  ;;  %p11120_p3 = por %p11119_p13, %p11118_p2 }
  0x21   : > { %p11114_p1 = pneg %p11113_p8 }
  0x23   : > { %p11121_p6 = pnand %p11120_p3, %p11114_p1 }
  0x25   : > { %11124 = shalt.err (!%p11121_p6)
}
  0x26   : > { %s11257_s15 = smov 128   ;;  %s11258_s16 = smov 8  }
  0x27   : > { %11036 = dma.hbm_to_vmem [thread:$0]  (!%p11346_p12), %s14150_s1, 4608, %s11339_s28, [#allocation7], %s11257_s15, %s11257_s15, %s11258_s16  }
  0x28   : > { %s11125_s7 = scalar_lea.hbm %s14152_s3, 4608 }
  0x29   : > { %p11126_p1 = scmp.ne.s32.totalorder %s14152_s3, %s11125_s7  ;;  %p11132_p8 = scmp.lt.u32.totalorder %s11125_s7, %s14152_s3 }
  0x2b   : > { %p11128_p2 = pnand %p11126_p1, %p11099_p0 }
  0x2d   : > { %p11129_p6 = pneg %p11128_p2 }
  0x2f   : > { %p11134_p11 = pnand %p11132_p8, %p11129_p6 }
  0x31   : > { %11137 = shalt.err (!%p11134_p11)
}
  0x32   : > { %s11138_s28 = scalar_lea.vmem %s11350_s6, 4608  ;;  %p11146_p13 = scmp.lt.s32.totalorder %s11350_s6, %s11350_s6 }
  0x33   : > { %p11139_p5 = scmp.ne.s32.totalorder %s11350_s6, %s11138_s28  ;;  %p11147_p3 = scmp.lt.s32.totalorder %s11138_s28, %s11138_s28 }
  0x35   : > { %p11141_p7 = pnand %p11139_p5, %p11099_p0  ;;  %p11148_p1 = por %p11147_p3, %p11146_p13 }
  0x37   : > { %p11142_p10 = pneg %p11141_p7 }
  0x39   : > { %p11149_p2 = pnand %p11148_p1, %p11142_p10 }
  0x3b   : > { %11152 = shalt.err (!%p11149_p2)
}
  0x3c   : > { %11039 = dma.hbm_to_vmem [thread:$0]  (!%p11346_p12), %s14152_s3, 4608, %s11350_s6, [#allocation7], %s11257_s15, %s11257_s15, %s11258_s16  }
  0x3d   : > { %s11411_s29 = sadd.s32 1, %s11253_s21   ;;  %s29_s14 = sadd.s32 1, %s11249_s20 }
  0x3e   : > { %s26_s17 = ssub.s32 %s11253_s21, %s11411_s29  ;;  %p36_p0 = scmp.ne.s32.totalorder %s11249_s20, %s11245_s19 }
  0x3f   : > { %p27_p6 = scmp.eq.s32.totalorder %s26_s17, 0  ;;  %p37_p8 = scmp.eq.s32.totalorder %s11253_s21, 0 }
  0x40   : > { %p14325_p11 = scmp.eq.s32.totalorder %s11315_s22, 1  ;;  %p11050_p7 = scmp.lt.s32.totalorder %s11253_s21, 2 }
  0x41   : > { %s11427_s27 = scalar_select %p27_p6, %s11249_s20, %s29_s14  }
  0x42   : > { %p11421_p5 = por %p14325_p11, %p36_p0  ;;  %p38_p10 = por %p37_p8, %p36_p0 }
  0x43   : > { %s208_s30 = sand.u32 1, %s11249_s20   ;;  %s8707_s6 = sshll.u32 %s11253_s21, 12 }
  0x44   : > { %s14326_s23 = scalar_select %p11421_p5, 1, 0 }
  0x45   : > { %s8115_s7 = sshll.u32 %s208_s30, 8  ;;  %s11434_s10 = scalar_lea.hbm %s14149_s0, %s8707_s6 }
  0x46   : > { %s212_s11 = scalar_lea.vmem [#allocation3], %s8115_s7  ;;  %p11438_p12 = pnand %p11050_p7, %p38_p10 }
  0x47   : > { %s219_s28 = sshll.u32 %s212_s11, 4  ;;  %s11442_s13 = scalar_lea.sflag [#allocation4], %s208_s30  ;;  %s11436_s28 = int_to_ptr.vmem [resolvable:$true] %s219_s28 }
  0x48   : > { %s11153_s14 = scalar_lea.hbm %s11434_s10, 4096  ;;  %p11155_p3 = pneg %p11438_p12 }
  0x49   : > { %p11154_p13 = scmp.ne.s32.totalorder %s11434_s10, %s11153_s14  ;;  %s11158_s6 = scalar_lea.hbm %s14149_s0, 8192 }
  0x4a   : > { %p11159_p0 = scmp.lt.u32.totalorder %s11434_s10, %s14149_s0  ;;  %p11160_p6 = scmp.lt.u32.totalorder %s11158_s6, %s11153_s14 }
  0x4b   : > { %p11156_p1 = pnand %p11155_p3, %p11154_p13  ;;  %p11162_p11 = scmp.lt.u32.totalorder %s11153_s14, %s11434_s10 }
  0x4c   : > { %p11161_p8 = por %p11160_p6, %p11159_p0 }
  0x4d   : > { %p11157_p2 = pneg %p11156_p1 }
  0x4e   : > { %p11163_p7 = por %p11162_p11, %p11161_p8 }
  0x50   : > { %p11164_p10 = pnand %p11163_p7, %p11157_p2 }
  0x52   : > { %11167 = shalt.err (!%p11164_p10)
}
  0x53   : > { %s11168_s30 = scalar_lea.vmem %s11436_s28, 4096  ;;  %s11259_s11 = smov [#allocation3]  }
  0x54   : > { %p11169_p13 = scmp.ne.s32.totalorder %s11436_s28, %s11168_s30  ;;  %s11173_s17 = sshll.u32 %s11259_s11, 4  ;;  %s11174_s17 = int_to_ptr.vmem [resolvable:$false] %s11173_s17 }
  0x55   : > { %s11175_s7 = scalar_lea.vmem %s11174_s17, 8192  ;;  %p11176_p4 = scmp.lt.s32.totalorder %s11436_s28, %s11174_s17 }
  0x56   : > { %p11171_p1 = pnand %p11169_p13, %p11155_p3  ;;  %p11177_p0 = scmp.lt.s32.totalorder %s11175_s7, %s11168_s30 }
  0x58   : > { %p11172_p5 = pneg %p11171_p1  ;;  %p11178_p6 = por %p11177_p0, %p11176_p4 }
  0x5a   : > { %p11179_p8 = pnand %p11178_p6, %p11172_p5 }
  0x5c   : > { %11182 = shalt.err (!%p11179_p8)
}
  0x5d   : > { %11043 = dma.hbm_to_vmem [thread:$0]  (!%p11438_p12), %s11434_s10, 4096, %s11436_s28, %s11442_s13, %s11257_s15, %s11257_s15, %s11258_s16  }
  0x5e   : > { %231 = sbr.rel (%p11335_p9) target bundleno = 2023 (0x7e7), region = 40 }
  0x65   : > { %s11476_s14 = sand.u32 1, %s11245_s19   ;;  %p14328_p4 = scmp.ne.s32.totalorder %s14321_s24, 0 }
  0x66   : > { %s8119_s6 = sshll.u32 %s11476_s14, 8  ;;  %s234_s8 = scalar_lea.sflag [#allocation4], %s11476_s14 }
  0x67   : > { %s11480_s9 = scalar_lea.vmem [#allocation3], %s8119_s6 }
  0x68   : > { %11228 = dma.done.wait (%p14328_p4), %s234_s8, 4096  }
  0x69   : > { %11230 = vsyncadd (%p14328_p4), %s234_s8, 4294963200  ;;  %p14329_p5 = scmp.eq.s32.totalorder %s11315_s22, 0 }
  0x6b   : > { %11232 = dma.done.wait (%p14329_p5), [#allocation7], 9216   ;;  %p14330_p9 = pmov %p14329_p5 }
  0x6c   : > { %s11490_s26 = scalar_lea.vmem [#allocation9], %s8119_s6  ;;  %p14331_p12 = scmp.ne.s32.totalorder %s11315_s22, 0 }
  0x6d   : > { %11234 = vsyncadd (%p14330_p9), [#allocation7], 4294958080  ;;  %vm276_vm0 = vcmask (!%p14331_p12), 261120   ;;  %vm279_vm1 = vcmask (!%p14331_p12), 254976   ;;  %v11260_v0 = vmov (!%p14331_p12), 0.0  }
  0x6e   : > { %275 = sbr.rel (%p14331_p12) target bundleno = 137 (0x89), region = 56  ;;  %277 = vst.msk [vmem:[#allocation2] sm:$0xff] (!%p14331_p12), %vm276_vm0, %v11260_v0  ;;  %278 = vst.msk [vmem:[#allocation2 + $0x8] sm:$0xff] (!%p14331_p12), %vm276_vm0, %v11260_v0 }
  0x6f   : > { %281 = vst.msk [vmem:[#allocation2 + $0x18] sm:$0xff] (!%p14331_p12), %vm276_vm0, %v11260_v0  ;;  %282 = vst.msk [vmem:[#allocation2 + $0x20] sm:$0xff] (!%p14331_p12), %vm276_vm0, %v11260_v0 }
  0x70   : > { %284 = vst.msk [vmem:[#allocation2 + $0x30] sm:$0xff] (!%p14331_p12), %vm276_vm0, %v11260_v0  ;;  %285 = vst.msk [vmem:[#allocation2 + $0x38] sm:$0xff] (!%p14331_p12), %vm276_vm0, %v11260_v0 }
  0x71   : > { %287 = vst.msk [vmem:[#allocation2 + $0x48] sm:$0xff] (!%p14331_p12), %vm276_vm0, %v11260_v0  ;;  %288 = vst.msk [vmem:[#allocation2 + $0x50] sm:$0xff] (!%p14331_p12), %vm276_vm0, %v11260_v0 }
  0x72   : > { %290 = vst.msk [vmem:[#allocation2 + $0x60] sm:$0xff] (!%p14331_p12), %vm276_vm0, %v11260_v0  ;;  %291 = vst.msk [vmem:[#allocation2 + $0x68] sm:$0xff] (!%p14331_p12), %vm276_vm0, %v11260_v0 }
  0x73   : > { %293 = vst.msk [vmem:[#allocation2 + $0x78] sm:$0xff] (!%p14331_p12), %vm276_vm0, %v11260_v0  ;;  %294 = vst.msk [vmem:[#allocation2 + $0x80] sm:$0xff] (!%p14331_p12), %vm276_vm0, %v11260_v0 }
  0x74   : > { %296 = vst.msk [vmem:[#allocation2 + $0x90] sm:$0xff] (!%p14331_p12), %vm276_vm0, %v11260_v0  ;;  %297 = vst.msk [vmem:[#allocation2 + $0x98] sm:$0xff] (!%p14331_p12), %vm276_vm0, %v11260_v0 }
  0x75   : > { %299 = vst.msk [vmem:[#allocation2 + $0xa8] sm:$0xff] %vm276_vm0, %v11260_v0  ;;  %300 = vst.msk [vmem:[#allocation2 + $0xb0] sm:$0xff] %vm276_vm0, %v11260_v0 }
  0x76   : > { %302 = vst.msk [vmem:[#allocation2 + $0xc0] sm:$0xff] %vm276_vm0, %v11260_v0  ;;  %303 = vst.msk [vmem:[#allocation2 + $0xc8] sm:$0xff] %vm276_vm0, %v11260_v0 }
  0x77   : > { %305 = vst.msk [vmem:[#allocation2 + $0xd8] sm:$0xff] %vm276_vm0, %v11260_v0  ;;  %306 = vst.msk [vmem:[#allocation2 + $0xe0] sm:$0xff] %vm276_vm0, %v11260_v0 }
  0x78   : > { %308 = vst.msk [vmem:[#allocation2 + $0xf0] sm:$0xff] %vm276_vm0, %v11260_v0  ;;  %309 = vst.msk [vmem:[#allocation2 + $0xf8] sm:$0xff] %vm276_vm0, %v11260_v0 }
  0x79   : > { %311 = vst.msk [vmem:[#allocation2 + $0x108] sm:$0xff] %vm276_vm0, %v11260_v0  ;;  %312 = vst.msk [vmem:[#allocation2 + $0x110] sm:$0xff] %vm276_vm0, %v11260_v0 }
  0x7a   : > { %314 = vst.msk [vmem:[#allocation2 + $0x120] sm:$0xff] %vm276_vm0, %v11260_v0  ;;  %315 = vst.msk [vmem:[#allocation2 + $0x128] sm:$0xff] %vm276_vm0, %v11260_v0 }
  0x7b   : > { %317 = vst.msk [vmem:[#allocation2 + $0x138] sm:$0xff] %vm276_vm0, %v11260_v0  ;;  %318 = vst.msk [vmem:[#allocation2 + $0x140] sm:$0xff] %vm276_vm0, %v11260_v0 }
  0x7c   : > { %320 = vst.msk [vmem:[#allocation2 + $0x150] sm:$0xff] %vm276_vm0, %v11260_v0  ;;  %321 = vst.msk [vmem:[#allocation2 + $0x158] sm:$0xff] %vm276_vm0, %v11260_v0 }
  0x7d   : > { %323 = vst.msk [vmem:[#allocation2 + $0x168] sm:$0xff] %vm276_vm0, %v11260_v0  ;;  %324 = vst.msk [vmem:[#allocation2 + $0x170] sm:$0xff] %vm276_vm0, %v11260_v0 }
  0x7e   : > { %326 = vst.msk [vmem:[#allocation2 + $0x180] sm:$0xff] %vm276_vm0, %v11260_v0  ;;  %327 = vst.msk [vmem:[#allocation2 + $0x188] sm:$0xff] %vm276_vm0, %v11260_v0 }
  0x7f   : > { %329 = vst.msk [vmem:[#allocation2 + $0x198] sm:$0xff] %vm276_vm0, %v11260_v0  ;;  %330 = vst.msk [vmem:[#allocation2 + $0x1a0] sm:$0xff] %vm276_vm0, %v11260_v0 }
  0x80   : > { %280 = vst.msk [vmem:[#allocation2 + $0x10] sm:$0x3] %vm279_vm1, %v11260_v0  ;;  %283 = vst.msk [vmem:[#allocation2 + $0x28] sm:$0x3] %vm279_vm1, %v11260_v0 }
  0x81   : > { %286 = vst.msk [vmem:[#allocation2 + $0x40] sm:$0x3] %vm279_vm1, %v11260_v0  ;;  %289 = vst.msk [vmem:[#allocation2 + $0x58] sm:$0x3] %vm279_vm1, %v11260_v0 }
  0x82   : > { %292 = vst.msk [vmem:[#allocation2 + $0x70] sm:$0x3] %vm279_vm1, %v11260_v0  ;;  %295 = vst.msk [vmem:[#allocation2 + $0x88] sm:$0x3] %vm279_vm1, %v11260_v0 }
  0x83   : > { %298 = vst.msk [vmem:[#allocation2 + $0xa0] sm:$0x3] %vm279_vm1, %v11260_v0  ;;  %301 = vst.msk [vmem:[#allocation2 + $0xb8] sm:$0x3] %vm279_vm1, %v11260_v0 }
  0x84   : > { %304 = vst.msk [vmem:[#allocation2 + $0xd0] sm:$0x3] %vm279_vm1, %v11260_v0  ;;  %307 = vst.msk [vmem:[#allocation2 + $0xe8] sm:$0x3] %vm279_vm1, %v11260_v0 }
  0x85   : > { %310 = vst.msk [vmem:[#allocation2 + $0x100] sm:$0x3] %vm279_vm1, %v11260_v0  ;;  %313 = vst.msk [vmem:[#allocation2 + $0x118] sm:$0x3] %vm279_vm1, %v11260_v0 }
  0x86   : > { %316 = vst.msk [vmem:[#allocation2 + $0x130] sm:$0x3] %vm279_vm1, %v11260_v0  ;;  %319 = vst.msk [vmem:[#allocation2 + $0x148] sm:$0x3] %vm279_vm1, %v11260_v0 }
  0x87   : > { %322 = vst.msk [vmem:[#allocation2 + $0x160] sm:$0x3] %vm279_vm1, %v11260_v0  ;;  %325 = vst.msk [vmem:[#allocation2 + $0x178] sm:$0x3] %vm279_vm1, %v11260_v0 }
  0x88   : > { %328 = vst.msk [vmem:[#allocation2 + $0x190] sm:$0x3] %vm279_vm1, %v11260_v0  ;;  %331 = vst.msk [vmem:[#allocation2 + $0x1a8] sm:$0x3] %vm279_vm1, %v11260_v0 }
  0x89 PF: > { %v467_v1 = vld [vmem:[#allocation6 + $0x20] sm:$0xff]  ;;  %v468_v2 = vld [vmem:[#allocation6 + $0x28] sm:$0xff]  ;;  %v469_v3 = vld [vmem:[#allocation6 + $0x30] sm:$0xff]  ;;  %vm365_vm2 = vcmask 261120   ;;  %s8708_s28 = sshll.u32 %s11315_s22, 12  ;;  %s8018_s12 = sshll.u32 %s11490_s26, 4  ;;  %s14086_s12 = int_to_ptr.vmem [resolvable:$true] %s8018_s12 }
  0x8a   : > { %v10365_v4 = vpack.c.bf16 %v468_v2, %v467_v1  ;;  %v470_v5 = vld [vmem:[#allocation6 + $0x38] sm:$0xff]  ;;  %v430_v8 = vld [vmem:[#allocation6] sm:$0xff]  ;;  %v431_v9 = vld [vmem:[#allocation6 + $0x8] sm:$0xff]  ;;  %s14084_s30 = scalar_lea.hbm %s14154_s5, %s8708_s28  ;;  %s8005_s11 = scalar_lea.sflag [#allocation5], %s11476_s14 }
  0x8b   : > { %v434_v6 = vld [vmem:[#allocation2 + $0x1] sm:$0xff]  ;;  %v10369_v7 = vpack.c.bf16 %v470_v5, %v469_v3  ;;  %v11550_v10 = vld [vmem:[%s11480_s9] sm:$0xff]  ;;  %v11555_v11 = vld [vmem:[%s11480_s9 + $0x8] sm:$0xff]  ;;  %v10373_v17 = vpack.c.bf16 %v431_v9, %v430_v8  ;;  %s11183_s17 = scalar_lea.vmem %s14086_s12, 4096  ;;  %p14573_p2 = scmp.ne.s32.totalorder %s14326_s23, 0 }
  0x8c   : > { %9365 = vmatprep.mubr.msk.f32.mxu0 %vm365_vm2, %v434_v6  ;;  %14332 = vst [vmem:[#allocation13_spill] sm:$0xff] %v11550_v10  ;;  %10366 = vmatprep.subr.bf16.mxu0 %v10365_v4  ;;  %366 = vst.msk [vmem:[#allocation2 + $0x19] sm:$0xff] %vm365_vm2, %v11550_v10  ;;  %v11558_v12 = vld [vmem:[%s11480_s9 + $0x10] sm:$0xff]  ;;  %v11561_v13 = vld [vmem:[%s11480_s9 + $0x18] sm:$0xff]  ;;  %p11184_p3 = scmp.ne.s32.totalorder %s14086_s12, %s11183_s17  ;;  %s11261_s7 = smov [#allocation9]  }
  0x8d   : > { %14333 = vst [vmem:[#allocation14_spill] sm:$0xff] %v11555_v11  ;;  %14334 = vst [vmem:[#allocation15_spill] sm:$0xff] %v11558_v12  ;;  %10368 = vmatpush3.bf16.msra.mxu0 %v10365_v4  ;;  %v11570_v14 = vld [vmem:[%s11480_s9 + $0x20] sm:$0xff]  ;;  %v11573_v15 = vld [vmem:[%s11480_s9 + $0x28] sm:$0xff]  ;;  %s11187_s6 = sshll.u32 %s11261_s7, 4  ;;  %s11188_s6 = int_to_ptr.vmem [resolvable:$false] %s11187_s6 }
  0x8e   : > { %14335 = vst [vmem:[#allocation16_spill] sm:$0xff] %v11561_v13  ;;  %367 = vst.msk [vmem:[#allocation2 + $0x21] sm:$0xff] %vm365_vm2, %v11555_v11  ;;  %v11576_v16 = vld [vmem:[%s11480_s9 + $0x30] sm:$0xff]  ;;  %10370 = vmatprep.subr.bf16.mxu0 %v10369_v7  ;;  %v11585_v18 = vld [vmem:[%s11480_s9 + $0x38] sm:$0xff]  ;;  %p11185_p11 = pnand %p11184_p3, %p14573_p2  ;;  %s11189_s8 = scalar_lea.vmem %s11188_s6, 8192 }
  0x8f   : > { %368 = vst.msk [vmem:[#allocation2 + $0x31] sm:$0xff] %vm365_vm2, %v11558_v12  ;;  %369 = vst.msk [vmem:[#allocation2 + $0x39] sm:$0xff] %vm365_vm2, %v11561_v13  ;;  %v11588_v19 = vld [vmem:[%s11480_s9 + $0x40] sm:$0xff]  ;;  %v11591_v20 = vld [vmem:[%s11480_s9 + $0x48] sm:$0xff]  ;;  %p11190_p10 = scmp.lt.s32.totalorder %s14086_s12, %s11188_s6  ;;  %p11191_p13 = scmp.lt.s32.totalorder %s11189_s8, %s11183_s17 }
  0x90   : > { %14336 = vst [vmem:[#allocation17_spill] sm:$0xff] %v11570_v14  ;;  %14337 = vst [vmem:[#allocation18_spill] sm:$0xff] %v11573_v15  ;;  %v435_v21 = vld [vmem:[#allocation2 + $0x9] sm:$0xff]  ;;  %v11600_v22 = vld [vmem:[%s11480_s9 + $0x50] sm:$0xff]  ;;  %p11186_p7 = pneg %p11185_p11 }
  0x91   : > { %14338 = vst [vmem:[#allocation19_spill] sm:$0xff] %v11576_v16  ;;  %370 = vst.msk [vmem:[#allocation2 + $0x49] sm:$0xff] %vm365_vm2, %v11570_v14  ;;  %v11603_v23 = vld [vmem:[%s11480_s9 + $0x58] sm:$0xff]  ;;  %v11606_v24 = vld [vmem:[%s11480_s9 + $0x60] sm:$0xff]  ;;  %10372 = vmatpush3.bf16.msra.mxu0 %v10369_v7  ;;  %p11192_p1 = por %p11191_p13, %p11190_p10 }
  0x92   : > { %371 = vst.msk [vmem:[#allocation2 + $0x51] sm:$0xff] %vm365_vm2, %v11573_v15  ;;  %372 = vst.msk [vmem:[#allocation2 + $0x61] sm:$0xff] %vm365_vm2, %v11576_v16  ;;  %v11615_v25 = vld [vmem:[%s11480_s9 + $0x68] sm:$0xff]  ;;  %v11618_v26 = vld [vmem:[%s11480_s9 + $0x70] sm:$0xff]  ;;  %10374 = vmatprep.subr.bf16.mxu0 %v10373_v17 }
  0x93   : > { %14339 = vst [vmem:[#allocation20_spill] sm:$0xff] %v11585_v18  ;;  %14340 = vst [vmem:[#allocation21_spill] sm:$0xff] %v11588_v19  ;;  %v11621_v27 = vld [vmem:[%s11480_s9 + $0x78] sm:$0xff]  ;;  %v432_v28 = vld [vmem:[#allocation6 + $0x10] sm:$0xff]  ;;  %p11193_p0 = pnand %p11192_p1, %p11186_p7 }
  0x94   : > { %14341 = vst [vmem:[#allocation22_spill] sm:$0xff] %v11591_v20  ;;  %373 = vst.msk [vmem:[#allocation2 + $0x69] sm:$0xff] %vm365_vm2, %v11585_v18  ;;  %v433_v29 = vld [vmem:[#allocation6 + $0x18] sm:$0xff]  ;;  %v11630_v30 = vld [vmem:[%s11480_s9 + $0x80] sm:$0xff]  ;;  %9366 = vmatmul.mubr.msk.f32.vlgmr.msra.gmra.mrb[0].mxu0 %vm365_vm2, %v435_v21 }
  0x95   : > { %374 = vst.msk [vmem:[#allocation2 + $0x79] sm:$0xff] %vm365_vm2, %v11588_v19  ;;  %375 = vst.msk [vmem:[#allocation2 + $0x81] sm:$0xff] %vm365_vm2, %v11591_v20  ;;  %v10377_v31 = vpack.c.bf16 %v433_v29, %v432_v28  ;;  %v11635_v32 = vld [vmem:[%s11480_s9 + $0x88] sm:$0xff]  ;;  %v11638_v33 = vld [vmem:[%s11480_s9 + $0x90] sm:$0xff]  ;;  %10376 = vmatpush3.bf16.msra.mxu0 %v10373_v17 }
  0x96   : > { %14342 = vst [vmem:[#allocation23_spill] sm:$0xff] %v11600_v22  ;;  %14343 = vst [vmem:[#allocation24_spill] sm:$0xff] %v11603_v23  ;;  %v11641_v34 = vld [vmem:[%s11480_s9 + $0x98] sm:$0xff]  ;;  %v11643_v35 = vld [vmem:[#allocation2 + $0x19] sm:$0xff] }
  0x97   : > { %14344 = vst [vmem:[#allocation25_spill] sm:$0xff] %v11606_v24  ;;  %376 = vst.msk [vmem:[#allocation2 + $0x91] sm:$0xff] %vm365_vm2, %v11600_v22  ;;  %v11652_v36 = vld [vmem:[%s11480_s9 + $0xa0] sm:$0xff]  ;;  %v11655_v37 = vld [vmem:[%s11480_s9 + $0xa8] sm:$0xff]  ;;  %9368 = vmatprep.mubr.msk.f32.mxu0 %vm365_vm2, %v11643_v35  ;;  %10378 = vmatprep.subr.bf16.mxu0 %v10377_v31 }
  0x98   : > { %377 = vst.msk [vmem:[#allocation2 + $0x99] sm:$0xff] %vm365_vm2, %v11603_v23  ;;  %378 = vst.msk [vmem:[#allocation2 + $0xa9] sm:$0xff] %vm365_vm2, %v11606_v24  ;;  %v11664_v38 = vld [vmem:[#allocation2 + $0x21] sm:$0xff]  ;;  %v11666_v39 = vld [vmem:[#allocation2 + $0x31] sm:$0xff] }
  0x99   : > { %14345 = vst [vmem:[#allocation26_spill] sm:$0xff] %v11615_v25  ;;  %14346 = vst [vmem:[#allocation27_spill] sm:$0xff] %v11618_v26  ;;  %9369 = vmatmul.mubr.msk.f32.gmra.mrb[2].mxu0 %vm365_vm2, %v11664_v38  ;;  %v11672_v40 = vld [vmem:[#allocation2 + $0x39] sm:$0xff]  ;;  %v11678_v42 = vld [vmem:[%s11480_s9 + $0xb8] sm:$0xff] }
  0x9a   : > { %14347 = vst [vmem:[#allocation28_spill] sm:$0xff] %v11621_v27  ;;  %379 = vst.msk [vmem:[#allocation2 + $0xb1] sm:$0xff] %vm365_vm2, %v11615_v25  ;;  %9371 = vmatprep.mubr.msk.f32.mxu0 %vm365_vm2, %v11666_v39  ;;  %10380 = vmatpush3.bf16.msra.mxu0 %v10377_v31  ;;  %v11675_v41 = vld [vmem:[%s11480_s9 + $0xb0] sm:$0xff]  ;;  %v11680_v43 = vld [vmem:[#allocation2 + $0x49] sm:$0xff] }
  0x9b   : > { %380 = vst.msk [vmem:[#allocation2 + $0xc1] sm:$0xff] %vm365_vm2, %v11618_v26  ;;  %381 = vst.msk [vmem:[#allocation2 + $0xc9] sm:$0xff] %vm365_vm2, %v11621_v27  ;;  %v11687_v44 = vld [vmem:[%s11480_s9 + $0xc0] sm:$0xff]  ;;  %v11694_v45 = vld [vmem:[%s11480_s9 + $0xc8] sm:$0xff] }
  0x9c   : > { %14348 = vst [vmem:[#allocation29_spill] sm:$0xff] %v11630_v30  ;;  %382 = vst.msk [vmem:[#allocation2 + $0xd9] sm:$0xff] %vm365_vm2, %v11630_v30  ;;  %v11697_v46 = vld [vmem:[%s11480_s9 + $0xd0] sm:$0xff]  ;;  %v11700_v47 = vld [vmem:[%s11480_s9 + $0xd8] sm:$0xff] }
  0x9d   : > { %14349 = vst [vmem:[#allocation30_spill] sm:$0xff] %v11635_v32  ;;  %14350 = vst [vmem:[#allocation31_spill] sm:$0xff] %v11638_v33  ;;  %9372 = vmatmul.mubr.msk.f32.gmra.mrb[4].mxu0 %vm365_vm2, %v11672_v40  ;;  %v11704_v48 = vld [vmem:[#allocation2 + $0x51] sm:$0xff]  ;;  %v11718_v51 = vld [vmem:[#allocation2 + $0x61] sm:$0xff] }
  0x9e   : > { %14351 = vst [vmem:[#allocation32_spill] sm:$0xff] %v11641_v34  ;;  %383 = vst.msk [vmem:[#allocation2 + $0xe1] sm:$0xff] %vm365_vm2, %v11635_v32  ;;  %9374 = vmatprep.mubr.msk.f32.mxu0 %vm365_vm2, %v11680_v43  ;;  %v11713_v49 = vld [vmem:[%s11480_s9 + $0xe0] sm:$0xff]  ;;  %v11716_v50 = vld [vmem:[%s11480_s9 + $0xe8] sm:$0xff] }
  0x9f   : > { %384 = vst.msk [vmem:[#allocation2 + $0xf1] sm:$0xff] %vm365_vm2, %v11638_v33  ;;  %385 = vst.msk [vmem:[#allocation2 + $0xf9] sm:$0xff] %vm365_vm2, %v11641_v34  ;;  %v1146_v52 = vld [vmem:[#allocation6 + $0x40] sm:$0xff]  ;;  %v1147_v53 = vld [vmem:[#allocation6 + $0x48] sm:$0xff] }
  0xa0   : > { %14352 = vst [vmem:[#allocation33_spill] sm:$0xff] %v11652_v36  ;;  %14353 = vst [vmem:[#allocation34_spill] sm:$0xff] %v11655_v37  ;;  %v10381_v54 = vpack.c.bf16 %v1147_v53, %v1146_v52  ;;  %v11728_v55 = vld [vmem:[#allocation2 + $0x69] sm:$0xff]  ;;  %v11730_v56 = vld [vmem:[#allocation2 + $0x79] sm:$0xff] }
  0xa1   : > { %386 = vst.msk [vmem:[#allocation2 + $0x109] sm:$0xff] %vm365_vm2, %v11652_v36  ;;  %387 = vst.msk [vmem:[#allocation2 + $0x111] sm:$0xff] %vm365_vm2, %v11655_v37  ;;  %9375 = vmatmul.mubr.msk.f32.gmra.mrb[6].mxu0 %vm365_vm2, %v11704_v48  ;;  %v11736_v57 = vld [vmem:[#allocation2 + $0x81] sm:$0xff]  ;;  %v11738_v58 = vld [vmem:[#allocation2 + $0x91] sm:$0xff] }
  0xa2   : > { %14354 = vst [vmem:[#allocation35_spill] sm:$0xff] %v11675_v41  ;;  %14355 = vst [vmem:[#allocation36_spill] sm:$0xff] %v11678_v42  ;;  %9377 = vmatprep.mubr.msk.f32.mxu0 %vm365_vm2, %v11718_v51  ;;  %10382 = vmatprep.subr.bf16.mxu0 %v10381_v54  ;;  %v11744_v59 = vld [vmem:[#allocation2 + $0x99] sm:$0xff]  ;;  %v11746_v60 = vld [vmem:[#allocation2 + $0xa9] sm:$0xff] }
  0xa3   : > { %388 = vst.msk [vmem:[#allocation2 + $0x121] sm:$0xff] %vm365_vm2, %v11675_v41  ;;  %389 = vst.msk [vmem:[#allocation2 + $0x129] sm:$0xff] %vm365_vm2, %v11678_v42  ;;  %v11752_v61 = vld [vmem:[#allocation2 + $0xb1] sm:$0xff]  ;;  %v11754_v62 = vld [vmem:[#allocation2 + $0xc1] sm:$0xff] }
  0xa4   : > { %14356 = vst [vmem:[#allocation37_spill] sm:$0xff] %v11687_v44  ;;  %390 = vst.msk [vmem:[#allocation2 + $0x139] sm:$0xff] %vm365_vm2, %v11687_v44  ;;  %v11760_v63 = vld [vmem:[#allocation2 + $0xc9] sm:$0xff]  ;;  %v11762_v0 = vld [vmem:[#allocation2 + $0xd9] sm:$0xff] }
  0xa5   : > { %14357 = vst [vmem:[#allocation38_spill] sm:$0xff] %v11694_v45  ;;  %14358 = vst [vmem:[#allocation39_spill] sm:$0xff] %v11697_v46  ;;  %9378 = vmatmul.mubr.msk.f32.gmra.mrb[8].mxu0 %vm365_vm2, %v11728_v55  ;;  %v11768_v1 = vld [vmem:[#allocation2 + $0xe1] sm:$0xff]  ;;  %v11828_v42 = vld [vmem:[#allocation2 + $0x30] sm:$0xff] }
  0xa6   : > { %14359 = vst [vmem:[#allocation40_spill] sm:$0xff] %v11700_v47  ;;  %391 = vst.msk [vmem:[#allocation2 + $0x141] sm:$0xff] %vm365_vm2, %v11694_v45  ;;  %9380 = vmatprep.mubr.msk.f32.mxu0 %vm365_vm2, %v11730_v56  ;;  %v11770_v2 = vld [vmem:[#allocation2 + $0xf1] sm:$0xff]  ;;  %v11776_v3 = vld [vmem:[#allocation2 + $0xf9] sm:$0xff] }
  0xa7   : > { %392 = vst.msk [vmem:[#allocation2 + $0x151] sm:$0xff] %vm365_vm2, %v11697_v46  ;;  %393 = vst.msk [vmem:[#allocation2 + $0x159] sm:$0xff] %vm365_vm2, %v11700_v47  ;;  %v398_v31 = vld [vmem:[#allocation2] sm:$0xff]  ;;  %v1149_v53 = vld [vmem:[#allocation6 + $0x58] sm:$0xff] }
  0xa8   : > { %14360 = vst [vmem:[#allocation41_spill] sm:$0xff] %v11713_v49  ;;  %14361 = vst [vmem:[#allocation42_spill] sm:$0xff] %v11716_v50  ;;  %v11778_v4 = vld [vmem:[#allocation2 + $0x109] sm:$0xff]  ;;  %v11784_v5 = vld [vmem:[#allocation2 + $0x111] sm:$0xff] }
  0xa9   : > { %394 = vst.msk [vmem:[#allocation2 + $0x169] sm:$0xff] %vm365_vm2, %v11713_v49  ;;  %395 = vst.msk [vmem:[#allocation2 + $0x171] sm:$0xff] %vm365_vm2, %v11716_v50  ;;  %9381 = vmatmul.mubr.msk.f32.gmra.mrb[10].mxu0 %vm365_vm2, %v11736_v57  ;;  %v1148_v52 = vld [vmem:[#allocation6 + $0x50] sm:$0xff]  ;;  %v399_v50 = vld [vmem:[#allocation2 + $0x8] sm:$0xff] }
  0xaa   : > { %9383 = vmatprep.mubr.msk.f32.mxu0 %vm365_vm2, %v11738_v58  ;;  %v11786_v6 = vld [vmem:[#allocation2 + $0x121] sm:$0xff]  ;;  %v11792_v7 = vld [vmem:[#allocation2 + $0x129] sm:$0xff]  ;;  %v11821_v49 = vld [vmem:[#allocation2 + $0x18] sm:$0xff]  ;;  %v10385_v47 = vpack.c.bf16 %v1149_v53, %v1148_v52 }
  0xab   : > { %14362 = vst [vmem:[#allocation43_spill] sm:$0xff] %v11786_v6  ;;  %14363 = vst [vmem:[#allocation44_spill] sm:$0xff] %v11792_v7  ;;  %v11794_v8 = vld [vmem:[#allocation2 + $0x139] sm:$0xff]  ;;  %v1536_v46 = vld [vmem:[#allocation6 + $0x60] sm:$0xff] }
  0xac   : > { %14364 = vst [vmem:[#allocation45_spill] sm:$0xff] %v11794_v8  ;;  %v1537_v45 = vld [vmem:[#allocation6 + $0x68] sm:$0xff]  ;;  %v11826_v44 = vld [vmem:[#allocation2 + $0x20] sm:$0xff]  ;;  %v11863_v53 = vld [vmem:[#allocation2 + $0x90] sm:$0xff] }
  0xad   : > { %9384 = vmatmul.mubr.msk.f32.gmra.mrb[12].mxu0 %vm365_vm2, %v11744_v59  ;;  %v11800_v9 = vld [vmem:[#allocation2 + $0x141] sm:$0xff]  ;;  %v11830_v41 = vpack.c.bf16 %v1537_v45, %v1536_v46  ;;  %v11845_v45 = vld [vmem:[#allocation2 + $0x50] sm:$0xff]  ;;  %v11869_v37 = vld [vmem:[#allocation2 + $0x98] sm:$0xff] }
  0xae   : > { %9386 = vmatprep.mubr.msk.f32.mxu0 %vm365_vm2, %v11746_v60  ;;  %14365 = vst [vmem:[#allocation46_spill] sm:$0xff] %v11800_v9  ;;  %v11802_v17 = vld [vmem:[#allocation2 + $0x151] sm:$0xff]  ;;  %v11808_v21 = vld [vmem:[#allocation2 + $0x159] sm:$0xff]  ;;  %v11871_v36 = vld [vmem:[#allocation2 + $0xa8] sm:$0xff] }
  0xaf   : > { %14366 = vst [vmem:[#allocation47_spill] sm:$0xff] %v11802_v17  ;;  %14367 = vst [vmem:[#allocation48_spill] sm:$0xff] %v11808_v21  ;;  %v11847_v46 = vld [vmem:[#allocation2 + $0x60] sm:$0xff]  ;;  %v11877_v34 = vld [vmem:[#allocation2 + $0xb0] sm:$0xff] }
  0xb0   : > { %v11810_v28 = vld [vmem:[#allocation2 + $0x169] sm:$0xff]  ;;  %v11816_v29 = vld [vmem:[#allocation2 + $0x171] sm:$0xff]  ;;  %v11861_v52 = vld [vmem:[#allocation2 + $0x80] sm:$0xff] }
  0xb1   : > { %9387 = vmatmul.mubr.msk.f32.gmra.mrb[14].mxu0 %vm365_vm2, %v11752_v61  ;;  %14368 = vst [vmem:[#allocation49_spill] sm:$0xff] %v11810_v28  ;;  %14369 = vst [vmem:[#allocation50_spill] sm:$0xff] %v11816_v29  ;;  %v11879_v33 = vld [vmem:[#allocation2 + $0xc0] sm:$0xff]  ;;  %v11885_v32 = vld [vmem:[#allocation2 + $0xc8] sm:$0xff] }
  0xb2   : > { %9389 = vmatprep.mubr.msk.f32.mxu0 %vm365_vm2, %v11754_v62  ;;  %v11887_v30 = vld [vmem:[#allocation2 + $0xd8] sm:$0xff]  ;;  %v11893_v27 = vld [vmem:[#allocation2 + $0xe0] sm:$0xff]  ;;  %v11895_v26 = vld [vmem:[#allocation2 + $0xf0] sm:$0xff] }
  0xb3   : > { %v11901_v25 = vld [vmem:[#allocation2 + $0xf8] sm:$0xff]  ;;  %v11903_v24 = vld [vmem:[#allocation2 + $0x108] sm:$0xff]  ;;  %v11909_v23 = vld [vmem:[#allocation2 + $0x110] sm:$0xff] }
  0xb4   : > { %v11911_v22 = vld [vmem:[#allocation2 + $0x120] sm:$0xff]  ;;  %v11917_v20 = vld [vmem:[#allocation2 + $0x128] sm:$0xff]  ;;  %v11919_v19 = vld [vmem:[#allocation2 + $0x138] sm:$0xff] }
  0xb5   : > { %9390 = vmatmul.mubr.msk.f32.gmra.mrb[16].mxu0 %vm365_vm2, %v11760_v63  ;;  %v11925_v18 = vld [vmem:[#allocation2 + $0x140] sm:$0xff]  ;;  %v11927_v16 = vld [vmem:[#allocation2 + $0x150] sm:$0xff]  ;;  %v11935_v14 = vld [vmem:[%s11480_s9 + $0xf8] sm:$0xff] }
  0xb6   : > { %9392 = vmatprep.mubr.msk.f32.mxu0 %vm365_vm2, %v11762_v0  ;;  %v11930_v15 = vld [vmem:[%s11480_s9 + $0xf0] sm:$0xff]  ;;  %14371 = vst [vmem:[#allocation52_spill] sm:$0xff] %v11935_v14  ;;  %397 = vst.msk [vmem:[#allocation2 + $0x189] sm:$0xff] %vm365_vm2, %v11935_v14  ;;  %v11943_v13 = vld [vmem:[#allocation2 + $0x158] sm:$0xff] }
  0xb7   : > { %14370 = vst [vmem:[#allocation51_spill] sm:$0xff] %v11930_v15  ;;  %396 = vst.msk [vmem:[#allocation2 + $0x181] sm:$0xff] %vm365_vm2, %v11930_v15  ;;  %v11945_v12 = vld [vmem:[#allocation2 + $0x168] sm:$0xff]  ;;  %v11951_v11 = vld [vmem:[#allocation2 + $0x170] sm:$0xff] }
  0xb8   : > { %v1113_v10 = vld [vmem:[#allocation2 + $0x2] sm:$0xff]  ;;  %v1114_v14 = vld [vmem:[#allocation2 + $0xa] sm:$0xff] }
  0xb9   : > { %9393 = vmatmul.mubr.msk.f32.gmra.mrb[18].mxu0 %vm365_vm2, %v11768_v1  ;;  %v1538_v15 = vld [vmem:[#allocation6 + $0x70] sm:$0xff] }
  0xba   : > { %9395 = vmatprep.mubr.msk.f32.mxu0 %vm365_vm2, %v11770_v2 }
  0xbd   : > { %9396 = vmatmul.mubr.msk.f32.gmra.mrb[20].mxu0 %vm365_vm2, %v11776_v3 }
  0xbe   : > { %9398 = vmatprep.mubr.msk.f32.mxu0 %vm365_vm2, %v11778_v4 }
  0xc1   : > { %9399 = vmatmul.mubr.msk.f32.gmra.mrb[22].mxu0 %vm365_vm2, %v11784_v5 }
  0xc2   : > { %9401 = vmatprep.mubr.msk.f32.mxu0 %vm365_vm2, %v11786_v6 }
  0xc5   : > { %9402 = vmatmul.mubr.msk.f32.gmra.mrb[24].mxu0 %vm365_vm2, %v11792_v7  ;;  %v11964_v7 = vld [vmem:[#allocation2 + $0x32] sm:$0xff] }
  0xc6   : > { %9404 = vmatprep.mubr.msk.f32.mxu0 %vm365_vm2, %v11794_v8  ;;  %v11962_v8 = vld [vmem:[#allocation2 + $0x22] sm:$0xff] }
  0xc9   : > { %9405 = vmatmul.mubr.msk.f32.gmra.mrb[26].mxu0 %vm365_vm2, %v11800_v9  ;;  %v1927_v9 = vld [vmem:[#allocation6 + $0x88] sm:$0xff] }
  0xca   : > { %9407 = vmatprep.mubr.msk.f32.mxu0 %vm365_vm2, %v11802_v17  ;;  %v1926_v17 = vld [vmem:[#allocation6 + $0x80] sm:$0xff] }
  0xcb   : > { %v11966_v6 = vpack.c.bf16 %v1927_v9, %v1926_v17  ;;  %v11989_v9 = vld [vmem:[#allocation2 + $0x6a] sm:$0xff]  ;;  %v11991_v17 = vld [vmem:[#allocation2 + $0x7a] sm:$0xff] }
  0xcc   : > { %14376 = vst [vmem:[#allocation57_spill] sm:$0xff] %v11989_v9  ;;  %14377 = vst [vmem:[#allocation58_spill] sm:$0xff] %v11991_v17 }
  0xcd   : > { %9408 = vmatmul.mubr.msk.f32.gmra.mrb[28].mxu0 %vm365_vm2, %v11808_v21 }
  0xce   : > { %9410 = vmatprep.mubr.msk.f32.mxu0 %vm365_vm2, %v11810_v28  ;;  %v11956_v28 = vld [vmem:[#allocation2 + $0x1a] sm:$0xff] }
  0xd1   : > { %9411 = vmatmul.mubr.msk.f32.gmra.mrb[30].mxu0 %vm365_vm2, %v11816_v29  ;;  %v1539_v29 = vld [vmem:[#allocation6 + $0x78] sm:$0xff] }
  0xd2   : > { %9421 = vmatprep.mubr.msk.f32.mxu0 %vm365_vm2, %v398_v31  ;;  %v11836_v31 = vld [vmem:[#allocation2 + $0x38] sm:$0xff]  ;;  %v10393_v21 = vpack.c.bf16 %v1539_v29, %v1538_v15 }
  0xd3   : > { %v11981_v15 = vld [vmem:[#allocation2 + $0x52] sm:$0xff] }
  0xd4   : > { %14374 = vst [vmem:[#allocation55_spill] sm:$0xff] %v11981_v15  ;;  %v11999_v29 = vld [vmem:[#allocation2 + $0x92] sm:$0xff] }
  0xd5   : > { %9422 = vmatmul.mubr.msk.f32.vlgmr.msra.gmra.mrb[0].mxu0 %vm365_vm2, %v399_v50  ;;  %v11838_v50 = vld [vmem:[#allocation2 + $0x48] sm:$0xff]  ;;  %14379 = vst [vmem:[#allocation60_spill] sm:$0xff] %v11999_v29 }
  0xd6   : > { %10384 = vmatpush3.bf16.msra.mxu0 %v10381_v54  ;;  %9424 = vmatprep.mubr.msk.f32.mxu0 %vm365_vm2, %v11821_v49  ;;  %v11855_v54 = vld [vmem:[#allocation2 + $0x78] sm:$0xff] }
  0xd7   : > { %10386 = vmatprep.subr.bf16.mxu0 %v10385_v47 }
  0xd9   : > { %9425 = vmatmul.mubr.msk.f32.gmra.mrb[2].mxu0 %vm365_vm2, %v11826_v44 }
  0xda   : > { %9427 = vmatprep.mubr.msk.f32.mxu0 %vm365_vm2, %v11828_v42  ;;  %10388 = vmatpush3.bf16.msra.mxu0 %v10385_v47  ;;  %v11853_v47 = vld [vmem:[#allocation2 + $0x68] sm:$0xff] }
  0xdb   : > { %10390 = vmatprep.subr.bf16.mxu0 %v11830_v41 }
  0xdd   : > { %9428 = vmatmul.mubr.msk.f32.gmra.mrb[4].mxu0 %vm365_vm2, %v11836_v31 }
  0xde   : > { %9430 = vmatprep.mubr.msk.f32.mxu0 %vm365_vm2, %v11838_v50 }
  0xe1   : > { %9431 = vmatmul.mubr.msk.f32.gmra.mrb[6].mxu0 %vm365_vm2, %v11845_v45 }
  0xe2   : > { %9433 = vmatprep.mubr.msk.f32.mxu0 %vm365_vm2, %v11847_v46 }
  0xe5   : > { %9434 = vmatmul.mubr.msk.f32.gmra.mrb[8].mxu0 %vm365_vm2, %v11853_v47 }
  0xe6   : > { %9436 = vmatprep.mubr.msk.f32.mxu0 %vm365_vm2, %v11855_v54 }
  0xe9   : > { %9437 = vmatmul.mubr.msk.f32.gmra.mrb[10].mxu0 %vm365_vm2, %v11861_v52 }
  0xea   : > { %9439 = vmatprep.mubr.msk.f32.mxu0 %vm365_vm2, %v11863_v53 }
  0xed   : > { %9440 = vmatmul.mubr.msk.f32.gmra.mrb[12].mxu0 %vm365_vm2, %v11869_v37 }
  0xee   : > { %9442 = vmatprep.mubr.msk.f32.mxu0 %vm365_vm2, %v11871_v36 }
  0xf1   : > { %9443 = vmatmul.mubr.msk.f32.gmra.mrb[14].mxu0 %vm365_vm2, %v11877_v34 }
  0xf2   : > { %9445 = vmatprep.mubr.msk.f32.mxu0 %vm365_vm2, %v11879_v33 }
  0xf5   : > { %9446 = vmatmul.mubr.msk.f32.gmra.mrb[16].mxu0 %vm365_vm2, %v11885_v32 }
  0xf6   : > { %9448 = vmatprep.mubr.msk.f32.mxu0 %vm365_vm2, %v11887_v30 }
  0xf9   : > { %9449 = vmatmul.mubr.msk.f32.gmra.mrb[18].mxu0 %vm365_vm2, %v11893_v27 }
  0xfa   : > { %9451 = vmatprep.mubr.msk.f32.mxu0 %vm365_vm2, %v11895_v26 }
  0xfd   : > { %9452 = vmatmul.mubr.msk.f32.gmra.mrb[20].mxu0 %vm365_vm2, %v11901_v25 }
  0xfe   : > { %9454 = vmatprep.mubr.msk.f32.mxu0 %vm365_vm2, %v11903_v24 }
 0x101   : > { %9455 = vmatmul.mubr.msk.f32.gmra.mrb[22].mxu0 %vm365_vm2, %v11909_v23 }
 0x102   : > { %9457 = vmatprep.mubr.msk.f32.mxu0 %vm365_vm2, %v11911_v22 }
 0x105   : > { %9458 = vmatmul.mubr.msk.f32.gmra.mrb[24].mxu0 %vm365_vm2, %v11917_v20 }
 0x106   : > { %9460 = vmatprep.mubr.msk.f32.mxu0 %vm365_vm2, %v11919_v19 }
 0x109   : > { %9461 = vmatmul.mubr.msk.f32.gmra.mrb[26].mxu0 %vm365_vm2, %v11925_v18 }
 0x10a   : > { %9463 = vmatprep.mubr.msk.f32.mxu0 %vm365_vm2, %v11927_v16 }
 0x10d   : > { %9464 = vmatmul.mubr.msk.f32.gmra.mrb[28].mxu0 %vm365_vm2, %v11943_v13 }
 0x10e   : > { %9466 = vmatprep.mubr.msk.f32.mxu0 %vm365_vm2, %v11945_v12 }
 0x111   : > { %9467 = vmatmul.mubr.msk.f32.gmra.mrb[30].mxu0 %vm365_vm2, %v11951_v11 }
 0x112   : > { %9477 = vmatprep.mubr.msk.f32.mxu0 %vm365_vm2, %v1113_v10  ;;  %v11972_v10 = vld [vmem:[#allocation2 + $0x3a] sm:$0xff] }
 0x113   : > { %14372 = vst [vmem:[#allocation53_spill] sm:$0xff] %v11972_v10 }
 0x115   : > { %9478 = vmatmul.mubr.msk.f32.vlgmr.msra.gmra.mrb[0].mxu0 %vm365_vm2, %v1114_v14  ;;  %v11974_v14 = vld [vmem:[#allocation2 + $0x4a] sm:$0xff] }
 0x116   : > { %10392 = vmatpush3.bf16.msra.mxu0 %v11830_v41  ;;  %9480 = vmatprep.mubr.msk.f32.mxu0 %vm365_vm2, %v11956_v28  ;;  %14373 = vst [vmem:[#allocation54_spill] sm:$0xff] %v11974_v14  ;;  %v11983_v41 = vld [vmem:[#allocation2 + $0x62] sm:$0xff] }
 0x117   : > { %10394 = vmatprep.subr.bf16.mxu0 %v10393_v21  ;;  %14375 = vst [vmem:[#allocation56_spill] sm:$0xff] %v11983_v41 }
 0x119   : > { %9481 = vmatmul.mubr.msk.f32.gmra.mrb[2].mxu0 %vm365_vm2, %v11962_v8 }
 0x11a   : > { %9483 = vmatprep.mubr.msk.f32.mxu0 %vm365_vm2, %v11964_v7  ;;  %10396 = vmatpush3.bf16.msra.mxu0 %v10393_v21  ;;  %v11997_v21 = vld [vmem:[#allocation2 + $0x82] sm:$0xff] }
 0x11b   : > { %10398 = vmatprep.subr.bf16.mxu0 %v11966_v6  ;;  %14378 = vst [vmem:[#allocation59_spill] sm:$0xff] %v11997_v21 }
 0x11d   : > { %9484 = vmatmul.mubr.msk.f32.gmra.mrb[4].mxu0 %vm365_vm2, %v11972_v10  ;;  %v2317_v10 = vld [vmem:[#allocation6 + $0xa8] sm:$0xff] }
 0x11e   : > { %9486 = vmatprep.mubr.msk.f32.mxu0 %vm365_vm2, %v11974_v14  ;;  %v1929_v14 = vld [vmem:[#allocation6 + $0x98] sm:$0xff] }
 0x121   : > { %9487 = vmatmul.mubr.msk.f32.gmra.mrb[6].mxu0 %vm365_vm2, %v11981_v15  ;;  %v12007_v15 = vld [vmem:[#allocation2 + $0xaa] sm:$0xff] }
 0x122   : > { %9489 = vmatprep.mubr.msk.f32.mxu0 %vm365_vm2, %v11983_v41  ;;  %v12005_v41 = vld [vmem:[#allocation2 + $0x9a] sm:$0xff]  ;;  %14381 = vst [vmem:[#allocation62_spill] sm:$0xff] %v12007_v15 }
 0x123   : > { %14380 = vst [vmem:[#allocation61_spill] sm:$0xff] %v12005_v41 }
 0x125   : > { %9490 = vmatmul.mubr.msk.f32.gmra.mrb[8].mxu0 %vm365_vm2, %v11989_v9  ;;  %v12015_v9 = vld [vmem:[#allocation2 + $0xc2] sm:$0xff] }
 0x126   : > { %9492 = vmatprep.mubr.msk.f32.mxu0 %vm365_vm2, %v11991_v17  ;;  %v12013_v17 = vld [vmem:[#allocation2 + $0xb2] sm:$0xff]  ;;  %14383 = vst [vmem:[#allocation64_spill] sm:$0xff] %v12015_v9 }
 0x127   : > { %14382 = vst [vmem:[#allocation63_spill] sm:$0xff] %v12013_v17 }
 0x129   : > { %9493 = vmatmul.mubr.msk.f32.gmra.mrb[10].mxu0 %vm365_vm2, %v11997_v21  ;;  %v12023_v21 = vld [vmem:[#allocation2 + $0xda] sm:$0xff] }
 0x12a   : > { %9495 = vmatprep.mubr.msk.f32.mxu0 %vm365_vm2, %v11999_v29  ;;  %v12021_v29 = vld [vmem:[#allocation2 + $0xca] sm:$0xff]  ;;  %14385 = vst [vmem:[#allocation66_spill] sm:$0xff] %v12023_v21 }
 0x12b   : > { %14384 = vst [vmem:[#allocation65_spill] sm:$0xff] %v12021_v29 }
 0x12d   : > { %9496 = vmatmul.mubr.msk.f32.gmra.mrb[12].mxu0 %vm365_vm2, %v12005_v41  ;;  %v12031_v41 = vld [vmem:[#allocation2 + $0xf2] sm:$0xff] }
 0x12e   : > { %9498 = vmatprep.mubr.msk.f32.mxu0 %vm365_vm2, %v12007_v15  ;;  %v12029_v15 = vld [vmem:[#allocation2 + $0xe2] sm:$0xff]  ;;  %14387 = vst [vmem:[#allocation68_spill] sm:$0xff] %v12031_v41 }
 0x12f   : > { %14386 = vst [vmem:[#allocation67_spill] sm:$0xff] %v12029_v15 }
 0x131   : > { %9499 = vmatmul.mubr.msk.f32.gmra.mrb[14].mxu0 %vm365_vm2, %v12013_v17  ;;  %v12039_v17 = vld [vmem:[#allocation2 + $0x10a] sm:$0xff] }
 0x132   : > { %9501 = vmatprep.mubr.msk.f32.mxu0 %vm365_vm2, %v12015_v9  ;;  %v12037_v9 = vld [vmem:[#allocation2 + $0xfa] sm:$0xff]  ;;  %14389 = vst [vmem:[#allocation70_spill] sm:$0xff] %v12039_v17 }
 0x133   : > { %14388 = vst [vmem:[#allocation69_spill] sm:$0xff] %v12037_v9 }
 0x135   : > { %9502 = vmatmul.mubr.msk.f32.gmra.mrb[16].mxu0 %vm365_vm2, %v12021_v29  ;;  %v12047_v29 = vld [vmem:[#allocation2 + $0x122] sm:$0xff] }
 0x136   : > { %9504 = vmatprep.mubr.msk.f32.mxu0 %vm365_vm2, %v12023_v21  ;;  %v12045_v21 = vld [vmem:[#allocation2 + $0x112] sm:$0xff]  ;;  %14391 = vst [vmem:[#allocation72_spill] sm:$0xff] %v12047_v29 }
 0x137   : > { %14390 = vst [vmem:[#allocation71_spill] sm:$0xff] %v12045_v21 }
 0x139   : > { %9505 = vmatmul.mubr.msk.f32.gmra.mrb[18].mxu0 %vm365_vm2, %v12029_v15  ;;  %v12055_v15 = vld [vmem:[#allocation2 + $0x13a] sm:$0xff] }
 0x13a   : > { %9507 = vmatprep.mubr.msk.f32.mxu0 %vm365_vm2, %v12031_v41  ;;  %v12053_v41 = vld [vmem:[#allocation2 + $0x12a] sm:$0xff]  ;;  %14393 = vst [vmem:[#allocation74_spill] sm:$0xff] %v12055_v15 }
 0x13b   : > { %14392 = vst [vmem:[#allocation73_spill] sm:$0xff] %v12053_v41 }
 0x13d   : > { %9508 = vmatmul.mubr.msk.f32.gmra.mrb[20].mxu0 %vm365_vm2, %v12037_v9  ;;  %v12063_v9 = vld [vmem:[#allocation2 + $0x152] sm:$0xff] }
 0x13e   : > { %9510 = vmatprep.mubr.msk.f32.mxu0 %vm365_vm2, %v12039_v17  ;;  %v12061_v17 = vld [vmem:[#allocation2 + $0x142] sm:$0xff]  ;;  %14395 = vst [vmem:[#allocation76_spill] sm:$0xff] %v12063_v9 }
 0x13f   : > { %14394 = vst [vmem:[#allocation75_spill] sm:$0xff] %v12061_v17 }
 0x141   : > { %9511 = vmatmul.mubr.msk.f32.gmra.mrb[22].mxu0 %vm365_vm2, %v12045_v21  ;;  %v12071_v21 = vld [vmem:[#allocation2 + $0x16a] sm:$0xff] }
 0x142   : > { %9513 = vmatprep.mubr.msk.f32.mxu0 %vm365_vm2, %v12047_v29  ;;  %v12069_v29 = vld [vmem:[#allocation2 + $0x15a] sm:$0xff]  ;;  %14397 = vst [vmem:[#allocation78_spill] sm:$0xff] %v12071_v21 }
 0x143   : > { %14396 = vst [vmem:[#allocation77_spill] sm:$0xff] %v12069_v29 }
 0x145   : > { %9514 = vmatmul.mubr.msk.f32.gmra.mrb[24].mxu0 %vm365_vm2, %v12053_v41  ;;  %v1928_v41 = vld [vmem:[#allocation6 + $0x90] sm:$0xff] }
 0x146   : > { %9516 = vmatprep.mubr.msk.f32.mxu0 %vm365_vm2, %v12055_v15  ;;  %v12077_v15 = vld [vmem:[#allocation2 + $0x172] sm:$0xff] }
 0x149   : > { %9517 = vmatmul.mubr.msk.f32.gmra.mrb[26].mxu0 %vm365_vm2, %v12061_v17  ;;  %v2316_v17 = vld [vmem:[#allocation6 + $0xa0] sm:$0xff] }
 0x14a   : > { %9519 = vmatprep.mubr.msk.f32.mxu0 %vm365_vm2, %v12063_v9  ;;  %v10401_v9 = vpack.c.bf16 %v1929_v14, %v1928_v41  ;;  %v2707_v41 = vld [vmem:[#allocation6 + $0xc0] sm:$0xff] }
 0x14d   : > { %9520 = vmatmul.mubr.msk.f32.gmra.mrb[28].mxu0 %vm365_vm2, %v12069_v29 }
 0x14e   : > { %9522 = vmatprep.mubr.msk.f32.mxu0 %vm365_vm2, %v12071_v21  ;;  %v10405_v21 = vpack.c.bf16 %v2317_v10, %v2316_v17  ;;  %v2319_v10 = vld [vmem:[#allocation6 + $0xb8] sm:$0xff] }
 0x151   : > { %9523 = vmatmul.mubr.msk.f32.gmra.mrb[30].mxu0 %vm365_vm2, %v12077_v15 }
 0x152   : > { %9533 = vmatprep.mubr.msk.f32.mxu0 %vm365_vm2, %v11821_v49  ;;  %v12146_v49 = vld [vmem:[#allocation2 + $0x188] sm:$0xff] }
 0x155   : > { %9534 = vmatmul.mubr.msk.f32.vlgmr.msra.gmra.mrb[0].mxu0 %vm365_vm2, %v11826_v44  ;;  %v12140_v44 = vld [vmem:[#allocation2 + $0x180] sm:$0xff] }
 0x156   : > { %10400 = vmatpush3.bf16.msra.mxu0 %v11966_v6  ;;  %9536 = vmatprep.mubr.msk.f32.mxu0 %vm365_vm2, %v11828_v42  ;;  %v2318_v6 = vld [vmem:[#allocation6 + $0xb0] sm:$0xff] }
 0x157   : > { %10402 = vmatprep.subr.bf16.mxu0 %v10401_v9  ;;  %v10409_v14 = vpack.c.bf16 %v2319_v10, %v2318_v6  ;;  %v14415_v6 = vld [vmem:[#allocation62_spill] sm:$0xff]  ;;  %v14416_v10 = vld [vmem:[#allocation63_spill] sm:$0xff] }
 0x159   : > { %9537 = vmatmul.mubr.msk.f32.gmra.mrb[2].mxu0 %vm365_vm2, %v11836_v31 }
 0x15a   : > { %9539 = vmatprep.mubr.msk.f32.mxu0 %vm365_vm2, %v11838_v50  ;;  %10404 = vmatpush3.bf16.msra.mxu0 %v10401_v9  ;;  %v2708_v9 = vld [vmem:[#allocation6 + $0xc8] sm:$0xff] }
 0x15b   : > { %10406 = vmatprep.subr.bf16.mxu0 %v10405_v21  ;;  %v10413_v17 = vpack.c.bf16 %v2708_v9, %v2707_v41  ;;  %v14418_v41 = vld [vmem:[#allocation65_spill] sm:$0xff]  ;;  %v14419_v9 = vld [vmem:[#allocation66_spill] sm:$0xff] }
 0x15d   : > { %9540 = vmatmul.mubr.msk.f32.gmra.mrb[4].mxu0 %vm365_vm2, %v11845_v45 }
 0x15e   : > { %9542 = vmatprep.mubr.msk.f32.mxu0 %vm365_vm2, %v11847_v46 }
 0x161   : > { %9543 = vmatmul.mubr.msk.f32.gmra.mrb[6].mxu0 %vm365_vm2, %v11853_v47 }
 0x162   : > { %9545 = vmatprep.mubr.msk.f32.mxu0 %vm365_vm2, %v11855_v54 }
 0x165   : > { %9546 = vmatmul.mubr.msk.f32.gmra.mrb[8].mxu0 %vm365_vm2, %v11861_v52 }
 0x166   : > { %9548 = vmatprep.mubr.msk.f32.mxu0 %vm365_vm2, %v11863_v53 }
 0x169   : > { %9549 = vmatmul.mubr.msk.f32.gmra.mrb[10].mxu0 %vm365_vm2, %v11869_v37 }
 0x16a   : > { %9551 = vmatprep.mubr.msk.f32.mxu0 %vm365_vm2, %v11871_v36 }
 0x16d   : > { %9552 = vmatmul.mubr.msk.f32.gmra.mrb[12].mxu0 %vm365_vm2, %v11877_v34 }
 0x16e   : > { %9554 = vmatprep.mubr.msk.f32.mxu0 %vm365_vm2, %v11879_v33 }
 0x171   : > { %9555 = vmatmul.mubr.msk.f32.gmra.mrb[14].mxu0 %vm365_vm2, %v11885_v32 }
 0x172   : > { %9557 = vmatprep.mubr.msk.f32.mxu0 %vm365_vm2, %v11887_v30 }
 0x175   : > { %9558 = vmatmul.mubr.msk.f32.gmra.mrb[16].mxu0 %vm365_vm2, %v11893_v27 }
 0x176   : > { %9560 = vmatprep.mubr.msk.f32.mxu0 %vm365_vm2, %v11895_v26 }
 0x179   : > { %9561 = vmatmul.mubr.msk.f32.gmra.mrb[18].mxu0 %vm365_vm2, %v11901_v25 }
 0x17a   : > { %9563 = vmatprep.mubr.msk.f32.mxu0 %vm365_vm2, %v11903_v24 }
 0x17d   : > { %9564 = vmatmul.mubr.msk.f32.gmra.mrb[20].mxu0 %vm365_vm2, %v11909_v23 }
 0x17e   : > { %9566 = vmatprep.mubr.msk.f32.mxu0 %vm365_vm2, %v11911_v22 }
 0x181   : > { %9567 = vmatmul.mubr.msk.f32.gmra.mrb[22].mxu0 %vm365_vm2, %v11917_v20 }
 0x182   : > { %9569 = vmatprep.mubr.msk.f32.mxu0 %vm365_vm2, %v11919_v19 }
 0x185   : > { %9570 = vmatmul.mubr.msk.f32.gmra.mrb[24].mxu0 %vm365_vm2, %v11925_v18 }
 0x186   : > { %9572 = vmatprep.mubr.msk.f32.mxu0 %vm365_vm2, %v11927_v16 }
 0x189   : > { %9573 = vmatmul.mubr.msk.f32.gmra.mrb[26].mxu0 %vm365_vm2, %v11943_v13 }
 0x18a   : > { %9575 = vmatprep.mubr.msk.f32.mxu0 %vm365_vm2, %v11945_v12 }
 0x18d   : > { %9576 = vmatmul.mubr.msk.f32.gmra.mrb[28].mxu0 %vm365_vm2, %v11951_v11 }
 0x18e   : > { %9578 = vmatprep.mubr.msk.f32.mxu0 %vm365_vm2, %v12140_v44 }
 0x191   : > { %9579 = vmatmul.mubr.msk.f32.gmra.mrb[30].mxu0 %vm365_vm2, %v12146_v49 }
 0x192   : > { %9589 = vmatprep.mubr.msk.f32.mxu0 %vm365_vm2, %v11643_v35  ;;  %v14398_v35 = vld [vmem:[#allocation43_spill] sm:$0xff] }
 0x195   : > { %9590 = vmatmul.mubr.msk.f32.vlgmr.msra.gmra.mrb[0].mxu0 %vm365_vm2, %v11664_v38  ;;  %v14399_v38 = vld [vmem:[#allocation44_spill] sm:$0xff] }
 0x196   : > { %10408 = vmatpush3.bf16.msra.mxu0 %v10405_v21  ;;  %9592 = vmatprep.mubr.msk.f32.mxu0 %vm365_vm2, %v11666_v39  ;;  %v14400_v39 = vld [vmem:[#allocation45_spill] sm:$0xff] }
 0x197   : > { %10410 = vmatprep.subr.bf16.mxu0 %v10409_v14  ;;  %v14414_v21 = vld [vmem:[#allocation61_spill] sm:$0xff] }
 0x199   : > { %9593 = vmatmul.mubr.msk.f32.gmra.mrb[2].mxu0 %vm365_vm2, %v11672_v40  ;;  %v14401_v40 = vld [vmem:[#allocation46_spill] sm:$0xff] }
 0x19a   : > { %9595 = vmatprep.mubr.msk.f32.mxu0 %vm365_vm2, %v11680_v43  ;;  %10412 = vmatpush3.bf16.msra.mxu0 %v10409_v14  ;;  %v14402_v43 = vld [vmem:[#allocation47_spill] sm:$0xff]  ;;  %v14417_v14 = vld [vmem:[#allocation64_spill] sm:$0xff] }
 0x19b   : > { %10414 = vmatprep.subr.bf16.mxu0 %v10413_v17 }
 0x19d   : > { %9596 = vmatmul.mubr.msk.f32.gmra.mrb[4].mxu0 %vm365_vm2, %v11704_v48  ;;  %v14403_v48 = vld [vmem:[#allocation48_spill] sm:$0xff] }
 0x19e   : > { %9598 = vmatprep.mubr.msk.f32.mxu0 %vm365_vm2, %v11718_v51  ;;  %v14404_v51 = vld [vmem:[#allocation49_spill] sm:$0xff] }
 0x1a1   : > { %9599 = vmatmul.mubr.msk.f32.gmra.mrb[6].mxu0 %vm365_vm2, %v11728_v55  ;;  %v12208_v55 = vld [vmem:[#allocation2 + $0x181] sm:$0xff] }
 0x1a2   : > { %9601 = vmatprep.mubr.msk.f32.mxu0 %vm365_vm2, %v11730_v56  ;;  %v14405_v56 = vld [vmem:[#allocation50_spill] sm:$0xff] }
 0x1a5   : > { %9602 = vmatmul.mubr.msk.f32.gmra.mrb[8].mxu0 %vm365_vm2, %v11736_v57  ;;  %v12214_v57 = vld [vmem:[#allocation2 + $0x189] sm:$0xff] }
 0x1a6   : > { %9604 = vmatprep.mubr.msk.f32.mxu0 %vm365_vm2, %v11738_v58  ;;  %v2709_v58 = vld [vmem:[#allocation6 + $0xd0] sm:$0xff] }
 0x1a9   : > { %9605 = vmatmul.mubr.msk.f32.gmra.mrb[10].mxu0 %vm365_vm2, %v11744_v59  ;;  %v2710_v59 = vld [vmem:[#allocation6 + $0xd8] sm:$0xff] }
 0x1aa   : > { %9607 = vmatprep.mubr.msk.f32.mxu0 %vm365_vm2, %v11746_v60  ;;  %v10417_v60 = vpack.c.bf16 %v2710_v59, %v2709_v58  ;;  %v14429_v58 = vld [vmem:[#allocation76_spill] sm:$0xff]  ;;  %v14430_v59 = vld [vmem:[#allocation78_spill] sm:$0xff] }
 0x1ad   : > { %9608 = vmatmul.mubr.msk.f32.gmra.mrb[12].mxu0 %vm365_vm2, %v11752_v61  ;;  %v3097_v61 = vld [vmem:[#allocation6 + $0xe0] sm:$0xff] }
 0x1ae   : > { %9610 = vmatprep.mubr.msk.f32.mxu0 %vm365_vm2, %v11754_v62  ;;  %v3098_v62 = vld [vmem:[#allocation6 + $0xe8] sm:$0xff] }
 0x1b1   : > { %9611 = vmatmul.mubr.msk.f32.gmra.mrb[14].mxu0 %vm365_vm2, %v11760_v63  ;;  %v10421_v63 = vpack.c.bf16 %v3098_v62, %v3097_v61  ;;  %v12282_v61 = vld [vmem:[#allocation2 + $0x18a] sm:$0xff]  ;;  %v3099_v62 = vld [vmem:[#allocation6 + $0xf0] sm:$0xff] }
 0x1b2   : > { %9613 = vmatprep.mubr.msk.f32.mxu0 %vm365_vm2, %v11762_v0  ;;  %v14406_v0 = vld [vmem:[#allocation53_spill] sm:$0xff] }
 0x1b5   : > { %9614 = vmatmul.mubr.msk.f32.gmra.mrb[16].mxu0 %vm365_vm2, %v11768_v1  ;;  %v14407_v1 = vld [vmem:[#allocation54_spill] sm:$0xff] }
 0x1b6   : > { %9616 = vmatprep.mubr.msk.f32.mxu0 %vm365_vm2, %v11770_v2  ;;  %v14408_v2 = vld [vmem:[#allocation55_spill] sm:$0xff] }
 0x1b9   : > { %9617 = vmatmul.mubr.msk.f32.gmra.mrb[18].mxu0 %vm365_vm2, %v11776_v3  ;;  %v14409_v3 = vld [vmem:[#allocation56_spill] sm:$0xff] }
 0x1ba   : > { %9619 = vmatprep.mubr.msk.f32.mxu0 %vm365_vm2, %v11778_v4  ;;  %v14410_v4 = vld [vmem:[#allocation57_spill] sm:$0xff] }
 0x1bd   : > { %9620 = vmatmul.mubr.msk.f32.gmra.mrb[20].mxu0 %vm365_vm2, %v11784_v5  ;;  %v14411_v5 = vld [vmem:[#allocation58_spill] sm:$0xff] }
 0x1be   : > { %9622 = vmatprep.mubr.msk.f32.mxu0 %vm365_vm2, %v14398_v35  ;;  %v14421_v35 = vld [vmem:[#allocation68_spill] sm:$0xff] }
 0x1c1   : > { %9623 = vmatmul.mubr.msk.f32.gmra.mrb[22].mxu0 %vm365_vm2, %v14399_v38  ;;  %v14422_v38 = vld [vmem:[#allocation69_spill] sm:$0xff] }
 0x1c2   : > { %9625 = vmatprep.mubr.msk.f32.mxu0 %vm365_vm2, %v14400_v39  ;;  %v14423_v39 = vld [vmem:[#allocation70_spill] sm:$0xff] }
 0x1c5   : > { %9626 = vmatmul.mubr.msk.f32.gmra.mrb[24].mxu0 %vm365_vm2, %v14401_v40  ;;  %v14424_v40 = vld [vmem:[#allocation71_spill] sm:$0xff] }
 0x1c6   : > { %9628 = vmatprep.mubr.msk.f32.mxu0 %vm365_vm2, %v14402_v43  ;;  %v14425_v43 = vld [vmem:[#allocation72_spill] sm:$0xff] }
 0x1c9   : > { %9629 = vmatmul.mubr.msk.f32.gmra.mrb[26].mxu0 %vm365_vm2, %v14403_v48  ;;  %v14426_v48 = vld [vmem:[#allocation73_spill] sm:$0xff] }
 0x1ca   : > { %9631 = vmatprep.mubr.msk.f32.mxu0 %vm365_vm2, %v14404_v51  ;;  %v14427_v51 = vld [vmem:[#allocation74_spill] sm:$0xff] }
 0x1cd   : > { %9632 = vmatmul.mubr.msk.f32.gmra.mrb[28].mxu0 %vm365_vm2, %v14405_v56  ;;  %v14428_v56 = vld [vmem:[#allocation75_spill] sm:$0xff] }
 0x1ce   : > { %9634 = vmatprep.mubr.msk.f32.mxu0 %vm365_vm2, %v12208_v55 }
 0x1d1   : > { %9635 = vmatmul.mubr.msk.f32.gmra.mrb[30].mxu0 %vm365_vm2, %v12214_v57 }
 0x1d2   : > { %9645 = vmatprep.mubr.msk.f32.mxu0 %vm365_vm2, %v11956_v28  ;;  %v14413_v28 = vld [vmem:[#allocation60_spill] sm:$0xff] }
 0x1d5   : > { %9646 = vmatmul.mubr.msk.f32.vlgmr.msra.gmra.mrb[0].mxu0 %vm365_vm2, %v11962_v8  ;;  %v14412_v8 = vld [vmem:[#allocation59_spill] sm:$0xff] }
 0x1d6   : > { %10416 = vmatpush3.bf16.msra.mxu0 %v10413_v17  ;;  %9648 = vmatprep.mubr.msk.f32.mxu0 %vm365_vm2, %v11964_v7  ;;  %v14420_v17 = vld [vmem:[#allocation67_spill] sm:$0xff] }
 0x1d7   : > { %10418 = vmatprep.subr.bf16.mxu0 %v10417_v60 }
 0x1d9   : > { %9649 = vmatmul.mubr.msk.f32.gmra.mrb[2].mxu0 %vm365_vm2, %v14406_v0 }
 0x1da   : > { %9651 = vmatprep.mubr.msk.f32.mxu0 %vm365_vm2, %v14407_v1  ;;  %10420 = vmatpush3.bf16.msra.mxu0 %v10417_v60  ;;  %v12276_v60 = vld [vmem:[#allocation2 + $0x182] sm:$0xff] }
 0x1db   : > { %10422 = vmatprep.subr.bf16.mxu0 %v10421_v63  ;;  %14431 = vst [vmem:[#allocation43_spill] sm:$0xff] %v12276_v60 }
 0x1dd   : > { %9652 = vmatmul.mubr.msk.f32.gmra.mrb[4].mxu0 %vm365_vm2, %v14408_v2 }
 0x1de   : > { %9654 = vmatprep.mubr.msk.f32.mxu0 %vm365_vm2, %v14409_v3 }
 0x1e1   : > { %9655 = vmatmul.mubr.msk.f32.gmra.mrb[6].mxu0 %vm365_vm2, %v14410_v4 }
 0x1e2   : > { %9657 = vmatprep.mubr.msk.f32.mxu0 %vm365_vm2, %v14411_v5 }
 0x1e5   : > { %9658 = vmatmul.mubr.msk.f32.gmra.mrb[8].mxu0 %vm365_vm2, %v14412_v8 }
 0x1e6   : > { %9660 = vmatprep.mubr.msk.f32.mxu0 %vm365_vm2, %v14413_v28 }
 0x1e9   : > { %9661 = vmatmul.mubr.msk.f32.gmra.mrb[10].mxu0 %vm365_vm2, %v14414_v21 }
 0x1ea   : > { %9663 = vmatprep.mubr.msk.f32.mxu0 %vm365_vm2, %v14415_v6 }
 0x1ed   : > { %9664 = vmatmul.mubr.msk.f32.gmra.mrb[12].mxu0 %vm365_vm2, %v14416_v10 }
 0x1ee   : > { %9666 = vmatprep.mubr.msk.f32.mxu0 %vm365_vm2, %v14417_v14 }
 0x1f1   : > { %9667 = vmatmul.mubr.msk.f32.gmra.mrb[14].mxu0 %vm365_vm2, %v14418_v41 }
 0x1f2   : > { %9669 = vmatprep.mubr.msk.f32.mxu0 %vm365_vm2, %v14419_v9 }
 0x1f5   : > { %9670 = vmatmul.mubr.msk.f32.gmra.mrb[16].mxu0 %vm365_vm2, %v14420_v17 }
 0x1f6   : > { %9672 = vmatprep.mubr.msk.f32.mxu0 %vm365_vm2, %v14421_v35 }
 0x1f9   : > { %9673 = vmatmul.mubr.msk.f32.gmra.mrb[18].mxu0 %vm365_vm2, %v14422_v38 }
 0x1fa   : > { %9675 = vmatprep.mubr.msk.f32.mxu0 %vm365_vm2, %v14423_v39 }
 0x1fd   : > { %9676 = vmatmul.mubr.msk.f32.gmra.mrb[20].mxu0 %vm365_vm2, %v14424_v40 }
 0x1fe   : > { %9678 = vmatprep.mubr.msk.f32.mxu0 %vm365_vm2, %v14425_v43 }
 0x201   : > { %9679 = vmatmul.mubr.msk.f32.gmra.mrb[22].mxu0 %vm365_vm2, %v14426_v48 }
 0x202   : > { %9681 = vmatprep.mubr.msk.f32.mxu0 %vm365_vm2, %v14427_v51 }
 0x205   : > { %9682 = vmatmul.mubr.msk.f32.gmra.mrb[24].mxu0 %vm365_vm2, %v14428_v56  ;;  %v3100_v56 = vld [vmem:[#allocation6 + $0xf8] sm:$0xff] }
 0x206   : > { %9684 = vmatprep.mubr.msk.f32.mxu0 %vm365_vm2, %v14429_v58  ;;  %v3488_v58 = vld [vmem:[#allocation6 + $0x108] sm:$0xff] }
 0x209   : > { %9685 = vmatmul.mubr.msk.f32.gmra.mrb[26].mxu0 %vm365_vm2, %v12069_v29  ;;  %v10425_v29 = vpack.c.bf16 %v3100_v56, %v3099_v62  ;;  %v3091_v56 = vld [vmem:[#allocation2 + $0x171] sm:$0xff] }
 0x20a   : > { %9687 = vmatprep.mubr.msk.f32.mxu0 %vm365_vm2, %v14430_v59  ;;  %v3487_v59 = vld [vmem:[#allocation6 + $0x100] sm:$0xff] }
 0x20d   : > { %9688 = vmatmul.mubr.msk.f32.gmra.mrb[28].mxu0 %vm365_vm2, %v12077_v15 }
 0x20e   : > { %9690 = vmatprep.mubr.msk.f32.mxu0 %vm365_vm2, %v12276_v60  ;;  %v10429_v60 = vpack.c.bf16 %v3488_v58, %v3487_v59  ;;  %v3094_v58 = vld [vmem:[#allocation2 + $0x199] sm:$0xff]  ;;  %v3095_v59 = vld [vmem:[#allocation2 + $0x1a1] sm:$0xff] }
 0x211   : > { %9691 = vmatmul.mubr.msk.f32.gmra.mrb[30].mxu0 %vm365_vm2, %v12282_v61 }
 0x212   : > { %9701 = vmatprep.mubr.msk.f32.mxu0 %vm365_vm2, %v11828_v42  ;;  %v3078_v42 = vld [vmem:[#allocation2 + $0xd9] sm:$0xff] }
 0x215   : > { %9702 = vmatmul.mubr.msk.f32.vlgmr.msra.gmra.mrb[0].mxu0 %vm365_vm2, %v11836_v31  ;;  %v3079_v31 = vld [vmem:[#allocation2 + $0xe1] sm:$0xff] }
 0x216   : > { %10424 = vmatpush3.bf16.msra.mxu0 %v10421_v63  ;;  %9704 = vmatprep.mubr.msk.f32.mxu0 %vm365_vm2, %v11838_v50  ;;  %v3080_v50 = vld [vmem:[#allocation2 + $0xf1] sm:$0xff]  ;;  %v3090_v63 = vld [vmem:[#allocation2 + $0x169] sm:$0xff] }
 0x217   : > { %10426 = vmatprep.subr.bf16.mxu0 %v10425_v29 }
 0x219   : > { %9705 = vmatmul.mubr.msk.f32.gmra.mrb[2].mxu0 %vm365_vm2, %v11845_v45  ;;  %v3081_v45 = vld [vmem:[#allocation2 + $0xf9] sm:$0xff] }
 0x21a   : > { %9707 = vmatprep.mubr.msk.f32.mxu0 %vm365_vm2, %v11847_v46  ;;  %10428 = vmatpush3.bf16.msra.mxu0 %v10425_v29  ;;  %v3082_v46 = vld [vmem:[#allocation2 + $0x109] sm:$0xff]  ;;  %v3087_v29 = vld [vmem:[#allocation2 + $0x141] sm:$0xff] }
 0x21b   : > { %10430 = vmatprep.subr.bf16.mxu0 %v10429_v60 }
 0x21d   : > { %9708 = vmatmul.mubr.msk.f32.gmra.mrb[4].mxu0 %vm365_vm2, %v11853_v47  ;;  %v3083_v47 = vld [vmem:[#allocation2 + $0x111] sm:$0xff] }
 0x21e   : > { %9710 = vmatprep.mubr.msk.f32.mxu0 %vm365_vm2, %v11855_v54  ;;  %v3084_v54 = vld [vmem:[#allocation2 + $0x121] sm:$0xff] }
 0x221   : > { %9711 = vmatmul.mubr.msk.f32.gmra.mrb[6].mxu0 %vm365_vm2, %v11861_v52  ;;  %v3085_v52 = vld [vmem:[#allocation2 + $0x129] sm:$0xff] }
 0x222   : > { %9713 = vmatprep.mubr.msk.f32.mxu0 %vm365_vm2, %v11863_v53  ;;  %v3086_v53 = vld [vmem:[#allocation2 + $0x139] sm:$0xff] }
 0x225   : > { %9714 = vmatmul.mubr.msk.f32.gmra.mrb[8].mxu0 %vm365_vm2, %v11869_v37  ;;  %v3077_v37 = vld [vmem:[#allocation2 + $0xc9] sm:$0xff] }
 0x226   : > { %9716 = vmatprep.mubr.msk.f32.mxu0 %vm365_vm2, %v11871_v36  ;;  %v3076_v36 = vld [vmem:[#allocation2 + $0xc1] sm:$0xff] }
 0x229   : > { %9717 = vmatmul.mubr.msk.f32.gmra.mrb[10].mxu0 %vm365_vm2, %v11877_v34  ;;  %v3075_v34 = vld [vmem:[#allocation2 + $0xb1] sm:$0xff] }
 0x22a   : > { %9719 = vmatprep.mubr.msk.f32.mxu0 %vm365_vm2, %v11879_v33  ;;  %v3074_v33 = vld [vmem:[#allocation2 + $0xa9] sm:$0xff] }
 0x22d   : > { %9720 = vmatmul.mubr.msk.f32.gmra.mrb[12].mxu0 %vm365_vm2, %v11885_v32  ;;  %v3073_v32 = vld [vmem:[#allocation2 + $0x99] sm:$0xff] }
 0x22e   : > { %9722 = vmatprep.mubr.msk.f32.mxu0 %vm365_vm2, %v11887_v30  ;;  %v3072_v30 = vld [vmem:[#allocation2 + $0x91] sm:$0xff] }
 0x231   : > { %9723 = vmatmul.mubr.msk.f32.gmra.mrb[14].mxu0 %vm365_vm2, %v11893_v27  ;;  %v3071_v27 = vld [vmem:[#allocation2 + $0x81] sm:$0xff] }
 0x232   : > { %9725 = vmatprep.mubr.msk.f32.mxu0 %vm365_vm2, %v11895_v26  ;;  %v3070_v26 = vld [vmem:[#allocation2 + $0x79] sm:$0xff] }
 0x235   : > { %9726 = vmatmul.mubr.msk.f32.gmra.mrb[16].mxu0 %vm365_vm2, %v11901_v25  ;;  %v3069_v25 = vld [vmem:[#allocation2 + $0x69] sm:$0xff] }
 0x236   : > { %9728 = vmatprep.mubr.msk.f32.mxu0 %vm365_vm2, %v11903_v24  ;;  %v3068_v24 = vld [vmem:[#allocation2 + $0x61] sm:$0xff] }
 0x239   : > { %9729 = vmatmul.mubr.msk.f32.gmra.mrb[18].mxu0 %vm365_vm2, %v11909_v23  ;;  %v3067_v23 = vld [vmem:[#allocation2 + $0x51] sm:$0xff] }
 0x23a   : > { %9731 = vmatprep.mubr.msk.f32.mxu0 %vm365_vm2, %v11911_v22  ;;  %v3490_v22 = vld [vmem:[#allocation6 + $0x118] sm:$0xff] }
 0x23d   : > { %9732 = vmatmul.mubr.msk.f32.gmra.mrb[20].mxu0 %vm365_vm2, %v11917_v20  ;;  %v2704_v20 = vld [vmem:[#allocation2 + $0x198] sm:$0xff] }
 0x23e   : > { %9734 = vmatprep.mubr.msk.f32.mxu0 %vm365_vm2, %v11919_v19  ;;  %v3489_v19 = vld [vmem:[#allocation6 + $0x110] sm:$0xff] }
 0x241   : > { %9735 = vmatmul.mubr.msk.f32.gmra.mrb[22].mxu0 %vm365_vm2, %v11925_v18  ;;  %v2705_v18 = vld [vmem:[#allocation2 + $0x1a0] sm:$0xff] }
 0x242   : > { %9737 = vmatprep.mubr.msk.f32.mxu0 %vm365_vm2, %v11927_v16  ;;  %v3064_v16 = vld [vmem:[#allocation2 + $0x31] sm:$0xff] }
 0x245   : > { %9738 = vmatmul.mubr.msk.f32.gmra.mrb[24].mxu0 %vm365_vm2, %v11943_v13  ;;  %v3066_v13 = vld [vmem:[#allocation2 + $0x49] sm:$0xff] }
 0x246   : > { %9740 = vmatprep.mubr.msk.f32.mxu0 %vm365_vm2, %v11945_v12  ;;  %v3065_v12 = vld [vmem:[#allocation2 + $0x39] sm:$0xff] }
 0x249   : > { %9741 = vmatmul.mubr.msk.f32.gmra.mrb[26].mxu0 %vm365_vm2, %v11951_v11  ;;  %v10433_v11 = vpack.c.bf16 %v3490_v22, %v3489_v19 }
 0x24a   : > { %9743 = vmatprep.mubr.msk.f32.mxu0 %vm365_vm2, %v12140_v44  ;;  %v3088_v44 = vld [vmem:[#allocation2 + $0x151] sm:$0xff] }
 0x24d   : > { %9744 = vmatmul.mubr.msk.f32.gmra.mrb[28].mxu0 %vm365_vm2, %v12146_v49  ;;  %v3089_v49 = vld [vmem:[#allocation2 + $0x159] sm:$0xff] }
 0x24e   : > { %9746 = vmatprep.mubr.msk.f32.mxu0 %vm365_vm2, %v2704_v20 }
 0x251   : > { %9747 = vmatmul.mubr.msk.f32.gmra.mrb[30].mxu0 %vm365_vm2, %v2705_v18 }
 0x252   : > { %9757 = vmatprep.mubr.msk.f32.mxu0 %vm365_vm2, %v3064_v16 }
 0x255   : > { %9758 = vmatmul.mubr.msk.f32.vlgmr.msra.gmra.mrb[0].mxu0 %vm365_vm2, %v3065_v12 }
 0x256   : > { %10432 = vmatpush3.bf16.msra.mxu0 %v10429_v60  ;;  %9760 = vmatprep.mubr.msk.f32.mxu0 %vm365_vm2, %v3066_v13 }
 0x257   : > { %10434 = vmatprep.subr.bf16.mxu0 %v10433_v11 }
 0x259   : > { %9761 = vmatmul.mubr.msk.f32.gmra.mrb[2].mxu0 %vm365_vm2, %v3067_v23 }
 0x25a   : > { %9763 = vmatprep.mubr.msk.f32.mxu0 %vm365_vm2, %v3068_v24  ;;  %10436 = vmatpush3.bf16.msra.mxu0 %v10433_v11 }
 0x25d   : > { %9764 = vmatmul.mubr.msk.f32.gmra.mrb[4].mxu0 %vm365_vm2, %v3069_v25 }
 0x25e   : > { %9766 = vmatprep.mubr.msk.f32.mxu0 %vm365_vm2, %v3070_v26 }
 0x261   : > { %9767 = vmatmul.mubr.msk.f32.gmra.mrb[6].mxu0 %vm365_vm2, %v3071_v27 }
 0x262   : > { %9769 = vmatprep.mubr.msk.f32.mxu0 %vm365_vm2, %v3072_v30 }
 0x265   : > { %9770 = vmatmul.mubr.msk.f32.gmra.mrb[8].mxu0 %vm365_vm2, %v3073_v32 }
 0x266   : > { %9772 = vmatprep.mubr.msk.f32.mxu0 %vm365_vm2, %v3074_v33 }
 0x269   : > { %9773 = vmatmul.mubr.msk.f32.gmra.mrb[10].mxu0 %vm365_vm2, %v3075_v34 }
 0x26a   : > { %9775 = vmatprep.mubr.msk.f32.mxu0 %vm365_vm2, %v3076_v36 }
 0x26d   : > { %9776 = vmatmul.mubr.msk.f32.gmra.mrb[12].mxu0 %vm365_vm2, %v3077_v37 }
 0x26e   : > { %9778 = vmatprep.mubr.msk.f32.mxu0 %vm365_vm2, %v3078_v42 }
 0x271   : > { %9779 = vmatmul.mubr.msk.f32.gmra.mrb[14].mxu0 %vm365_vm2, %v3079_v31 }
 0x272   : > { %9781 = vmatprep.mubr.msk.f32.mxu0 %vm365_vm2, %v3080_v50 }
 0x275   : > { %9782 = vmatmul.mubr.msk.f32.gmra.mrb[16].mxu0 %vm365_vm2, %v3081_v45 }
 0x276   : > { %9784 = vmatprep.mubr.msk.f32.mxu0 %vm365_vm2, %v3082_v46 }
 0x279   : > { %9785 = vmatmul.mubr.msk.f32.gmra.mrb[18].mxu0 %vm365_vm2, %v3083_v47 }
 0x27a   : > { %9787 = vmatprep.mubr.msk.f32.mxu0 %vm365_vm2, %v3084_v54 }
 0x27d   : > { %9788 = vmatmul.mubr.msk.f32.gmra.mrb[20].mxu0 %vm365_vm2, %v3085_v52 }
 0x27e   : > { %9790 = vmatprep.mubr.msk.f32.mxu0 %vm365_vm2, %v3086_v53 }
 0x281   : > { %9791 = vmatmul.mubr.msk.f32.gmra.mrb[22].mxu0 %vm365_vm2, %v3087_v29 }
 0x282   : > { %9793 = vmatprep.mubr.msk.f32.mxu0 %vm365_vm2, %v3088_v44 }
 0x285   : > { %9794 = vmatmul.mubr.msk.f32.gmra.mrb[24].mxu0 %vm365_vm2, %v3089_v49 }
 0x286   : > { %9796 = vmatprep.mubr.msk.f32.mxu0 %vm365_vm2, %v3090_v63 }
 0x289   : > { %9797 = vmatmul.mubr.msk.f32.gmra.mrb[26].mxu0 %vm365_vm2, %v3091_v56 }
 0x28a   : > { %9799 = vmatprep.mubr.msk.f32.mxu0 %vm365_vm2, %v12208_v55  ;;  %v14433_v55 = vld [vmem:[#allocation76_spill] sm:$0xff] }
 0x28d   : > { %9800 = vmatmul.mubr.msk.f32.gmra.mrb[28].mxu0 %vm365_vm2, %v12214_v57  ;;  %v14434_v57 = vld [vmem:[#allocation77_spill] sm:$0xff] }
 0x28e   : > { %9802 = vmatprep.mubr.msk.f32.mxu0 %vm365_vm2, %v3094_v58 }
 0x291   : > { %9803 = vmatmul.mubr.msk.f32.gmra.mrb[30].mxu0 %vm365_vm2, %v3095_v59 }
 0x292   : > { %9813 = vmatprep.mubr.msk.f32.mxu0 %vm365_vm2, %v11964_v7  ;;  %v14432_v7 = vld [vmem:[#allocation75_spill] sm:$0xff] }
 0x295   : > { %9814 = vmatmul.mubr.msk.f32.vlgmr.msra.gmra.mrb[0].mxu0 %vm365_vm2, %v14406_v0  ;;  %v14435_v0 = vld [vmem:[#allocation78_spill] sm:$0xff] }
 0x296   : > { %9816 = vmatprep.mubr.msk.f32.mxu0 %vm365_vm2, %v14407_v1  ;;  %v14436_v1 = vld [vmem:[#allocation43_spill] sm:$0xff] }
 0x299   : > { %9817 = vmatmul.mubr.msk.f32.gmra.mrb[2].mxu0 %vm365_vm2, %v14408_v2  ;;  %v3484_v2 = vld [vmem:[#allocation2 + $0x19a] sm:$0xff] }
 0x29a   : > { %9819 = vmatprep.mubr.msk.f32.mxu0 %vm365_vm2, %v14409_v3  ;;  %v3485_v3 = vld [vmem:[#allocation2 + $0x1a2] sm:$0xff] }
 0x29d   : > { %9820 = vmatmul.mubr.msk.f32.gmra.mrb[4].mxu0 %vm365_vm2, %v14410_v4  ;;  %v12447_v4 = vld [vmem:[%s14151_s2] ss:$0 sm:$0xff] }
 0x29e   : > { %9822 = vmatprep.mubr.msk.f32.mxu0 %vm365_vm2, %v14411_v5 }
 0x2a1   : > { %9823 = vmatmul.mubr.msk.f32.gmra.mrb[6].mxu0 %vm365_vm2, %v14412_v8 }
 0x2a2   : > { %9825 = vmatprep.mubr.msk.f32.mxu0 %vm365_vm2, %v14413_v28 }
 0x2a5   : > { %9826 = vmatmul.mubr.msk.f32.gmra.mrb[8].mxu0 %vm365_vm2, %v14414_v21 }
 0x2a6   : > { %9828 = vmatprep.mubr.msk.f32.mxu0 %vm365_vm2, %v14415_v6 }
 0x2a9   : > { %9829 = vmatmul.mubr.msk.f32.gmra.mrb[10].mxu0 %vm365_vm2, %v14416_v10 }
 0x2aa   : > { %9831 = vmatprep.mubr.msk.f32.mxu0 %vm365_vm2, %v14417_v14 }
 0x2ad   : > { %9832 = vmatmul.mubr.msk.f32.gmra.mrb[12].mxu0 %vm365_vm2, %v14418_v41 }
 0x2ae   : > { %9834 = vmatprep.mubr.msk.f32.mxu0 %vm365_vm2, %v14419_v9 }
 0x2b1   : > { %9835 = vmatmul.mubr.msk.f32.gmra.mrb[14].mxu0 %vm365_vm2, %v14420_v17 }
 0x2b2   : > { %9837 = vmatprep.mubr.msk.f32.mxu0 %vm365_vm2, %v14421_v35 }
 0x2b5   : > { %9838 = vmatmul.mubr.msk.f32.gmra.mrb[16].mxu0 %vm365_vm2, %v14422_v38 }
 0x2b6   : > { %9840 = vmatprep.mubr.msk.f32.mxu0 %vm365_vm2, %v14423_v39 }
 0x2b9   : > { %9841 = vmatmul.mubr.msk.f32.gmra.mrb[18].mxu0 %vm365_vm2, %v14424_v40 }
 0x2ba   : > { %9843 = vmatprep.mubr.msk.f32.mxu0 %vm365_vm2, %v14425_v43 }
 0x2bd   : > { %9844 = vmatmul.mubr.msk.f32.gmra.mrb[20].mxu0 %vm365_vm2, %v14426_v48 }
 0x2be   : > { %9846 = vmatprep.mubr.msk.f32.mxu0 %vm365_vm2, %v14427_v51 }
 0x2c1   : > { %9847 = vmatmul.mubr.msk.f32.gmra.mrb[22].mxu0 %vm365_vm2, %v14432_v7 }
 0x2c2   : > { %9849 = vmatprep.mubr.msk.f32.mxu0 %vm365_vm2, %v14433_v55 }
 0x2c5   : > { %9850 = vmatmul.mubr.msk.f32.gmra.mrb[24].mxu0 %vm365_vm2, %v14434_v57 }
 0x2c6   : > { %9852 = vmatprep.mubr.msk.f32.mxu0 %vm365_vm2, %v14435_v0 }
 0x2c9   : > { %9853 = vmatmul.mubr.msk.f32.gmra.mrb[26].mxu0 %vm365_vm2, %v12077_v15 }
 0x2ca   : > { %9855 = vmatprep.mubr.msk.f32.mxu0 %vm365_vm2, %v14436_v1 }
 0x2cd   : > { %9856 = vmatmul.mubr.msk.f32.gmra.mrb[28].mxu0 %vm365_vm2, %v12282_v61 }
 0x2ce   : > { %9858 = vmatprep.mubr.msk.f32.mxu0 %vm365_vm2, %v3484_v2 }
 0x2d1   : > { %9859 = vmatmul.mubr.msk.f32.gmra.mrb[30].mxu0 %vm365_vm2, %v3485_v3 }
 0x368   : > { %v9815_v5 = vpop.f32.mrb[0].mxu0 }
 0x369   : > { %v12450_v15 = vadd.f32 %v9815_v5, %v12447_v4  ;;  %v3653_v8 = vpop.f32.mrb[1].mxu0 }
 0x36a   : > { %v12453_v28 = vadd.f32 %v12447_v4, %v3653_v8 }
 0x36b   : > { %v3884_v21 = vsel %vm365_vm2, %v12450_v15, 0.0 }
 0x36c   : > { %v3883_v6 = vsel %vm365_vm2, %v12453_v28, 0.0  ;;  %v9818_v10 = vpop.f32.mrb[2].mxu0 }
 0x36d   : > { %v3663_v14 = vpop.f32.mrb[3].mxu0  ;;  %v12460_v41 = vadd.f32 %v9818_v10, %v12447_v4  ;;  %v3885_v17 = vadd.f32 %v3884_v21, %v3883_v6 }
 0x36e   : > { %v12463_v9 = vadd.f32 %v12447_v4, %v3663_v14 }
 0x36f   : > { %v3888_v43 = vsel %vm365_vm2, %v12460_v41, 0.0 }
 0x370   : > { %v3886_v35 = vsel %vm365_vm2, %v12463_v9, 0.0  ;;  %v9821_v38 = vpop.f32.mrb[4].mxu0 }
 0x371   : > { %v3887_v39 = vadd.f32 %v3886_v35, %v3885_v17  ;;  %v3673_v40 = vpop.f32.mrb[5].mxu0  ;;  %v12470_v48 = vadd.f32 %v9821_v38, %v12447_v4 }
 0x372   : > { %v12473_v51 = vadd.f32 %v12447_v4, %v3673_v40 }
 0x373   : > { %v3889_v60 = vadd.f32 %v3888_v43, %v3887_v39  ;;  %v3892_v16 = vsel %vm365_vm2, %v12470_v48, 0.0 }
 0x374   : > { %v3890_v61 = vsel %vm365_vm2, %v12473_v51, 0.0  ;;  %v9824_v62 = vpop.f32.mrb[6].mxu0 }
 0x375   : > { %v3891_v20 = vadd.f32 %v3890_v61, %v3889_v60  ;;  %v3683_v18 = vpop.f32.mrb[7].mxu0  ;;  %v12480_v19 = vadd.f32 %v9824_v62, %v12447_v4 }
 0x376   : > { %v12483_v22 = vadd.f32 %v12447_v4, %v3683_v18 }
 0x377   : > { %v3893_v12 = vadd.f32 %v3892_v16, %v3891_v20  ;;  %v3896_v25 = vsel %vm365_vm2, %v12480_v19, 0.0 }
 0x378   : > { %v3894_v13 = vsel %vm365_vm2, %v12483_v22, 0.0  ;;  %v9827_v11 = vpop.f32.mrb[8].mxu0 }
 0x379   : > { %v3895_v23 = vadd.f32 %v3894_v13, %v3893_v12  ;;  %v3693_v24 = vpop.f32.mrb[9].mxu0  ;;  %v12490_v26 = vadd.f32 %v9827_v11, %v12447_v4 }
 0x37a   : > { %v12493_v27 = vadd.f32 %v12447_v4, %v3693_v24 }
 0x37b   : > { %v3897_v30 = vadd.f32 %v3896_v25, %v3895_v23  ;;  %v3900_v37 = vsel %vm365_vm2, %v12490_v26, 0.0 }
 0x37c   : > { %v3898_v32 = vsel %vm365_vm2, %v12493_v27, 0.0  ;;  %v9830_v33 = vpop.f32.mrb[10].mxu0 }
 0x37d   : > { %v3899_v34 = vadd.f32 %v3898_v32, %v3897_v30  ;;  %v3703_v36 = vpop.f32.mrb[11].mxu0  ;;  %v12500_v42 = vadd.f32 %v9830_v33, %v12447_v4 }
 0x37e   : > { %v12503_v31 = vadd.f32 %v12447_v4, %v3703_v36 }
 0x37f   : > { %v3901_v50 = vadd.f32 %v3900_v37, %v3899_v34  ;;  %v3904_v52 = vsel %vm365_vm2, %v12500_v42, 0.0 }
 0x380   : > { %v3902_v45 = vsel %vm365_vm2, %v12503_v31, 0.0  ;;  %v9833_v46 = vpop.f32.mrb[12].mxu0 }
 0x381   : > { %v3903_v47 = vadd.f32 %v3902_v45, %v3901_v50  ;;  %v3713_v54 = vpop.f32.mrb[13].mxu0  ;;  %v12510_v53 = vadd.f32 %v9833_v46, %v12447_v4 }
 0x382   : > { %v12513_v29 = vadd.f32 %v12447_v4, %v3713_v54 }
 0x383   : > { %v3905_v44 = vadd.f32 %v3904_v52, %v3903_v47  ;;  %v3908_v59 = vsel %vm365_vm2, %v12510_v53, 0.0 }
 0x384   : > { %v3906_v49 = vsel %vm365_vm2, %v12513_v29, 0.0  ;;  %v9836_v63 = vpop.f32.mrb[14].mxu0 }
 0x385   : > { %v3907_v56 = vadd.f32 %v3906_v49, %v3905_v44  ;;  %v3723_v58 = vpop.f32.mrb[15].mxu0  ;;  %v12520_v7 = vadd.f32 %v9836_v63, %v12447_v4 }
 0x386   : > { %v12523_v55 = vadd.f32 %v12447_v4, %v3723_v58 }
 0x387   : > { %v3909_v57 = vadd.f32 %v3908_v59, %v3907_v56  ;;  %v3912_v5 = vsel %vm365_vm2, %v12520_v7, 0.0 }
 0x388   : > { %v3910_v0 = vsel %vm365_vm2, %v12523_v55, 0.0  ;;  %v9839_v1 = vpop.f32.mrb[16].mxu0 }
 0x389   : > { %v3911_v2 = vadd.f32 %v3910_v0, %v3909_v57  ;;  %v3733_v3 = vpop.f32.mrb[17].mxu0  ;;  %v12530_v8 = vadd.f32 %v9839_v1, %v12447_v4 }
 0x38a   : > { %v12533_v21 = vadd.f32 %v12447_v4, %v3733_v3 }
 0x38b   : > { %v3913_v6 = vadd.f32 %v3912_v5, %v3911_v2  ;;  %v3916_v38 = vsel %vm365_vm2, %v12530_v8, 0.0 }
 0x38c   : > { %v3914_v10 = vsel %vm365_vm2, %v12533_v21, 0.0  ;;  %v9842_v14 = vpop.f32.mrb[18].mxu0 }
 0x38d   : > { %v3915_v17 = vadd.f32 %v3914_v10, %v3913_v6  ;;  %v3743_v35 = vpop.f32.mrb[19].mxu0  ;;  %v12540_v39 = vadd.f32 %v9842_v14, %v12447_v4 }
 0x38e   : > { %v12543_v40 = vadd.f32 %v12447_v4, %v3743_v35 }
 0x38f   : > { %v3917_v43 = vadd.f32 %v3916_v38, %v3915_v17  ;;  %v3920_v18 = vsel %vm365_vm2, %v12540_v39, 0.0 }
 0x390   : > { %v3918_v60 = vsel %vm365_vm2, %v12543_v40, 0.0  ;;  %v9845_v61 = vpop.f32.mrb[20].mxu0 }
 0x391   : > { %v3919_v62 = vadd.f32 %v3918_v60, %v3917_v43  ;;  %v3753_v20 = vpop.f32.mrb[21].mxu0  ;;  %v12550_v16 = vadd.f32 %v9845_v61, %v12447_v4 }
 0x392   : > { %v12553_v12 = vadd.f32 %v12447_v4, %v3753_v20 }
 0x393   : > { %v3921_v13 = vadd.f32 %v3920_v18, %v3919_v62  ;;  %v3924_v30 = vsel %vm365_vm2, %v12550_v16, 0.0 }
 0x394   : > { %v3922_v11 = vsel %vm365_vm2, %v12553_v12, 0.0  ;;  %v9848_v23 = vpop.f32.mrb[22].mxu0 }
 0x395   : > { %v3923_v24 = vadd.f32 %v3922_v11, %v3921_v13  ;;  %v3763_v25 = vpop.f32.mrb[23].mxu0  ;;  %v12560_v32 = vadd.f32 %v9848_v23, %v12447_v4 }
 0x396   : > { %v12563_v33 = vadd.f32 %v12447_v4, %v3763_v25 }
 0x397   : > { %v3925_v34 = vadd.f32 %v3924_v30, %v3923_v24  ;;  %v3928_v46 = vsel %vm365_vm2, %v12560_v32, 0.0 }
 0x398   : > { %v3926_v36 = vsel %vm365_vm2, %v12563_v33, 0.0  ;;  %v9851_v37 = vpop.f32.mrb[24].mxu0 }
 0x399   : > { %v3927_v50 = vadd.f32 %v3926_v36, %v3925_v34  ;;  %v3773_v45 = vpop.f32.mrb[25].mxu0  ;;  %v12570_v47 = vadd.f32 %v9851_v37, %v12447_v4  ;;  %v4255_v34 = vld [vmem:[#allocation8 + $0x20] sm:$0xff]  ;;  %v4256_v36 = vld [vmem:[#allocation8 + $0x28] sm:$0xff] }
 0x39a   : > { %v12573_v54 = vadd.f32 %v12447_v4, %v3773_v45 }
 0x39b   : > { %v3929_v52 = vadd.f32 %v3928_v46, %v3927_v50  ;;  %v3932_v58 = vsel %vm365_vm2, %v12570_v47, 0.0  ;;  %v10437_v50 = vpack.c.bf16 %v4256_v36, %v4255_v34  ;;  %v4257_v46 = vld [vmem:[#allocation8 + $0x30] sm:$0xff] }
 0x39c   : > { %v3930_v44 = vsel %vm365_vm2, %v12573_v54, 0.0  ;;  %v9854_v49 = vpop.f32.mrb[26].mxu0 }
 0x39d   : > { %v3931_v63 = vadd.f32 %v3930_v44, %v3929_v52  ;;  %v3783_v56 = vpop.f32.mrb[27].mxu0  ;;  %v12580_v59 = vadd.f32 %v9854_v49, %v12447_v4  ;;  %10438 = vmatprep.subr.bf16.mxu1 %v10437_v50  ;;  %v4258_v52 = vld [vmem:[#allocation8 + $0x38] sm:$0xff] }
 0x39e   : > { %v12583_v57 = vadd.f32 %v12447_v4, %v3783_v56  ;;  %10440 = vmatpush3.bf16.msra.mxu1 %v10437_v50  ;;  %v4222_v49 = vld [vmem:[#allocation2 + $0x1] sm:$0xff] }
 0x39f   : > { %v3933_v0 = vadd.f32 %v3932_v58, %v3931_v63  ;;  %v3936_v6 = vsel %vm365_vm2, %v12580_v59, 0.0  ;;  %v4218_v63 = vld [vmem:[#allocation8] sm:$0xff]  ;;  %9869 = vmatprep.mubr.msk.f32.mxu1 %vm365_vm2, %v4222_v49  ;;  %v4219_v58 = vld [vmem:[#allocation8 + $0x8] sm:$0xff] }
 0x3a0   : > { %v3934_v1 = vsel %vm365_vm2, %v12583_v57, 0.0  ;;  %v9857_v2 = vpop.f32.mrb[28].mxu0 }
 0x3a1   : > { %v3935_v3 = vadd.f32 %v3934_v1, %v3933_v0  ;;  %v3793_v5 = vpop.f32.mrb[29].mxu0  ;;  %v3880_v10 = vadd.f32 %v9857_v2, %v12447_v4  ;;  %v4223_v0 = vld [vmem:[#allocation2 + $0x9] sm:$0xff]  ;;  %v10445_v1 = vpack.c.bf16 %v4219_v58, %v4218_v63 }
 0x3a2   : > { %v3879_v14 = vadd.f32 %v12447_v4, %v3793_v5 }
 0x3a3   : > { %v3937_v17 = vadd.f32 %v3936_v6, %v3935_v3  ;;  %v3940_v61 = vsel %vm365_vm2, %v3880_v10, 0.0 }
 0x3a4   : > { %v3938_v35 = vsel %vm365_vm2, %v3879_v14, 0.0  ;;  %v9860_v38 = vpop.f32.mrb[30].mxu0 }
 0x3a5   : > { %v3939_v43 = vadd.f32 %v3938_v35, %v3937_v17  ;;  %v3803_v60 = vpop.f32.mrb[31].mxu0  ;;  %v3882_v62 = vadd.f32 %v9860_v38, %v12447_v4 }
 0x3a6   : > { %v3881_v20 = vadd.f32 %v12447_v4, %v3803_v60  ;;  %v10441_v4 = vpack.c.bf16 %v4258_v52, %v4257_v46  ;;  %v4220_v46 = vld [vmem:[#allocation8 + $0x10] sm:$0xff]  ;;  %v4221_v52 = vld [vmem:[#allocation8 + $0x18] sm:$0xff] }
 0x3a7   : > { %v3941_v18 = vadd.f32 %v3940_v61, %v3939_v43  ;;  %v3944_v23 = vsel %vm365_vm2, %v3882_v62, 0.0 }
 0x3a8   : > { %v3942_v13 = vsel %vm365_vm2, %v3881_v20, 0.0  ;;  %10442 = vmatprep.subr.bf16.mxu1 %v10441_v4 }
 0x3a9   : > { %v3943_v11 = vadd.f32 %v3942_v13, %v3941_v18  ;;  %10444 = vmatpush3.bf16.msra.mxu1 %v10441_v4  ;;  %v10449_v4 = vpack.c.bf16 %v4221_v52, %v4220_v46 }
 0x3aa   : > { %10446 = vmatprep.subr.bf16.mxu1 %v10445_v1 }
 0x3ab   : > { %v3945_v24 = vadd.f32 %v3944_v23, %v3943_v11 }
 0x3ac   : > { %9870 = vmatmul.mubr.msk.f32.vlgmr.msra.gmra.mrb[0].mxu1 %vm365_vm2, %v4223_v0 }
 0x3ad   : > { %v3946_v25 = vrot.slane %v3945_v24, 4  ;;  %10448 = vmatpush3.bf16.msra.mxu1 %v10445_v1 }
 0x3ae   : > { %10450 = vmatprep.subr.bf16.mxu1 %v10449_v4 }
 0x3af   : > { %v3947_v30 = vadd.f32 %v3946_v25, %v3945_v24 }
 0x3b1   : > { %v3948_v37 = vrot.slane %v3947_v30, 2  ;;  %10452 = vmatpush3.bf16.msra.mxu1 %v10449_v4 }
 0x3b3   : > { %v3949_v45 = vadd.f32 %v3948_v37, %v3947_v30 }
 0x3b5   : > { %v3950_v44 = vrot.slane %v3949_v45, 1 }
 0x3b7   : > { %v3951_v56 = vadd.f32 %v3950_v44, %v3949_v45 }
 0x3b9   : > { %v3953_v2 = vmul.f32 0.00390625, %v3951_v56 }
 0x3bb   : > { %v12600_v3 = vsub.f32 %v12503_v31, %v3953_v2  ;;  %v12603_v5 = vsub.f32 %v12500_v42, %v3953_v2  ;;  %v12606_v6 = vsub.f32 %v12513_v29, %v3953_v2  ;;  %v12609_v17 = vsub.f32 %v12510_v53, %v3953_v2 }
 0x3bc   : > { %v12612_v35 = vsub.f32 %v12523_v55, %v3953_v2  ;;  %v12615_v38 = vsub.f32 %v12520_v7, %v3953_v2  ;;  %v12618_v43 = vsub.f32 %v12533_v21, %v3953_v2  ;;  %v12621_v31 = vsub.f32 %v12530_v8, %v3953_v2 }
 0x3bd   : > { %v12624_v42 = vsub.f32 %v12543_v40, %v3953_v2  ;;  %v12627_v29 = vsub.f32 %v12540_v39, %v3953_v2  ;;  %v12630_v53 = vsub.f32 %v12553_v12, %v3953_v2  ;;  %v12633_v55 = vsub.f32 %v12550_v16, %v3953_v2 }
 0x3be   : > { %v12636_v7 = vsub.f32 %v12563_v33, %v3953_v2  ;;  %v12639_v21 = vsub.f32 %v12560_v32, %v3953_v2  ;;  %v12642_v8 = vsub.f32 %v12573_v54, %v3953_v2  ;;  %v12645_v40 = vsub.f32 %v12570_v47, %v3953_v2 }
 0x3bf   : > { %v12648_v39 = vsub.f32 %v12583_v57, %v3953_v2  ;;  %v12651_v12 = vsub.f32 %v12580_v59, %v3953_v2  ;;  %v12653_v16 = vsub.f32 %v3879_v14, %v3953_v2  ;;  %v12655_v60 = vsub.f32 %v3880_v10, %v3953_v2 }
 0x3c0   : > { %v12657_v33 = vsub.f32 %v3881_v20, %v3953_v2  ;;  %v12659_v32 = vsub.f32 %v3882_v62, %v3953_v2  ;;  %v12662_v54 = vsub.f32 %v12453_v28, %v3953_v2  ;;  %v12665_v47 = vsub.f32 %v12450_v15, %v3953_v2 }
 0x3c1   : > { %v12668_v57 = vsub.f32 %v12463_v9, %v3953_v2  ;;  %v12671_v59 = vsub.f32 %v12460_v41, %v3953_v2  ;;  %v12678_v61 = vsub.f32 %v12473_v51, %v3953_v2  ;;  %v12683_v15 = vsub.f32 %v12470_v48, %v3953_v2 }
 0x3c2   : > { %v3986_v10 = vmul.f32 %v12662_v54, %v12662_v54  ;;  %v3987_v14 = vmul.f32 %v12665_v47, %v12665_v47  ;;  %v12690_v18 = vsub.f32 %v12483_v22, %v3953_v2  ;;  %v12696_v48 = vsub.f32 %v12480_v19, %v3953_v2 }
 0x3c3   : > { %v3988_v28 = vmul.f32 %v12668_v57, %v12668_v57  ;;  %v3989_v9 = vmul.f32 %v12671_v59, %v12671_v59  ;;  %v3990_v51 = vmul.f32 %v12678_v61, %v12678_v61  ;;  %v3991_v23 = vmul.f32 %v12683_v15, %v12683_v15 }
 0x3c4   : > { %v4018_v41 = vsel %vm365_vm2, %v3986_v10, 0.0  ;;  %v4019_v62 = vsel %vm365_vm2, %v3987_v14, 0.0  ;;  %v12702_v30 = vsub.f32 %v12493_v27, %v3953_v2  ;;  %v3992_v22 = vmul.f32 %v12690_v18, %v12690_v18 }
 0x3c5   : > { %v4020_v20 = vadd.f32 %v4019_v62, %v4018_v41  ;;  %v4021_v13 = vsel %vm365_vm2, %v3988_v28, 0.0  ;;  %v4023_v24 = vsel %vm365_vm2, %v3989_v9, 0.0  ;;  %v4025_v34 = vsel %vm365_vm2, %v3990_v51, 0.0 }
 0x3c6   : > { %v12708_v37 = vsub.f32 %v12490_v26, %v3953_v2  ;;  %v3993_v19 = vmul.f32 %v12696_v48, %v12696_v48  ;;  %v4027_v50 = vsel %vm365_vm2, %v3991_v23, 0.0  ;;  %v3994_v27 = vmul.f32 %v12702_v30, %v12702_v30 }
 0x3c7   : > { %v4022_v11 = vadd.f32 %v4021_v13, %v4020_v20  ;;  %v4029_v44 = vsel %vm365_vm2, %v3992_v22, 0.0  ;;  %v3996_v58 = vmul.f32 %v12600_v3, %v12600_v3  ;;  %v3997_v2 = vmul.f32 %v12603_v5, %v12603_v5 }
 0x3c8   : > { %v3995_v63 = vmul.f32 %v12708_v37, %v12708_v37  ;;  %v4031_v26 = vsel %vm365_vm2, %v3993_v19, 0.0  ;;  %v4033_v0 = vsel %vm365_vm2, %v3994_v27, 0.0  ;;  %v3998_v28 = vmul.f32 %v12606_v6, %v12606_v6 }
 0x3c9   : > { %v4024_v25 = vadd.f32 %v4023_v24, %v4022_v11  ;;  %v4037_v9 = vsel %vm365_vm2, %v3996_v58, 0.0  ;;  %v3999_v62 = vmul.f32 %v12609_v17, %v12609_v17  ;;  %v4039_v20 = vsel %vm365_vm2, %v3997_v2, 0.0 }
 0x3ca   : > { %v4035_v10 = vsel %vm365_vm2, %v3995_v63, 0.0  ;;  %v4000_v13 = vmul.f32 %v12612_v35, %v12612_v35  ;;  %v4041_v11 = vsel %vm365_vm2, %v3998_v28, 0.0  ;;  %v4001_v24 = vmul.f32 %v12615_v38, %v12615_v38 }
 0x3cb   : > { %v4026_v36 = vadd.f32 %v4025_v34, %v4024_v25  ;;  %v4043_v25 = vsel %vm365_vm2, %v3999_v62, 0.0  ;;  %v4002_v34 = vmul.f32 %v12618_v43, %v12618_v43  ;;  %v4004_v52 = vmul.f32 %v12624_v42, %v12624_v42 }
 0x3cc   : > { %v4005_v4 = vmul.f32 %v12627_v29, %v12627_v29 }
 0x3cd   : > { %v4028_v45 = vadd.f32 %v4027_v50, %v4026_v36  ;;  %v4045_v36 = vsel %vm365_vm2, %v4000_v13, 0.0  ;;  %v4003_v50 = vmul.f32 %v12621_v31, %v12621_v31  ;;  %v4049_v27 = vsel %vm365_vm2, %v4002_v34, 0.0 }
 0x3ce   : > { %v4010_v13 = vmul.f32 %v12642_v8, %v12642_v8 }
 0x3cf   : > { %v4030_v49 = vadd.f32 %v4029_v44, %v4028_v45  ;;  %v4047_v45 = vsel %vm365_vm2, %v4001_v24, 0.0 }
 0x3d1   : > { %v4032_v56 = vadd.f32 %v4031_v26, %v4030_v49  ;;  %v4051_v49 = vsel %vm365_vm2, %v4003_v50, 0.0  ;;  %v4006_v26 = vmul.f32 %v12630_v53, %v12630_v53 }
 0x3d3   : > { %v4034_v1 = vadd.f32 %v4033_v0, %v4032_v56  ;;  %v4053_v56 = vsel %vm365_vm2, %v4004_v52, 0.0  ;;  %v4007_v0 = vmul.f32 %v12633_v55, %v12633_v55 }
 0x3d5   : > { %v4036_v14 = vadd.f32 %v4035_v10, %v4034_v1  ;;  %v4055_v1 = vsel %vm365_vm2, %v4005_v4, 0.0  ;;  %v4008_v10 = vmul.f32 %v12636_v7, %v12636_v7 }
 0x3d7   : > { %v4038_v41 = vadd.f32 %v4037_v9, %v4036_v14  ;;  %v4057_v14 = vsel %vm365_vm2, %v4006_v26, 0.0  ;;  %v4009_v9 = vmul.f32 %v12639_v21, %v12639_v21 }
 0x3d9   : > { %v4040_v51 = vadd.f32 %v4039_v20, %v4038_v41  ;;  %v4059_v41 = vsel %vm365_vm2, %v4007_v0, 0.0  ;;  %v4934_v20 = vld [vmem:[#allocation8 + $0x40] sm:$0xff] }
 0x3db   : > { %v4042_v23 = vadd.f32 %v4041_v11, %v4040_v51  ;;  %v4935_v51 = vld [vmem:[#allocation8 + $0x48] sm:$0xff]  ;;  %v4061_v11 = vsel %vm365_vm2, %v4008_v10, 0.0 }
 0x3dd   : > { %v4044_v22 = vadd.f32 %v4043_v25, %v4042_v23  ;;  %v12764_v23 = vpack.c.bf16 %v4935_v51, %v4934_v20  ;;  %v4011_v25 = vmul.f32 %v12645_v40, %v12645_v40 }
 0x3df   : > { %v4046_v19 = vadd.f32 %v4045_v36, %v4044_v22  ;;  %v4063_v22 = vsel %vm365_vm2, %v4009_v9, 0.0  ;;  %10454 = vmatprep.subr.bf16.mxu1 %v12764_v23  ;;  %v4012_v36 = vmul.f32 %v12648_v39, %v12648_v39 }
 0x3e1   : > { %v4048_v46 = vadd.f32 %v4047_v45, %v4046_v19  ;;  %v4065_v19 = vsel %vm365_vm2, %v4010_v13, 0.0  ;;  %v4013_v45 = vmul.f32 %v12651_v12, %v12651_v12 }
 0x3e3   : > { %v4050_v44 = vadd.f32 %v4049_v27, %v4048_v46  ;;  %v4067_v46 = vsel %vm365_vm2, %v4011_v25, 0.0  ;;  %v4014_v27 = vmul.f32 %v12653_v16, %v12653_v16 }
 0x3e5   : > { %v4052_v63 = vadd.f32 %v4051_v49, %v4050_v44  ;;  %v4069_v44 = vsel %vm365_vm2, %v4012_v36, 0.0  ;;  %v4015_v49 = vmul.f32 %v12655_v60, %v12655_v60 }
 0x3e7   : > { %v4054_v58 = vadd.f32 %v4053_v56, %v4052_v63  ;;  %v4071_v63 = vsel %vm365_vm2, %v4013_v45, 0.0  ;;  %v4016_v56 = vmul.f32 %v12657_v33, %v12657_v33 }
 0x3e9   : > { %v4056_v2 = vadd.f32 %v4055_v1, %v4054_v58  ;;  %v4073_v58 = vsel %vm365_vm2, %v4014_v27, 0.0  ;;  %v4017_v1 = vmul.f32 %v12659_v32, %v12659_v32 }
 0x3eb   : > { %v4058_v28 = vadd.f32 %v4057_v14, %v4056_v2  ;;  %v4075_v2 = vsel %vm365_vm2, %v4015_v49, 0.0  ;;  %v4077_v14 = vsel %vm365_vm2, %v4016_v56, 0.0  ;;  %v4079_v9 = vsel %vm365_vm2, %v4017_v1, 0.0 }
 0x3ed   : > { %v4060_v62 = vadd.f32 %v4059_v41, %v4058_v28 }
 0x3ef   : > { %v4062_v24 = vadd.f32 %v4061_v11, %v4060_v62 }
 0x3f1   : > { %v4064_v34 = vadd.f32 %v4063_v22, %v4062_v24 }
 0x3f3   : > { %v4066_v50 = vadd.f32 %v4065_v19, %v4064_v34 }
 0x3f5   : > { %v4068_v52 = vadd.f32 %v4067_v46, %v4066_v50 }
 0x3f7   : > { %v4070_v4 = vadd.f32 %v4069_v44, %v4068_v52 }
 0x3f9   : > { %v4072_v26 = vadd.f32 %v4071_v63, %v4070_v4 }
 0x3fb   : > { %v4074_v0 = vadd.f32 %v4073_v58, %v4072_v26 }
 0x3fd   : > { %v4076_v10 = vadd.f32 %v4075_v2, %v4074_v0 }
 0x3ff   : > { %v4078_v28 = vadd.f32 %v4077_v14, %v4076_v10 }
 0x401   : > { %v4080_v41 = vadd.f32 %v4079_v9, %v4078_v28 }
 0x403   : > { %v4081_v62 = vrot.slane %v4080_v41, 4 }
 0x405   : > { %v4082_v20 = vadd.f32 %v4081_v62, %v4080_v41 }
 0x407   : > { %v4083_v51 = vrot.slane %v4082_v20, 2 }
 0x409   : > { %v4084_v13 = vadd.f32 %v4083_v51, %v4082_v20 }
 0x40b   : > { %v4085_v11 = vrot.slane %v4084_v13, 1 }
 0x40d   : > { %v4086_v24 = vadd.f32 %v4085_v11, %v4084_v13 }
 0x40f   : > { %v4087_v25 = vmul.f32 0.00390625, %v4086_v24 }
 0x411   : > { %v4088_v22 = vadd.f32 1e-05, %v4087_v25 }
 0x413   : > { %11093 = vrsqrt.f32 %v4088_v22 }
 0x41d   : > { %v11094_v34 = vpop.eup %11093 }
 0x41e   : > { %v4120_v36 = vmul.f32 %v11094_v34, %v12657_v33  ;;  %v4090_v19 = vmul.f32 %v11094_v34, %v12662_v54  ;;  %v4091_v50 = vmul.f32 %v11094_v34, %v12665_v47  ;;  %v4092_v45 = vmul.f32 %v11094_v34, %v12668_v57 }
 0x41f   : > { %v4093_v46 = vmul.f32 %v11094_v34, %v12671_v59  ;;  %v4094_v52 = vmul.f32 %v11094_v34, %v12678_v61  ;;  %v4095_v27 = vmul.f32 %v11094_v34, %v12683_v15  ;;  %v4096_v44 = vmul.f32 %v11094_v34, %v12690_v18 }
 0x420   : > { %v4152_v4 = vmax.f32 %v4120_v36, 0.0  ;;  %v4097_v49 = vmul.f32 %v11094_v34, %v12696_v48  ;;  %v4098_v63 = vmul.f32 %v11094_v34, %v12702_v30  ;;  %v4099_v33 = vmul.f32 %v11094_v34, %v12708_v37 }
 0x421   : > { %v4100_v54 = vmul.f32 %v11094_v34, %v12600_v3  ;;  %v4101_v47 = vmul.f32 %v11094_v34, %v12603_v5  ;;  %v4102_v57 = vmul.f32 %v11094_v34, %v12606_v6  ;;  %v4103_v59 = vmul.f32 %v11094_v34, %v12609_v17 }
 0x422   : > { %v4104_v61 = vmul.f32 %v11094_v34, %v12612_v35  ;;  %v4105_v15 = vmul.f32 %v11094_v34, %v12615_v38  ;;  %v4106_v18 = vmul.f32 %v11094_v34, %v12618_v43  ;;  %v4107_v48 = vmul.f32 %v11094_v34, %v12621_v31  ;;  %4184 = vst.msk [vmem:[#allocation2 + $0x181] sm:$0xff] %vm365_vm2, %v4152_v4 }
 0x423   : > { %v4108_v30 = vmul.f32 %v11094_v34, %v12624_v42  ;;  %v12812_v3 = vmul.f32 %v11094_v34, %v12627_v29  ;;  %v12815_v5 = vmul.f32 %v11094_v34, %v12630_v53  ;;  %v12818_v6 = vmul.f32 %v11094_v34, %v12633_v55 }
 0x424   : > { %v12821_v17 = vmul.f32 %v11094_v34, %v12636_v7  ;;  %v12824_v35 = vmul.f32 %v11094_v34, %v12639_v21  ;;  %v12827_v38 = vmul.f32 %v11094_v34, %v12642_v8  ;;  %v12830_v43 = vmul.f32 %v11094_v34, %v12645_v40 }
 0x425   : > { %v12833_v31 = vmul.f32 %v11094_v34, %v12648_v39  ;;  %v12836_v42 = vmul.f32 %v11094_v34, %v12651_v12  ;;  %v12839_v29 = vmul.f32 %v11094_v34, %v12653_v16  ;;  %v12842_v53 = vmul.f32 %v11094_v34, %v12655_v60 }
 0x426   : > { %v12845_v55 = vmul.f32 %v11094_v34, %v12659_v32  ;;  %v4122_v7 = vmax.f32 %v4090_v19, 0.0  ;;  %v4123_v21 = vmax.f32 %v4091_v50, 0.0  ;;  %v4124_v8 = vmax.f32 %v4092_v45, 0.0 }
 0x427   : > { %v4125_v40 = vmax.f32 %v4093_v46, 0.0  ;;  %v4126_v37 = vmax.f32 %v4094_v52, 0.0  ;;  %v4127_v26 = vmax.f32 %v4095_v27, 0.0  ;;  %v4128_v39 = vmax.f32 %v4096_v44, 0.0 }
 0x428   : > { %v4129_v56 = vmax.f32 %v4097_v49, 0.0  ;;  %v4130_v58 = vmax.f32 %v4098_v63, 0.0  ;;  %v4131_v12 = vmax.f32 %v4099_v33, 0.0  ;;  %v4132_v0 = vmax.f32 %v4100_v54, 0.0  ;;  %4154 = vst.msk [vmem:[#allocation2 + $0x19] sm:$0xff] %vm365_vm2, %v4122_v7  ;;  %4155 = vst.msk [vmem:[#allocation2 + $0x21] sm:$0xff] %vm365_vm2, %v4123_v21 }
 0x429   : > { %4156 = vst.msk [vmem:[#allocation2 + $0x31] sm:$0xff] %vm365_vm2, %v4124_v8  ;;  %v4133_v16 = vmax.f32 %v4101_v47, 0.0  ;;  %v4134_v60 = vmax.f32 %v4102_v57, 0.0  ;;  %v4135_v32 = vmax.f32 %v4103_v59, 0.0  ;;  %v4136_v1 = vmax.f32 %v4104_v61, 0.0  ;;  %4157 = vst.msk [vmem:[#allocation2 + $0x39] sm:$0xff] %vm365_vm2, %v4125_v40 }
 0x42a   : > { %4158 = vst.msk [vmem:[#allocation2 + $0x49] sm:$0xff] %vm365_vm2, %v4126_v37  ;;  %4159 = vst.msk [vmem:[#allocation2 + $0x51] sm:$0xff] %vm365_vm2, %v4127_v26  ;;  %v4137_v2 = vmax.f32 %v4105_v15, 0.0  ;;  %v4138_v10 = vmax.f32 %v4106_v18, 0.0  ;;  %v4139_v14 = vmax.f32 %v4107_v48, 0.0  ;;  %v4140_v28 = vmax.f32 %v4108_v30, 0.0 }
 0x42b   : > { %4160 = vst.msk [vmem:[#allocation2 + $0x61] sm:$0xff] %vm365_vm2, %v4128_v39  ;;  %4161 = vst.msk [vmem:[#allocation2 + $0x69] sm:$0xff] %vm365_vm2, %v4129_v56  ;;  %v4141_v9 = vmax.f32 %v12812_v3, 0.0  ;;  %v4142_v41 = vmax.f32 %v12815_v5, 0.0  ;;  %v4143_v62 = vmax.f32 %v12818_v6, 0.0  ;;  %v4144_v20 = vmax.f32 %v12821_v17, 0.0 }
 0x42c   : > { %4162 = vst.msk [vmem:[#allocation2 + $0x79] sm:$0xff] %vm365_vm2, %v4130_v58  ;;  %4163 = vst.msk [vmem:[#allocation2 + $0x81] sm:$0xff] %vm365_vm2, %v4131_v12  ;;  %v4145_v51 = vmax.f32 %v12824_v35, 0.0  ;;  %v4146_v13 = vmax.f32 %v12827_v38, 0.0  ;;  %v4147_v11 = vmax.f32 %v12830_v43, 0.0  ;;  %v4148_v24 = vmax.f32 %v12833_v31, 0.0 }
 0x42d   : > { %4164 = vst.msk [vmem:[#allocation2 + $0x91] sm:$0xff] %vm365_vm2, %v4132_v0  ;;  %4165 = vst.msk [vmem:[#allocation2 + $0x99] sm:$0xff] %vm365_vm2, %v4133_v16  ;;  %v4149_v25 = vmax.f32 %v12836_v42, 0.0  ;;  %v4150_v22 = vmax.f32 %v12839_v29, 0.0  ;;  %v4151_v34 = vmax.f32 %v12842_v53, 0.0  ;;  %v4153_v36 = vmax.f32 %v12845_v55, 0.0 }
 0x42e   : > { %4166 = vst.msk [vmem:[#allocation2 + $0xa9] sm:$0xff] %vm365_vm2, %v4134_v60  ;;  %4167 = vst.msk [vmem:[#allocation2 + $0xb1] sm:$0xff] %vm365_vm2, %v4135_v32  ;;  %v4186_v29 = vld [vmem:[#allocation2] sm:$0xff]  ;;  %v4937_v7 = vld [vmem:[#allocation8 + $0x58] sm:$0xff] }
 0x42f   : > { %4168 = vst.msk [vmem:[#allocation2 + $0xc1] sm:$0xff] %vm365_vm2, %v4136_v1  ;;  %4169 = vst.msk [vmem:[#allocation2 + $0xc9] sm:$0xff] %vm365_vm2, %v4137_v2  ;;  %v12890_v19 = vld [vmem:[#allocation2 + $0x19] sm:$0xff]  ;;  %v12892_v50 = vld [vmem:[#allocation2 + $0x21] sm:$0xff] }
 0x430   : > { %4170 = vst.msk [vmem:[#allocation2 + $0xd9] sm:$0xff] %vm365_vm2, %v4138_v10  ;;  %4171 = vst.msk [vmem:[#allocation2 + $0xe1] sm:$0xff] %vm365_vm2, %v4139_v14  ;;  %9872 = vmatprep.mubr.msk.f32.mxu1 %vm365_vm2, %v12890_v19  ;;  %v12898_v45 = vld [vmem:[#allocation2 + $0x31] sm:$0xff]  ;;  %v12902_v46 = vld [vmem:[#allocation2 + $0x39] sm:$0xff] }
 0x431   : > { %4172 = vst.msk [vmem:[#allocation2 + $0xf1] sm:$0xff] %vm365_vm2, %v4140_v28  ;;  %4173 = vst.msk [vmem:[#allocation2 + $0xf9] sm:$0xff] %vm365_vm2, %v4141_v9  ;;  %9873 = vmatmul.mubr.msk.f32.gmra.mrb[2].mxu1 %vm365_vm2, %v12892_v50  ;;  %v12906_v52 = vld [vmem:[#allocation2 + $0x49] sm:$0xff]  ;;  %v12910_v27 = vld [vmem:[#allocation2 + $0x51] sm:$0xff] }
 0x432   : > { %4174 = vst.msk [vmem:[#allocation2 + $0x109] sm:$0xff] %vm365_vm2, %v4142_v41  ;;  %4175 = vst.msk [vmem:[#allocation2 + $0x111] sm:$0xff] %vm365_vm2, %v4143_v62  ;;  %9875 = vmatprep.mubr.msk.f32.mxu1 %vm365_vm2, %v12898_v45  ;;  %v12914_v44 = vld [vmem:[#allocation2 + $0x61] sm:$0xff]  ;;  %v12918_v4 = vld [vmem:[#allocation2 + $0x69] sm:$0xff] }
 0x433   : > { %4176 = vst.msk [vmem:[#allocation2 + $0x121] sm:$0xff] %vm365_vm2, %v4144_v20  ;;  %4177 = vst.msk [vmem:[#allocation2 + $0x129] sm:$0xff] %vm365_vm2, %v4145_v51  ;;  %v12922_v49 = vld [vmem:[#allocation2 + $0x79] sm:$0xff]  ;;  %v12926_v63 = vld [vmem:[#allocation2 + $0x81] sm:$0xff] }
 0x434   : > { %4178 = vst.msk [vmem:[#allocation2 + $0x139] sm:$0xff] %vm365_vm2, %v4146_v13  ;;  %4179 = vst.msk [vmem:[#allocation2 + $0x141] sm:$0xff] %vm365_vm2, %v4147_v11  ;;  %v12930_v33 = vld [vmem:[#allocation2 + $0x91] sm:$0xff]  ;;  %v12934_v54 = vld [vmem:[#allocation2 + $0x99] sm:$0xff] }
 0x435   : > { %4180 = vst.msk [vmem:[#allocation2 + $0x151] sm:$0xff] %vm365_vm2, %v4148_v24  ;;  %4181 = vst.msk [vmem:[#allocation2 + $0x159] sm:$0xff] %vm365_vm2, %v4149_v25  ;;  %9876 = vmatmul.mubr.msk.f32.gmra.mrb[4].mxu1 %vm365_vm2, %v12902_v46  ;;  %v12938_v47 = vld [vmem:[#allocation2 + $0xa9] sm:$0xff]  ;;  %v12942_v57 = vld [vmem:[#allocation2 + $0xb1] sm:$0xff] }
 0x436   : > { %4182 = vst.msk [vmem:[#allocation2 + $0x169] sm:$0xff] %vm365_vm2, %v4150_v22  ;;  %4183 = vst.msk [vmem:[#allocation2 + $0x171] sm:$0xff] %vm365_vm2, %v4151_v34  ;;  %9878 = vmatprep.mubr.msk.f32.mxu1 %vm365_vm2, %v12906_v52  ;;  %v12946_v59 = vld [vmem:[#allocation2 + $0xc1] sm:$0xff]  ;;  %v12950_v61 = vld [vmem:[#allocation2 + $0xc9] sm:$0xff] }
 0x437   : > { %4185 = vst.msk [vmem:[#allocation2 + $0x189] sm:$0xff] %vm365_vm2, %v4153_v36  ;;  %v12954_v15 = vld [vmem:[#allocation2 + $0xd9] sm:$0xff]  ;;  %v12958_v18 = vld [vmem:[#allocation2 + $0xe1] sm:$0xff]  ;;  %v5324_v40 = vld [vmem:[#allocation8 + $0x60] sm:$0xff] }
 0x438   : > { %v12962_v48 = vld [vmem:[#allocation2 + $0xf1] sm:$0xff]  ;;  %v12966_v30 = vld [vmem:[#allocation2 + $0xf9] sm:$0xff]  ;;  %v4187_v21 = vld [vmem:[#allocation2 + $0x8] sm:$0xff] }
 0x439   : > { %9879 = vmatmul.mubr.msk.f32.gmra.mrb[6].mxu1 %vm365_vm2, %v12910_v27  ;;  %v12970_v3 = vld [vmem:[#allocation2 + $0x109] sm:$0xff]  ;;  %v12974_v5 = vld [vmem:[#allocation2 + $0x111] sm:$0xff]  ;;  %v4936_v55 = vld [vmem:[#allocation8 + $0x50] sm:$0xff] }
 0x43a   : > { %9881 = vmatprep.mubr.msk.f32.mxu1 %vm365_vm2, %v12914_v44  ;;  %14437 = vst [vmem:[#allocation44_spill] sm:$0xff] %v12974_v5  ;;  %v12978_v6 = vld [vmem:[#allocation2 + $0x121] sm:$0xff]  ;;  %v12982_v17 = vld [vmem:[#allocation2 + $0x129] sm:$0xff]  ;;  %v10457_v8 = vpack.c.bf16 %v4937_v7, %v4936_v55  ;;  %v5325_v37 = vld [vmem:[#allocation8 + $0x68] sm:$0xff] }
 0x43b   : > { %14438 = vst [vmem:[#allocation45_spill] sm:$0xff] %v12978_v6  ;;  %14439 = vst [vmem:[#allocation46_spill] sm:$0xff] %v12982_v17  ;;  %v12986_v35 = vld [vmem:[#allocation2 + $0x139] sm:$0xff]  ;;  %v12990_v38 = vld [vmem:[#allocation2 + $0x141] sm:$0xff]  ;;  %v13017_v39 = vpack.c.bf16 %v5325_v37, %v5324_v40 }
 0x43c   : > { %14440 = vst [vmem:[#allocation47_spill] sm:$0xff] %v12986_v35  ;;  %14441 = vst [vmem:[#allocation48_spill] sm:$0xff] %v12990_v38  ;;  %v12994_v43 = vld [vmem:[#allocation2 + $0x151] sm:$0xff]  ;;  %v12998_v31 = vld [vmem:[#allocation2 + $0x159] sm:$0xff] }
 0x43d   : > { %9882 = vmatmul.mubr.msk.f32.gmra.mrb[8].mxu1 %vm365_vm2, %v12918_v4  ;;  %14442 = vst [vmem:[#allocation49_spill] sm:$0xff] %v12994_v43  ;;  %14443 = vst [vmem:[#allocation50_spill] sm:$0xff] %v12998_v31  ;;  %v13002_v42 = vld [vmem:[#allocation2 + $0x169] sm:$0xff]  ;;  %v13006_v53 = vld [vmem:[#allocation2 + $0x171] sm:$0xff] }
 0x43e   : > { %9884 = vmatprep.mubr.msk.f32.mxu1 %vm365_vm2, %v12922_v49  ;;  %14444 = vst [vmem:[#allocation53_spill] sm:$0xff] %v13002_v42  ;;  %14445 = vst [vmem:[#allocation54_spill] sm:$0xff] %v13006_v53  ;;  %v13012_v26 = vld [vmem:[#allocation2 + $0x18] sm:$0xff]  ;;  %v13019_v56 = vld [vmem:[#allocation2 + $0x20] sm:$0xff] }
 0x43f   : > { %v13023_v58 = vld [vmem:[#allocation2 + $0x30] sm:$0xff]  ;;  %v13028_v12 = vld [vmem:[#allocation2 + $0x38] sm:$0xff]  ;;  %v13040_v16 = vld [vmem:[#allocation2 + $0x60] sm:$0xff] }
 0x440   : > { %v13036_v0 = vld [vmem:[#allocation2 + $0x50] sm:$0xff]  ;;  %v13044_v60 = vld [vmem:[#allocation2 + $0x68] sm:$0xff]  ;;  %v13048_v32 = vld [vmem:[#allocation2 + $0x78] sm:$0xff] }
 0x441   : > { %9885 = vmatmul.mubr.msk.f32.gmra.mrb[10].mxu1 %vm365_vm2, %v12926_v63  ;;  %v13052_v1 = vld [vmem:[#allocation2 + $0x80] sm:$0xff]  ;;  %v13056_v2 = vld [vmem:[#allocation2 + $0x90] sm:$0xff]  ;;  %v13060_v10 = vld [vmem:[#allocation2 + $0x98] sm:$0xff] }
 0x442   : > { %9887 = vmatprep.mubr.msk.f32.mxu1 %vm365_vm2, %v12930_v33  ;;  %v13064_v14 = vld [vmem:[#allocation2 + $0xa8] sm:$0xff]  ;;  %v13068_v28 = vld [vmem:[#allocation2 + $0xb0] sm:$0xff]  ;;  %v13072_v9 = vld [vmem:[#allocation2 + $0xc0] sm:$0xff] }
 0x443   : > { %v13076_v41 = vld [vmem:[#allocation2 + $0xc8] sm:$0xff]  ;;  %v13080_v62 = vld [vmem:[#allocation2 + $0xd8] sm:$0xff]  ;;  %v13084_v20 = vld [vmem:[#allocation2 + $0xe0] sm:$0xff] }
 0x444   : > { %v13088_v51 = vld [vmem:[#allocation2 + $0xf0] sm:$0xff]  ;;  %v13092_v13 = vld [vmem:[#allocation2 + $0xf8] sm:$0xff]  ;;  %v13096_v11 = vld [vmem:[#allocation2 + $0x108] sm:$0xff] }
 0x445   : > { %9888 = vmatmul.mubr.msk.f32.gmra.mrb[12].mxu1 %vm365_vm2, %v12934_v54  ;;  %v13100_v24 = vld [vmem:[#allocation2 + $0x110] sm:$0xff]  ;;  %v13104_v25 = vld [vmem:[#allocation2 + $0x120] sm:$0xff]  ;;  %v13108_v22 = vld [vmem:[#allocation2 + $0x128] sm:$0xff] }
 0x446   : > { %9890 = vmatprep.mubr.msk.f32.mxu1 %vm365_vm2, %v12938_v47  ;;  %v13112_v34 = vld [vmem:[#allocation2 + $0x138] sm:$0xff]  ;;  %v13116_v36 = vld [vmem:[#allocation2 + $0x140] sm:$0xff]  ;;  %v13128_v7 = vld [vmem:[#allocation2 + $0x168] sm:$0xff] }
 0x447   : > { %v13124_v55 = vld [vmem:[#allocation2 + $0x158] sm:$0xff]  ;;  %v5326_v40 = vld [vmem:[#allocation8 + $0x70] sm:$0xff]  ;;  %v5327_v37 = vld [vmem:[#allocation8 + $0x78] sm:$0xff] }
 0x449   : > { %9891 = vmatmul.mubr.msk.f32.gmra.mrb[14].mxu1 %vm365_vm2, %v12942_v57 }
 0x44a   : > { %9893 = vmatprep.mubr.msk.f32.mxu1 %vm365_vm2, %v12946_v59 }
 0x44d   : > { %9894 = vmatmul.mubr.msk.f32.gmra.mrb[16].mxu1 %vm365_vm2, %v12950_v61 }
 0x44e   : > { %9896 = vmatprep.mubr.msk.f32.mxu1 %vm365_vm2, %v12954_v15 }
 0x451   : > { %9897 = vmatmul.mubr.msk.f32.gmra.mrb[18].mxu1 %vm365_vm2, %v12958_v18 }
 0x452   : > { %9899 = vmatprep.mubr.msk.f32.mxu1 %vm365_vm2, %v12962_v48 }
 0x455   : > { %9900 = vmatmul.mubr.msk.f32.gmra.mrb[20].mxu1 %vm365_vm2, %v12966_v30 }
 0x456   : > { %9902 = vmatprep.mubr.msk.f32.mxu1 %vm365_vm2, %v12970_v3 }
 0x459   : > { %9903 = vmatmul.mubr.msk.f32.gmra.mrb[22].mxu1 %vm365_vm2, %v12974_v5 }
 0x45a   : > { %9905 = vmatprep.mubr.msk.f32.mxu1 %vm365_vm2, %v12978_v6 }
 0x45d   : > { %9906 = vmatmul.mubr.msk.f32.gmra.mrb[24].mxu1 %vm365_vm2, %v12982_v17  ;;  %v13145_v17 = vld [vmem:[#allocation2 + $0x22] sm:$0xff] }
 0x45e   : > { %9908 = vmatprep.mubr.msk.f32.mxu1 %vm365_vm2, %v12986_v35 }
 0x461   : > { %9909 = vmatmul.mubr.msk.f32.gmra.mrb[26].mxu1 %vm365_vm2, %v12990_v38  ;;  %v13138_v38 = vld [vmem:[#allocation2 + $0x1a] sm:$0xff] }
 0x462   : > { %9911 = vmatprep.mubr.msk.f32.mxu1 %vm365_vm2, %v12994_v43  ;;  %v5715_v43 = vld [vmem:[#allocation8 + $0x88] sm:$0xff] }
 0x465   : > { %9912 = vmatmul.mubr.msk.f32.gmra.mrb[28].mxu1 %vm365_vm2, %v12998_v31  ;;  %v5714_v31 = vld [vmem:[#allocation8 + $0x80] sm:$0xff] }
 0x466   : > { %9914 = vmatprep.mubr.msk.f32.mxu1 %vm365_vm2, %v13002_v42  ;;  %v10465_v42 = vpack.c.bf16 %v5327_v37, %v5326_v40  ;;  %v13143_v35 = vpack.c.bf16 %v5715_v43, %v5714_v31  ;;  %v13158_v43 = vld [vmem:[#allocation2 + $0x4a] sm:$0xff]  ;;  %v13162_v31 = vld [vmem:[#allocation2 + $0x52] sm:$0xff]  ;;  %v13174_v40 = vld [vmem:[#allocation2 + $0x7a] sm:$0xff] }
 0x467   : > { %14448 = vst [vmem:[#allocation57_spill] sm:$0xff] %v13158_v43  ;;  %14449 = vst [vmem:[#allocation58_spill] sm:$0xff] %v13162_v31  ;;  %v13178_v37 = vld [vmem:[#allocation2 + $0x82] sm:$0xff] }
 0x468   : > { %14452 = vst [vmem:[#allocation61_spill] sm:$0xff] %v13174_v40  ;;  %14453 = vst [vmem:[#allocation62_spill] sm:$0xff] %v13178_v37 }
 0x469   : > { %9915 = vmatmul.mubr.msk.f32.gmra.mrb[30].mxu1 %vm365_vm2, %v13006_v53  ;;  %v4902_v53 = vld [vmem:[#allocation2 + $0xa] sm:$0xff] }
 0x46a   : > { %9925 = vmatprep.mubr.msk.f32.mxu1 %vm365_vm2, %v4186_v29  ;;  %v13120_v29 = vld [vmem:[#allocation2 + $0x150] sm:$0xff] }
 0x46d   : > { %9926 = vmatmul.mubr.msk.f32.vlgmr.msra.gmra.mrb[0].mxu1 %vm365_vm2, %v4187_v21  ;;  %v4901_v21 = vld [vmem:[#allocation2 + $0x2] sm:$0xff] }
 0x46e   : > { %9928 = vmatprep.mubr.msk.f32.mxu1 %vm365_vm2, %v13012_v26  ;;  %10456 = vmatpush3.bf16.msra.mxu1 %v12764_v23  ;;  %v13032_v23 = vld [vmem:[#allocation2 + $0x48] sm:$0xff] }
 0x46f   : > { %10458 = vmatprep.subr.bf16.mxu1 %v10457_v8 }
 0x471   : > { %9929 = vmatmul.mubr.msk.f32.gmra.mrb[2].mxu1 %vm365_vm2, %v13019_v56 }
 0x472   : > { %9931 = vmatprep.mubr.msk.f32.mxu1 %vm365_vm2, %v13023_v58  ;;  %10460 = vmatpush3.bf16.msra.mxu1 %v10457_v8  ;;  %v13132_v8 = vld [vmem:[#allocation2 + $0x170] sm:$0xff] }
 0x473   : > { %10462 = vmatprep.subr.bf16.mxu1 %v13017_v39 }
 0x475   : > { %9932 = vmatmul.mubr.msk.f32.gmra.mrb[4].mxu1 %vm365_vm2, %v13028_v12 }
 0x476   : > { %9934 = vmatprep.mubr.msk.f32.mxu1 %vm365_vm2, %v13032_v23 }
 0x479   : > { %9935 = vmatmul.mubr.msk.f32.gmra.mrb[6].mxu1 %vm365_vm2, %v13036_v0 }
 0x47a   : > { %9937 = vmatprep.mubr.msk.f32.mxu1 %vm365_vm2, %v13040_v16 }
 0x47d   : > { %9938 = vmatmul.mubr.msk.f32.gmra.mrb[8].mxu1 %vm365_vm2, %v13044_v60 }
 0x47e   : > { %9940 = vmatprep.mubr.msk.f32.mxu1 %vm365_vm2, %v13048_v32 }
 0x481   : > { %9941 = vmatmul.mubr.msk.f32.gmra.mrb[10].mxu1 %vm365_vm2, %v13052_v1 }
 0x482   : > { %9943 = vmatprep.mubr.msk.f32.mxu1 %vm365_vm2, %v13056_v2 }
 0x485   : > { %9944 = vmatmul.mubr.msk.f32.gmra.mrb[12].mxu1 %vm365_vm2, %v13060_v10 }
 0x486   : > { %9946 = vmatprep.mubr.msk.f32.mxu1 %vm365_vm2, %v13064_v14 }
 0x489   : > { %9947 = vmatmul.mubr.msk.f32.gmra.mrb[14].mxu1 %vm365_vm2, %v13068_v28 }
 0x48a   : > { %9949 = vmatprep.mubr.msk.f32.mxu1 %vm365_vm2, %v13072_v9 }
 0x48d   : > { %9950 = vmatmul.mubr.msk.f32.gmra.mrb[16].mxu1 %vm365_vm2, %v13076_v41 }
 0x48e   : > { %9952 = vmatprep.mubr.msk.f32.mxu1 %vm365_vm2, %v13080_v62 }
 0x491   : > { %9953 = vmatmul.mubr.msk.f32.gmra.mrb[18].mxu1 %vm365_vm2, %v13084_v20 }
 0x492   : > { %9955 = vmatprep.mubr.msk.f32.mxu1 %vm365_vm2, %v13088_v51 }
 0x495   : > { %9956 = vmatmul.mubr.msk.f32.gmra.mrb[20].mxu1 %vm365_vm2, %v13092_v13 }
 0x496   : > { %9958 = vmatprep.mubr.msk.f32.mxu1 %vm365_vm2, %v13096_v11 }
 0x499   : > { %9959 = vmatmul.mubr.msk.f32.gmra.mrb[22].mxu1 %vm365_vm2, %v13100_v24 }
 0x49a   : > { %9961 = vmatprep.mubr.msk.f32.mxu1 %vm365_vm2, %v13104_v25 }
 0x49d   : > { %9962 = vmatmul.mubr.msk.f32.gmra.mrb[24].mxu1 %vm365_vm2, %v13108_v22 }
 0x49e   : > { %9964 = vmatprep.mubr.msk.f32.mxu1 %vm365_vm2, %v13112_v34 }
 0x4a1   : > { %9965 = vmatmul.mubr.msk.f32.gmra.mrb[26].mxu1 %vm365_vm2, %v13116_v36 }
 0x4a2   : > { %9967 = vmatprep.mubr.msk.f32.mxu1 %vm365_vm2, %v13120_v29 }
 0x4a5   : > { %9968 = vmatmul.mubr.msk.f32.gmra.mrb[28].mxu1 %vm365_vm2, %v13124_v55 }
 0x4a6   : > { %9970 = vmatprep.mubr.msk.f32.mxu1 %vm365_vm2, %v13128_v7 }
 0x4a9   : > { %9971 = vmatmul.mubr.msk.f32.gmra.mrb[30].mxu1 %vm365_vm2, %v13132_v8 }
 0x4aa   : > { %9981 = vmatprep.mubr.msk.f32.mxu1 %vm365_vm2, %v4901_v21  ;;  %v13149_v21 = vld [vmem:[#allocation2 + $0x32] sm:$0xff] }
 0x4ab   : > { %14446 = vst [vmem:[#allocation55_spill] sm:$0xff] %v13149_v21 }
 0x4ad   : > { %9982 = vmatmul.mubr.msk.f32.vlgmr.msra.gmra.mrb[0].mxu1 %vm365_vm2, %v4902_v53  ;;  %v13154_v53 = vld [vmem:[#allocation2 + $0x3a] sm:$0xff] }
 0x4ae   : > { %9984 = vmatprep.mubr.msk.f32.mxu1 %vm365_vm2, %v13138_v38  ;;  %10464 = vmatpush3.bf16.msra.mxu1 %v13017_v39  ;;  %14447 = vst [vmem:[#allocation56_spill] sm:$0xff] %v13154_v53  ;;  %v13166_v39 = vld [vmem:[#allocation2 + $0x62] sm:$0xff] }
 0x4af   : > { %10466 = vmatprep.subr.bf16.mxu1 %v10465_v42  ;;  %14450 = vst [vmem:[#allocation59_spill] sm:$0xff] %v13166_v39 }
 0x4b1   : > { %9985 = vmatmul.mubr.msk.f32.gmra.mrb[2].mxu1 %vm365_vm2, %v13145_v17 }
 0x4b2   : > { %9987 = vmatprep.mubr.msk.f32.mxu1 %vm365_vm2, %v13149_v21  ;;  %10468 = vmatpush3.bf16.msra.mxu1 %v10465_v42  ;;  %v13170_v42 = vld [vmem:[#allocation2 + $0x6a] sm:$0xff]  ;;  %v6105_v21 = vld [vmem:[#allocation8 + $0xa8] sm:$0xff] }
 0x4b3   : > { %10470 = vmatprep.subr.bf16.mxu1 %v13143_v35  ;;  %14451 = vst [vmem:[#allocation60_spill] sm:$0xff] %v13170_v42 }
 0x4b5   : > { %9988 = vmatmul.mubr.msk.f32.gmra.mrb[4].mxu1 %vm365_vm2, %v13154_v53  ;;  %v5717_v53 = vld [vmem:[#allocation8 + $0x98] sm:$0xff] }
 0x4b6   : > { %9990 = vmatprep.mubr.msk.f32.mxu1 %vm365_vm2, %v13158_v43  ;;  %v5716_v43 = vld [vmem:[#allocation8 + $0x90] sm:$0xff] }
 0x4b9   : > { %9991 = vmatmul.mubr.msk.f32.gmra.mrb[6].mxu1 %vm365_vm2, %v13162_v31  ;;  %v13182_v31 = vld [vmem:[#allocation2 + $0x92] sm:$0xff] }
 0x4ba   : > { %9993 = vmatprep.mubr.msk.f32.mxu1 %vm365_vm2, %v13166_v39  ;;  %14454 = vst [vmem:[#allocation63_spill] sm:$0xff] %v13182_v31  ;;  %v13186_v39 = vld [vmem:[#allocation2 + $0x9a] sm:$0xff] }
 0x4bb   : > { %14455 = vst [vmem:[#allocation64_spill] sm:$0xff] %v13186_v39 }
 0x4bd   : > { %9994 = vmatmul.mubr.msk.f32.gmra.mrb[8].mxu1 %vm365_vm2, %v13170_v42  ;;  %v13190_v42 = vld [vmem:[#allocation2 + $0xaa] sm:$0xff] }
 0x4be   : > { %9996 = vmatprep.mubr.msk.f32.mxu1 %vm365_vm2, %v13174_v40  ;;  %14456 = vst [vmem:[#allocation65_spill] sm:$0xff] %v13190_v42  ;;  %v13194_v40 = vld [vmem:[#allocation2 + $0xb2] sm:$0xff] }
 0x4bf   : > { %14457 = vst [vmem:[#allocation66_spill] sm:$0xff] %v13194_v40 }
 0x4c1   : > { %9997 = vmatmul.mubr.msk.f32.gmra.mrb[10].mxu1 %vm365_vm2, %v13178_v37  ;;  %v13198_v37 = vld [vmem:[#allocation2 + $0xc2] sm:$0xff] }
 0x4c2   : > { %9999 = vmatprep.mubr.msk.f32.mxu1 %vm365_vm2, %v13182_v31  ;;  %14458 = vst [vmem:[#allocation67_spill] sm:$0xff] %v13198_v37  ;;  %v13202_v31 = vld [vmem:[#allocation2 + $0xca] sm:$0xff] }
 0x4c3   : > { %14459 = vst [vmem:[#allocation68_spill] sm:$0xff] %v13202_v31 }
 0x4c5   : > { %10000 = vmatmul.mubr.msk.f32.gmra.mrb[12].mxu1 %vm365_vm2, %v13186_v39  ;;  %v13206_v39 = vld [vmem:[#allocation2 + $0xda] sm:$0xff] }
 0x4c6   : > { %10002 = vmatprep.mubr.msk.f32.mxu1 %vm365_vm2, %v13190_v42  ;;  %14460 = vst [vmem:[#allocation69_spill] sm:$0xff] %v13206_v39  ;;  %v13210_v42 = vld [vmem:[#allocation2 + $0xe2] sm:$0xff] }
 0x4c7   : > { %14461 = vst [vmem:[#allocation70_spill] sm:$0xff] %v13210_v42 }
 0x4c9   : > { %10003 = vmatmul.mubr.msk.f32.gmra.mrb[14].mxu1 %vm365_vm2, %v13194_v40  ;;  %v13214_v40 = vld [vmem:[#allocation2 + $0xf2] sm:$0xff] }
 0x4ca   : > { %10005 = vmatprep.mubr.msk.f32.mxu1 %vm365_vm2, %v13198_v37  ;;  %14462 = vst [vmem:[#allocation71_spill] sm:$0xff] %v13214_v40  ;;  %v13218_v37 = vld [vmem:[#allocation2 + $0xfa] sm:$0xff] }
 0x4cb   : > { %14463 = vst [vmem:[#allocation72_spill] sm:$0xff] %v13218_v37 }
 0x4cd   : > { %10006 = vmatmul.mubr.msk.f32.gmra.mrb[16].mxu1 %vm365_vm2, %v13202_v31  ;;  %v13222_v31 = vld [vmem:[#allocation2 + $0x10a] sm:$0xff] }
 0x4ce   : > { %10008 = vmatprep.mubr.msk.f32.mxu1 %vm365_vm2, %v13206_v39  ;;  %14464 = vst [vmem:[#allocation73_spill] sm:$0xff] %v13222_v31  ;;  %v13226_v39 = vld [vmem:[#allocation2 + $0x112] sm:$0xff] }
 0x4cf   : > { %14465 = vst [vmem:[#allocation74_spill] sm:$0xff] %v13226_v39 }
 0x4d1   : > { %10009 = vmatmul.mubr.msk.f32.gmra.mrb[18].mxu1 %vm365_vm2, %v13210_v42  ;;  %v13230_v42 = vld [vmem:[#allocation2 + $0x122] sm:$0xff] }
 0x4d2   : > { %10011 = vmatprep.mubr.msk.f32.mxu1 %vm365_vm2, %v13214_v40  ;;  %14466 = vst [vmem:[#allocation75_spill] sm:$0xff] %v13230_v42  ;;  %v13234_v40 = vld [vmem:[#allocation2 + $0x12a] sm:$0xff] }
 0x4d3   : > { %14467 = vst [vmem:[#allocation76_spill] sm:$0xff] %v13234_v40 }
 0x4d5   : > { %10012 = vmatmul.mubr.msk.f32.gmra.mrb[20].mxu1 %vm365_vm2, %v13218_v37  ;;  %v13238_v37 = vld [vmem:[#allocation2 + $0x13a] sm:$0xff] }
 0x4d6   : > { %10014 = vmatprep.mubr.msk.f32.mxu1 %vm365_vm2, %v13222_v31  ;;  %14468 = vst [vmem:[#allocation77_spill] sm:$0xff] %v13238_v37  ;;  %v13242_v31 = vld [vmem:[#allocation2 + $0x142] sm:$0xff] }
 0x4d7   : > { %14469 = vst [vmem:[#allocation78_spill] sm:$0xff] %v13242_v31 }
 0x4d9   : > { %10015 = vmatmul.mubr.msk.f32.gmra.mrb[22].mxu1 %vm365_vm2, %v13226_v39  ;;  %v13246_v39 = vld [vmem:[#allocation2 + $0x152] sm:$0xff] }
 0x4da   : > { %10017 = vmatprep.mubr.msk.f32.mxu1 %vm365_vm2, %v13230_v42  ;;  %14470 = vst [vmem:[#allocation43_spill] sm:$0xff] %v13246_v39  ;;  %v13250_v42 = vld [vmem:[#allocation2 + $0x15a] sm:$0xff] }
 0x4db   : > { %14471 = vst [vmem:[#allocation79_spill] sm:$0xff] %v13250_v42 }
 0x4dd   : > { %10018 = vmatmul.mubr.msk.f32.gmra.mrb[24].mxu1 %vm365_vm2, %v13234_v40  ;;  %v13254_v40 = vld [vmem:[#allocation2 + $0x16a] sm:$0xff] }
 0x4de   : > { %10020 = vmatprep.mubr.msk.f32.mxu1 %vm365_vm2, %v13238_v37  ;;  %14472 = vst [vmem:[#allocation80_spill] sm:$0xff] %v13254_v40  ;;  %v13258_v37 = vld [vmem:[#allocation2 + $0x172] sm:$0xff] }
 0x4e1   : > { %10021 = vmatmul.mubr.msk.f32.gmra.mrb[26].mxu1 %vm365_vm2, %v13242_v31  ;;  %v6104_v31 = vld [vmem:[#allocation8 + $0xa0] sm:$0xff] }
 0x4e2   : > { %10023 = vmatprep.mubr.msk.f32.mxu1 %vm365_vm2, %v13246_v39  ;;  %v10473_v39 = vpack.c.bf16 %v5717_v53, %v5716_v43  ;;  %v6494_v43 = vld [vmem:[#allocation8 + $0xc0] sm:$0xff] }
 0x4e5   : > { %10024 = vmatmul.mubr.msk.f32.gmra.mrb[28].mxu1 %vm365_vm2, %v13250_v42 }
 0x4e6   : > { %10026 = vmatprep.mubr.msk.f32.mxu1 %vm365_vm2, %v13254_v40  ;;  %v10477_v40 = vpack.c.bf16 %v6105_v21, %v6104_v31  ;;  %v6107_v21 = vld [vmem:[#allocation8 + $0xb8] sm:$0xff]  ;;  %v6495_v31 = vld [vmem:[#allocation8 + $0xc8] sm:$0xff] }
 0x4e9   : > { %10027 = vmatmul.mubr.msk.f32.gmra.mrb[30].mxu1 %vm365_vm2, %v13258_v37 }
 0x4ea   : > { %10037 = vmatprep.mubr.msk.f32.mxu1 %vm365_vm2, %v13012_v26  ;;  %v13327_v26 = vld [vmem:[#allocation2 + $0x188] sm:$0xff] }
 0x4ed   : > { %10038 = vmatmul.mubr.msk.f32.vlgmr.msra.gmra.mrb[0].mxu1 %vm365_vm2, %v13019_v56  ;;  %v6106_v56 = vld [vmem:[#allocation8 + $0xb0] sm:$0xff] }
 0x4ee   : > { %10040 = vmatprep.mubr.msk.f32.mxu1 %vm365_vm2, %v13023_v58  ;;  %10472 = vmatpush3.bf16.msra.mxu1 %v13143_v35  ;;  %v13323_v35 = vld [vmem:[#allocation2 + $0x180] sm:$0xff]  ;;  %v10481_v53 = vpack.c.bf16 %v6107_v21, %v6106_v56  ;;  %v14476_v56 = vld [vmem:[#allocation49_spill] sm:$0xff]  ;;  %v14477_v21 = vld [vmem:[#allocation50_spill] sm:$0xff] }
 0x4ef   : > { %10474 = vmatprep.subr.bf16.mxu1 %v10473_v39 }
 0x4f1   : > { %10041 = vmatmul.mubr.msk.f32.gmra.mrb[2].mxu1 %vm365_vm2, %v13028_v12 }
 0x4f2   : > { %10043 = vmatprep.mubr.msk.f32.mxu1 %vm365_vm2, %v13032_v23  ;;  %10476 = vmatpush3.bf16.msra.mxu1 %v10473_v39  ;;  %v10485_v39 = vpack.c.bf16 %v6495_v31, %v6494_v43  ;;  %v14479_v43 = vld [vmem:[#allocation54_spill] sm:$0xff]  ;;  %v13391_v31 = vld [vmem:[#allocation2 + $0x181] sm:$0xff] }
 0x4f3   : > { %10478 = vmatprep.subr.bf16.mxu1 %v10477_v40  ;;  %14480 = vst [vmem:[#allocation81_spill] sm:$0xff] %v13391_v31 }
 0x4f5   : > { %10044 = vmatmul.mubr.msk.f32.gmra.mrb[4].mxu1 %vm365_vm2, %v13036_v0 }
 0x4f6   : > { %10046 = vmatprep.mubr.msk.f32.mxu1 %vm365_vm2, %v13040_v16 }
 0x4f9   : > { %10047 = vmatmul.mubr.msk.f32.gmra.mrb[6].mxu1 %vm365_vm2, %v13044_v60 }
 0x4fa   : > { %10049 = vmatprep.mubr.msk.f32.mxu1 %vm365_vm2, %v13048_v32 }
 0x4fd   : > { %10050 = vmatmul.mubr.msk.f32.gmra.mrb[8].mxu1 %vm365_vm2, %v13052_v1 }
 0x4fe   : > { %10052 = vmatprep.mubr.msk.f32.mxu1 %vm365_vm2, %v13056_v2 }
 0x501   : > { %10053 = vmatmul.mubr.msk.f32.gmra.mrb[10].mxu1 %vm365_vm2, %v13060_v10 }
 0x502   : > { %10055 = vmatprep.mubr.msk.f32.mxu1 %vm365_vm2, %v13064_v14 }
 0x505   : > { %10056 = vmatmul.mubr.msk.f32.gmra.mrb[12].mxu1 %vm365_vm2, %v13068_v28 }
 0x506   : > { %10058 = vmatprep.mubr.msk.f32.mxu1 %vm365_vm2, %v13072_v9 }
 0x509   : > { %10059 = vmatmul.mubr.msk.f32.gmra.mrb[14].mxu1 %vm365_vm2, %v13076_v41 }
 0x50a   : > { %10061 = vmatprep.mubr.msk.f32.mxu1 %vm365_vm2, %v13080_v62 }
 0x50d   : > { %10062 = vmatmul.mubr.msk.f32.gmra.mrb[16].mxu1 %vm365_vm2, %v13084_v20 }
 0x50e   : > { %10064 = vmatprep.mubr.msk.f32.mxu1 %vm365_vm2, %v13088_v51 }
 0x511   : > { %10065 = vmatmul.mubr.msk.f32.gmra.mrb[18].mxu1 %vm365_vm2, %v13092_v13 }
 0x512   : > { %10067 = vmatprep.mubr.msk.f32.mxu1 %vm365_vm2, %v13096_v11 }
 0x515   : > { %10068 = vmatmul.mubr.msk.f32.gmra.mrb[20].mxu1 %vm365_vm2, %v13100_v24 }
 0x516   : > { %10070 = vmatprep.mubr.msk.f32.mxu1 %vm365_vm2, %v13104_v25 }
 0x519   : > { %10071 = vmatmul.mubr.msk.f32.gmra.mrb[22].mxu1 %vm365_vm2, %v13108_v22 }
 0x51a   : > { %10073 = vmatprep.mubr.msk.f32.mxu1 %vm365_vm2, %v13112_v34 }
 0x51d   : > { %10074 = vmatmul.mubr.msk.f32.gmra.mrb[24].mxu1 %vm365_vm2, %v13116_v36 }
 0x51e   : > { %10076 = vmatprep.mubr.msk.f32.mxu1 %vm365_vm2, %v13120_v29 }
 0x521   : > { %10077 = vmatmul.mubr.msk.f32.gmra.mrb[26].mxu1 %vm365_vm2, %v13124_v55 }
 0x522   : > { %10079 = vmatprep.mubr.msk.f32.mxu1 %vm365_vm2, %v13128_v7 }
 0x525   : > { %10080 = vmatmul.mubr.msk.f32.gmra.mrb[28].mxu1 %vm365_vm2, %v13132_v8 }
 0x526   : > { %10082 = vmatprep.mubr.msk.f32.mxu1 %vm365_vm2, %v13323_v35 }
 0x529   : > { %10083 = vmatmul.mubr.msk.f32.gmra.mrb[30].mxu1 %vm365_vm2, %v13327_v26 }
 0x52a   : > { %10093 = vmatprep.mubr.msk.f32.mxu1 %vm365_vm2, %v12890_v19  ;;  %v14473_v19 = vld [vmem:[#allocation46_spill] sm:$0xff] }
 0x52d   : > { %10094 = vmatmul.mubr.msk.f32.vlgmr.msra.gmra.mrb[0].mxu1 %vm365_vm2, %v12892_v50  ;;  %v14474_v50 = vld [vmem:[#allocation47_spill] sm:$0xff] }
 0x52e   : > { %10096 = vmatprep.mubr.msk.f32.mxu1 %vm365_vm2, %v12898_v45  ;;  %10480 = vmatpush3.bf16.msra.mxu1 %v10477_v40  ;;  %v14475_v40 = vld [vmem:[#allocation48_spill] sm:$0xff] }
 0x52f   : > { %10482 = vmatprep.subr.bf16.mxu1 %v10481_v53 }
 0x531   : > { %10097 = vmatmul.mubr.msk.f32.gmra.mrb[2].mxu1 %vm365_vm2, %v12902_v46 }
 0x532   : > { %10099 = vmatprep.mubr.msk.f32.mxu1 %vm365_vm2, %v12906_v52  ;;  %10484 = vmatpush3.bf16.msra.mxu1 %v10481_v53  ;;  %v14478_v53 = vld [vmem:[#allocation53_spill] sm:$0xff] }
 0x533   : > { %10486 = vmatprep.subr.bf16.mxu1 %v10485_v39 }
 0x535   : > { %10100 = vmatmul.mubr.msk.f32.gmra.mrb[4].mxu1 %vm365_vm2, %v12910_v27 }
 0x536   : > { %10102 = vmatprep.mubr.msk.f32.mxu1 %vm365_vm2, %v12914_v44 }
 0x539   : > { %10103 = vmatmul.mubr.msk.f32.gmra.mrb[6].mxu1 %vm365_vm2, %v12918_v4 }
 0x53a   : > { %10105 = vmatprep.mubr.msk.f32.mxu1 %vm365_vm2, %v12922_v49 }
 0x53d   : > { %10106 = vmatmul.mubr.msk.f32.gmra.mrb[8].mxu1 %vm365_vm2, %v12926_v63 }
 0x53e   : > { %10108 = vmatprep.mubr.msk.f32.mxu1 %vm365_vm2, %v12930_v33 }
 0x541   : > { %10109 = vmatmul.mubr.msk.f32.gmra.mrb[10].mxu1 %vm365_vm2, %v12934_v54 }
 0x542   : > { %10111 = vmatprep.mubr.msk.f32.mxu1 %vm365_vm2, %v12938_v47 }
 0x545   : > { %10112 = vmatmul.mubr.msk.f32.gmra.mrb[12].mxu1 %vm365_vm2, %v12942_v57 }
 0x546   : > { %10114 = vmatprep.mubr.msk.f32.mxu1 %vm365_vm2, %v12946_v59 }
 0x549   : > { %10115 = vmatmul.mubr.msk.f32.gmra.mrb[14].mxu1 %vm365_vm2, %v12950_v61 }
 0x54a   : > { %10117 = vmatprep.mubr.msk.f32.mxu1 %vm365_vm2, %v12954_v15 }
 0x54d   : > { %10118 = vmatmul.mubr.msk.f32.gmra.mrb[16].mxu1 %vm365_vm2, %v12958_v18 }
 0x54e   : > { %10120 = vmatprep.mubr.msk.f32.mxu1 %vm365_vm2, %v12962_v48 }
 0x551   : > { %10121 = vmatmul.mubr.msk.f32.gmra.mrb[18].mxu1 %vm365_vm2, %v12966_v30 }
 0x552   : > { %10123 = vmatprep.mubr.msk.f32.mxu1 %vm365_vm2, %v12970_v3 }
 0x555   : > { %10124 = vmatmul.mubr.msk.f32.gmra.mrb[20].mxu1 %vm365_vm2, %v12974_v5  ;;  %v14483_v5 = vld [vmem:[#allocation57_spill] sm:$0xff] }
 0x556   : > { %10126 = vmatprep.mubr.msk.f32.mxu1 %vm365_vm2, %v12978_v6  ;;  %v14482_v6 = vld [vmem:[#allocation56_spill] sm:$0xff] }
 0x559   : > { %10127 = vmatmul.mubr.msk.f32.gmra.mrb[22].mxu1 %vm365_vm2, %v14473_v19  ;;  %v6497_v19 = vld [vmem:[#allocation8 + $0xd8] sm:$0xff] }
 0x55a   : > { %10129 = vmatprep.mubr.msk.f32.mxu1 %vm365_vm2, %v14474_v50  ;;  %v13395_v50 = vld [vmem:[#allocation2 + $0x189] sm:$0xff] }
 0x55d   : > { %10130 = vmatmul.mubr.msk.f32.gmra.mrb[24].mxu1 %vm365_vm2, %v14475_v40  ;;  %v6496_v40 = vld [vmem:[#allocation8 + $0xd0] sm:$0xff] }
 0x55e   : > { %10132 = vmatprep.mubr.msk.f32.mxu1 %vm365_vm2, %v14476_v56  ;;  %v6885_v56 = vld [vmem:[#allocation8 + $0xe8] sm:$0xff] }
 0x561   : > { %10133 = vmatmul.mubr.msk.f32.gmra.mrb[26].mxu1 %vm365_vm2, %v14477_v21  ;;  %v10489_v21 = vpack.c.bf16 %v6497_v19, %v6496_v40  ;;  %v14485_v19 = vld [vmem:[#allocation59_spill] sm:$0xff]  ;;  %v14488_v40 = vld [vmem:[#allocation62_spill] sm:$0xff] }
 0x562   : > { %10135 = vmatprep.mubr.msk.f32.mxu1 %vm365_vm2, %v14478_v53  ;;  %v6884_v53 = vld [vmem:[#allocation8 + $0xe0] sm:$0xff] }
 0x565   : > { %10136 = vmatmul.mubr.msk.f32.gmra.mrb[28].mxu1 %vm365_vm2, %v14479_v43  ;;  %v14481_v43 = vld [vmem:[#allocation55_spill] sm:$0xff] }
 0x566   : > { %10138 = vmatprep.mubr.msk.f32.mxu1 %vm365_vm2, %v13391_v31  ;;  %v10493_v31 = vpack.c.bf16 %v6885_v56, %v6884_v53  ;;  %v14489_v56 = vld [vmem:[#allocation63_spill] sm:$0xff]  ;;  %v14491_v53 = vld [vmem:[#allocation65_spill] sm:$0xff] }
 0x569   : > { %10139 = vmatmul.mubr.msk.f32.gmra.mrb[30].mxu1 %vm365_vm2, %v13395_v50 }
 0x56a   : > { %10149 = vmatprep.mubr.msk.f32.mxu1 %vm365_vm2, %v13138_v38  ;;  %v14484_v38 = vld [vmem:[#allocation58_spill] sm:$0xff] }
 0x56d   : > { %10150 = vmatmul.mubr.msk.f32.vlgmr.msra.gmra.mrb[0].mxu1 %vm365_vm2, %v13145_v17  ;;  %v14486_v17 = vld [vmem:[#allocation60_spill] sm:$0xff] }
 0x56e   : > { %10152 = vmatprep.mubr.msk.f32.mxu1 %vm365_vm2, %v14481_v43  ;;  %10488 = vmatpush3.bf16.msra.mxu1 %v10485_v39  ;;  %v14487_v39 = vld [vmem:[#allocation61_spill] sm:$0xff] }
 0x56f   : > { %10490 = vmatprep.subr.bf16.mxu1 %v10489_v21 }
 0x571   : > { %10153 = vmatmul.mubr.msk.f32.gmra.mrb[2].mxu1 %vm365_vm2, %v14482_v6 }
 0x572   : > { %10155 = vmatprep.mubr.msk.f32.mxu1 %vm365_vm2, %v14483_v5  ;;  %10492 = vmatpush3.bf16.msra.mxu1 %v10489_v21  ;;  %v14490_v21 = vld [vmem:[#allocation64_spill] sm:$0xff] }
 0x573   : > { %10494 = vmatprep.subr.bf16.mxu1 %v10493_v31 }
 0x575   : > { %10156 = vmatmul.mubr.msk.f32.gmra.mrb[4].mxu1 %vm365_vm2, %v14484_v38  ;;  %v14492_v38 = vld [vmem:[#allocation66_spill] sm:$0xff] }
 0x576   : > { %10158 = vmatprep.mubr.msk.f32.mxu1 %vm365_vm2, %v14485_v19  ;;  %v14493_v19 = vld [vmem:[#allocation67_spill] sm:$0xff] }
 0x579   : > { %10159 = vmatmul.mubr.msk.f32.gmra.mrb[6].mxu1 %vm365_vm2, %v14486_v17  ;;  %v14494_v17 = vld [vmem:[#allocation68_spill] sm:$0xff] }
 0x57a   : > { %10161 = vmatprep.mubr.msk.f32.mxu1 %vm365_vm2, %v14487_v39  ;;  %v14495_v39 = vld [vmem:[#allocation69_spill] sm:$0xff] }
 0x57d   : > { %10162 = vmatmul.mubr.msk.f32.gmra.mrb[8].mxu1 %vm365_vm2, %v14488_v40  ;;  %v14496_v40 = vld [vmem:[#allocation70_spill] sm:$0xff] }
 0x57e   : > { %10164 = vmatprep.mubr.msk.f32.mxu1 %vm365_vm2, %v14489_v56  ;;  %v14497_v56 = vld [vmem:[#allocation71_spill] sm:$0xff] }
 0x581   : > { %10165 = vmatmul.mubr.msk.f32.gmra.mrb[10].mxu1 %vm365_vm2, %v14490_v21  ;;  %v14498_v21 = vld [vmem:[#allocation72_spill] sm:$0xff] }
 0x582   : > { %10167 = vmatprep.mubr.msk.f32.mxu1 %vm365_vm2, %v14491_v53  ;;  %v14499_v53 = vld [vmem:[#allocation73_spill] sm:$0xff] }
 0x585   : > { %10168 = vmatmul.mubr.msk.f32.gmra.mrb[12].mxu1 %vm365_vm2, %v14492_v38  ;;  %v14500_v38 = vld [vmem:[#allocation74_spill] sm:$0xff] }
 0x586   : > { %10170 = vmatprep.mubr.msk.f32.mxu1 %vm365_vm2, %v14493_v19  ;;  %v14501_v19 = vld [vmem:[#allocation75_spill] sm:$0xff] }
 0x589   : > { %10171 = vmatmul.mubr.msk.f32.gmra.mrb[14].mxu1 %vm365_vm2, %v14494_v17  ;;  %v14502_v17 = vld [vmem:[#allocation76_spill] sm:$0xff] }
 0x58a   : > { %10173 = vmatprep.mubr.msk.f32.mxu1 %vm365_vm2, %v14495_v39  ;;  %v14503_v39 = vld [vmem:[#allocation77_spill] sm:$0xff] }
 0x58d   : > { %10174 = vmatmul.mubr.msk.f32.gmra.mrb[16].mxu1 %vm365_vm2, %v14496_v40  ;;  %v14504_v40 = vld [vmem:[#allocation78_spill] sm:$0xff] }
 0x58e   : > { %10176 = vmatprep.mubr.msk.f32.mxu1 %vm365_vm2, %v14497_v56  ;;  %v14505_v56 = vld [vmem:[#allocation43_spill] sm:$0xff] }
 0x591   : > { %10177 = vmatmul.mubr.msk.f32.gmra.mrb[18].mxu1 %vm365_vm2, %v14498_v21 }
 0x592   : > { %10179 = vmatprep.mubr.msk.f32.mxu1 %vm365_vm2, %v14499_v53  ;;  %v14506_v53 = vld [vmem:[#allocation80_spill] sm:$0xff] }
 0x595   : > { %10180 = vmatmul.mubr.msk.f32.gmra.mrb[20].mxu1 %vm365_vm2, %v14500_v38 }
 0x596   : > { %10182 = vmatprep.mubr.msk.f32.mxu1 %vm365_vm2, %v14501_v19  ;;  %v13459_v19 = vld [vmem:[#allocation2 + $0x182] sm:$0xff] }
 0x597   : > { %14507 = vst [vmem:[#allocation55_spill] sm:$0xff] %v13459_v19 }
 0x599   : > { %10183 = vmatmul.mubr.msk.f32.gmra.mrb[22].mxu1 %vm365_vm2, %v14502_v17  ;;  %v6887_v17 = vld [vmem:[#allocation8 + $0xf8] sm:$0xff] }
 0x59a   : > { %10185 = vmatprep.mubr.msk.f32.mxu1 %vm365_vm2, %v14503_v39  ;;  %v13463_v39 = vld [vmem:[#allocation2 + $0x18a] sm:$0xff] }
 0x59d   : > { %10186 = vmatmul.mubr.msk.f32.gmra.mrb[24].mxu1 %vm365_vm2, %v14504_v40  ;;  %v6886_v40 = vld [vmem:[#allocation8 + $0xf0] sm:$0xff] }
 0x59e   : > { %10188 = vmatprep.mubr.msk.f32.mxu1 %vm365_vm2, %v14505_v56  ;;  %v7275_v56 = vld [vmem:[#allocation8 + $0x108] sm:$0xff] }
 0x5a1   : > { %10189 = vmatmul.mubr.msk.f32.gmra.mrb[26].mxu1 %vm365_vm2, %v13250_v42  ;;  %v10497_v42 = vpack.c.bf16 %v6887_v17, %v6886_v40 }
 0x5a2   : > { %10191 = vmatprep.mubr.msk.f32.mxu1 %vm365_vm2, %v14506_v53  ;;  %v7274_v53 = vld [vmem:[#allocation8 + $0x100] sm:$0xff] }
 0x5a5   : > { %10192 = vmatmul.mubr.msk.f32.gmra.mrb[28].mxu1 %vm365_vm2, %v13258_v37 }
 0x5a6   : > { %10194 = vmatprep.mubr.msk.f32.mxu1 %vm365_vm2, %v13459_v19  ;;  %v10501_v19 = vpack.c.bf16 %v7275_v56, %v7274_v53 }
 0x5a9   : > { %10195 = vmatmul.mubr.msk.f32.gmra.mrb[30].mxu1 %vm365_vm2, %v13463_v39 }
 0x5aa   : > { %10205 = vmatprep.mubr.msk.f32.mxu1 %vm365_vm2, %v13023_v58  ;;  %v6491_v58 = vld [vmem:[#allocation2 + $0x198] sm:$0xff] }
 0x5ad   : > { %10206 = vmatmul.mubr.msk.f32.vlgmr.msra.gmra.mrb[0].mxu1 %vm365_vm2, %v13028_v12  ;;  %v6492_v12 = vld [vmem:[#allocation2 + $0x1a0] sm:$0xff] }
 0x5ae   : > { %10208 = vmatprep.mubr.msk.f32.mxu1 %vm365_vm2, %v13032_v23  ;;  %10496 = vmatpush3.bf16.msra.mxu1 %v10493_v31  ;;  %v7276_v23 = vld [vmem:[#allocation8 + $0x110] sm:$0xff] }
 0x5af   : > { %10498 = vmatprep.subr.bf16.mxu1 %v10497_v42 }
 0x5b1   : > { %10209 = vmatmul.mubr.msk.f32.gmra.mrb[2].mxu1 %vm365_vm2, %v13036_v0  ;;  %v7277_v0 = vld [vmem:[#allocation8 + $0x118] sm:$0xff] }
 0x5b2   : > { %10211 = vmatprep.mubr.msk.f32.mxu1 %vm365_vm2, %v13040_v16  ;;  %10500 = vmatpush3.bf16.msra.mxu1 %v10497_v42  ;;  %v10505_v16 = vpack.c.bf16 %v7277_v0, %v7276_v23 }
 0x5b3   : > { %10502 = vmatprep.subr.bf16.mxu1 %v10501_v19 }
 0x5b5   : > { %10212 = vmatmul.mubr.msk.f32.gmra.mrb[4].mxu1 %vm365_vm2, %v13044_v60  ;;  %v14527_v60 = vld [vmem:[#allocation67_spill] sm:$0xff] }
 0x5b6   : > { %10214 = vmatprep.mubr.msk.f32.mxu1 %vm365_vm2, %v13048_v32  ;;  %v14528_v32 = vld [vmem:[#allocation68_spill] sm:$0xff] }
 0x5b9   : > { %10215 = vmatmul.mubr.msk.f32.gmra.mrb[6].mxu1 %vm365_vm2, %v13052_v1  ;;  %v14529_v1 = vld [vmem:[#allocation69_spill] sm:$0xff] }
 0x5ba   : > { %10217 = vmatprep.mubr.msk.f32.mxu1 %vm365_vm2, %v13056_v2  ;;  %v14530_v2 = vld [vmem:[#allocation70_spill] sm:$0xff] }
 0x5bd   : > { %10218 = vmatmul.mubr.msk.f32.gmra.mrb[8].mxu1 %vm365_vm2, %v13060_v10  ;;  %v14531_v10 = vld [vmem:[#allocation71_spill] sm:$0xff] }
 0x5be   : > { %10220 = vmatprep.mubr.msk.f32.mxu1 %vm365_vm2, %v13064_v14  ;;  %v14532_v14 = vld [vmem:[#allocation73_spill] sm:$0xff] }
 0x5c1   : > { %10221 = vmatmul.mubr.msk.f32.gmra.mrb[10].mxu1 %vm365_vm2, %v13068_v28  ;;  %v14533_v28 = vld [vmem:[#allocation75_spill] sm:$0xff] }
 0x5c2   : > { %10223 = vmatprep.mubr.msk.f32.mxu1 %vm365_vm2, %v13072_v9  ;;  %v14534_v9 = vld [vmem:[#allocation76_spill] sm:$0xff] }
 0x5c5   : > { %10224 = vmatmul.mubr.msk.f32.gmra.mrb[12].mxu1 %vm365_vm2, %v13076_v41  ;;  %v14535_v41 = vld [vmem:[#allocation77_spill] sm:$0xff] }
 0x5c6   : > { %10226 = vmatprep.mubr.msk.f32.mxu1 %vm365_vm2, %v13080_v62  ;;  %v14536_v62 = vld [vmem:[#allocation78_spill] sm:$0xff] }
 0x5c9   : > { %10227 = vmatmul.mubr.msk.f32.gmra.mrb[14].mxu1 %vm365_vm2, %v13084_v20  ;;  %v14537_v20 = vld [vmem:[#allocation43_spill] sm:$0xff] }
 0x5ca   : > { %10229 = vmatprep.mubr.msk.f32.mxu1 %vm365_vm2, %v13088_v51  ;;  %v14538_v51 = vld [vmem:[#allocation79_spill] sm:$0xff] }
 0x5cd   : > { %10230 = vmatmul.mubr.msk.f32.gmra.mrb[16].mxu1 %vm365_vm2, %v13092_v13  ;;  %v14539_v13 = vld [vmem:[#allocation80_spill] sm:$0xff] }
 0x5ce   : > { %10232 = vmatprep.mubr.msk.f32.mxu1 %vm365_vm2, %v13096_v11  ;;  %v14540_v11 = vld [vmem:[#allocation55_spill] sm:$0xff] }
 0x5d1   : > { %10233 = vmatmul.mubr.msk.f32.gmra.mrb[18].mxu1 %vm365_vm2, %v13100_v24  ;;  %v7271_v24 = vld [vmem:[#allocation2 + $0x19a] sm:$0xff] }
 0x5d2   : > { %10235 = vmatprep.mubr.msk.f32.mxu1 %vm365_vm2, %v13104_v25  ;;  %v7272_v25 = vld [vmem:[#allocation2 + $0x1a2] sm:$0xff] }
 0x5d5   : > { %10236 = vmatmul.mubr.msk.f32.gmra.mrb[20].mxu1 %vm365_vm2, %v13108_v22  ;;  %v13656_v22 = vld [vmem:[%s14153_s4] ss:$0 sm:$0xff] }
 0x5d6   : > { %10238 = vmatprep.mubr.msk.f32.mxu1 %vm365_vm2, %v13112_v34 }
 0x5d9   : > { %10239 = vmatmul.mubr.msk.f32.gmra.mrb[22].mxu1 %vm365_vm2, %v13116_v36 }
 0x5da   : > { %10241 = vmatprep.mubr.msk.f32.mxu1 %vm365_vm2, %v13120_v29 }
 0x5dd   : > { %10242 = vmatmul.mubr.msk.f32.gmra.mrb[24].mxu1 %vm365_vm2, %v13124_v55 }
 0x5de   : > { %10244 = vmatprep.mubr.msk.f32.mxu1 %vm365_vm2, %v13128_v7 }
 0x5e1   : > { %10245 = vmatmul.mubr.msk.f32.gmra.mrb[26].mxu1 %vm365_vm2, %v13132_v8 }
 0x5e2   : > { %10247 = vmatprep.mubr.msk.f32.mxu1 %vm365_vm2, %v13323_v35 }
 0x5e5   : > { %10248 = vmatmul.mubr.msk.f32.gmra.mrb[28].mxu1 %vm365_vm2, %v13327_v26 }
 0x5e6   : > { %10250 = vmatprep.mubr.msk.f32.mxu1 %vm365_vm2, %v6491_v58 }
 0x5e9   : > { %10251 = vmatmul.mubr.msk.f32.gmra.mrb[30].mxu1 %vm365_vm2, %v6492_v12 }
 0x5ea   : > { %10261 = vmatprep.mubr.msk.f32.mxu1 %vm365_vm2, %v12898_v45  ;;  %v14508_v45 = vld [vmem:[#allocation44_spill] sm:$0xff] }
 0x5ed   : > { %10262 = vmatmul.mubr.msk.f32.vlgmr.msra.gmra.mrb[0].mxu1 %vm365_vm2, %v12902_v46  ;;  %v14509_v46 = vld [vmem:[#allocation45_spill] sm:$0xff] }
 0x5ee   : > { %10264 = vmatprep.mubr.msk.f32.mxu1 %vm365_vm2, %v12906_v52  ;;  %10504 = vmatpush3.bf16.msra.mxu1 %v10501_v19  ;;  %v14510_v52 = vld [vmem:[#allocation46_spill] sm:$0xff] }
 0x5ef   : > { %10506 = vmatprep.subr.bf16.mxu1 %v10505_v16 }
 0x5f1   : > { %10265 = vmatmul.mubr.msk.f32.gmra.mrb[2].mxu1 %vm365_vm2, %v12910_v27  ;;  %v14511_v27 = vld [vmem:[#allocation47_spill] sm:$0xff] }
 0x5f2   : > { %10267 = vmatprep.mubr.msk.f32.mxu1 %vm365_vm2, %v12914_v44  ;;  %10508 = vmatpush3.bf16.msra.mxu1 %v10505_v16  ;;  %v14512_v44 = vld [vmem:[#allocation48_spill] sm:$0xff] }
 0x5f5   : > { %10268 = vmatmul.mubr.msk.f32.gmra.mrb[4].mxu1 %vm365_vm2, %v12918_v4  ;;  %v14513_v4 = vld [vmem:[#allocation49_spill] sm:$0xff] }
 0x5f6   : > { %10270 = vmatprep.mubr.msk.f32.mxu1 %vm365_vm2, %v12922_v49  ;;  %v14514_v49 = vld [vmem:[#allocation50_spill] sm:$0xff] }
 0x5f9   : > { %10271 = vmatmul.mubr.msk.f32.gmra.mrb[6].mxu1 %vm365_vm2, %v12926_v63  ;;  %v14515_v63 = vld [vmem:[#allocation53_spill] sm:$0xff] }
 0x5fa   : > { %10273 = vmatprep.mubr.msk.f32.mxu1 %vm365_vm2, %v12930_v33  ;;  %v14516_v33 = vld [vmem:[#allocation54_spill] sm:$0xff] }
 0x5fd   : > { %10274 = vmatmul.mubr.msk.f32.gmra.mrb[8].mxu1 %vm365_vm2, %v12934_v54  ;;  %v14517_v54 = vld [vmem:[#allocation81_spill] sm:$0xff] }
 0x5fe   : > { %10276 = vmatprep.mubr.msk.f32.mxu1 %vm365_vm2, %v12938_v47  ;;  %v6881_v47 = vld [vmem:[#allocation2 + $0x199] sm:$0xff] }
 0x601   : > { %10277 = vmatmul.mubr.msk.f32.gmra.mrb[10].mxu1 %vm365_vm2, %v12942_v57  ;;  %v6882_v57 = vld [vmem:[#allocation2 + $0x1a1] sm:$0xff] }
 0x602   : > { %10279 = vmatprep.mubr.msk.f32.mxu1 %vm365_vm2, %v12946_v59  ;;  %v14518_v59 = vld [vmem:[#allocation58_spill] sm:$0xff] }
 0x605   : > { %10280 = vmatmul.mubr.msk.f32.gmra.mrb[12].mxu1 %vm365_vm2, %v12950_v61  ;;  %v14519_v61 = vld [vmem:[#allocation59_spill] sm:$0xff] }
 0x606   : > { %10282 = vmatprep.mubr.msk.f32.mxu1 %vm365_vm2, %v12954_v15  ;;  %v14520_v15 = vld [vmem:[#allocation60_spill] sm:$0xff] }
 0x609   : > { %10283 = vmatmul.mubr.msk.f32.gmra.mrb[14].mxu1 %vm365_vm2, %v12958_v18  ;;  %v14521_v18 = vld [vmem:[#allocation61_spill] sm:$0xff] }
 0x60a   : > { %10285 = vmatprep.mubr.msk.f32.mxu1 %vm365_vm2, %v12962_v48  ;;  %v14522_v48 = vld [vmem:[#allocation62_spill] sm:$0xff] }
 0x60d   : > { %10286 = vmatmul.mubr.msk.f32.gmra.mrb[16].mxu1 %vm365_vm2, %v12966_v30  ;;  %v14523_v30 = vld [vmem:[#allocation63_spill] sm:$0xff] }
 0x60e   : > { %10288 = vmatprep.mubr.msk.f32.mxu1 %vm365_vm2, %v12970_v3  ;;  %v14524_v3 = vld [vmem:[#allocation64_spill] sm:$0xff] }
 0x611   : > { %10289 = vmatmul.mubr.msk.f32.gmra.mrb[18].mxu1 %vm365_vm2, %v14508_v45 }
 0x612   : > { %10291 = vmatprep.mubr.msk.f32.mxu1 %vm365_vm2, %v14509_v46 }
 0x615   : > { %10292 = vmatmul.mubr.msk.f32.gmra.mrb[20].mxu1 %vm365_vm2, %v14510_v52 }
 0x616   : > { %10294 = vmatprep.mubr.msk.f32.mxu1 %vm365_vm2, %v14511_v27 }
 0x619   : > { %10295 = vmatmul.mubr.msk.f32.gmra.mrb[22].mxu1 %vm365_vm2, %v14512_v44 }
 0x61a   : > { %10297 = vmatprep.mubr.msk.f32.mxu1 %vm365_vm2, %v14513_v4 }
 0x61d   : > { %10298 = vmatmul.mubr.msk.f32.gmra.mrb[24].mxu1 %vm365_vm2, %v14514_v49 }
 0x61e   : > { %10300 = vmatprep.mubr.msk.f32.mxu1 %vm365_vm2, %v14515_v63 }
 0x621   : > { %10301 = vmatmul.mubr.msk.f32.gmra.mrb[26].mxu1 %vm365_vm2, %v14516_v33 }
 0x622   : > { %10303 = vmatprep.mubr.msk.f32.mxu1 %vm365_vm2, %v14517_v54 }
 0x625   : > { %10304 = vmatmul.mubr.msk.f32.gmra.mrb[28].mxu1 %vm365_vm2, %v13395_v50 }
 0x626   : > { %10306 = vmatprep.mubr.msk.f32.mxu1 %vm365_vm2, %v6881_v47 }
 0x629   : > { %10307 = vmatmul.mubr.msk.f32.gmra.mrb[30].mxu1 %vm365_vm2, %v6882_v57 }
 0x62a   : > { %10317 = vmatprep.mubr.msk.f32.mxu1 %vm365_vm2, %v14481_v43 }
 0x62d   : > { %10318 = vmatmul.mubr.msk.f32.vlgmr.msra.gmra.mrb[0].mxu1 %vm365_vm2, %v14482_v6  ;;  %v14526_v6 = vld [vmem:[#allocation66_spill] sm:$0xff] }
 0x62e   : > { %10320 = vmatprep.mubr.msk.f32.mxu1 %vm365_vm2, %v14483_v5  ;;  %v14525_v5 = vld [vmem:[#allocation65_spill] sm:$0xff] }
 0x631   : > { %10321 = vmatmul.mubr.msk.f32.gmra.mrb[2].mxu1 %vm365_vm2, %v14518_v59 }
 0x632   : > { %10323 = vmatprep.mubr.msk.f32.mxu1 %vm365_vm2, %v14519_v61 }
 0x635   : > { %10324 = vmatmul.mubr.msk.f32.gmra.mrb[4].mxu1 %vm365_vm2, %v14520_v15 }
 0x636   : > { %10326 = vmatprep.mubr.msk.f32.mxu1 %vm365_vm2, %v14521_v18 }
 0x639   : > { %10327 = vmatmul.mubr.msk.f32.gmra.mrb[6].mxu1 %vm365_vm2, %v14522_v48 }
 0x63a   : > { %10329 = vmatprep.mubr.msk.f32.mxu1 %vm365_vm2, %v14523_v30 }
 0x63d   : > { %10330 = vmatmul.mubr.msk.f32.gmra.mrb[8].mxu1 %vm365_vm2, %v14524_v3 }
 0x63e   : > { %10332 = vmatprep.mubr.msk.f32.mxu1 %vm365_vm2, %v14525_v5 }
 0x641   : > { %10333 = vmatmul.mubr.msk.f32.gmra.mrb[10].mxu1 %vm365_vm2, %v14526_v6 }
 0x642   : > { %10335 = vmatprep.mubr.msk.f32.mxu1 %vm365_vm2, %v14527_v60 }
 0x645   : > { %10336 = vmatmul.mubr.msk.f32.gmra.mrb[12].mxu1 %vm365_vm2, %v14528_v32 }
 0x646   : > { %10338 = vmatprep.mubr.msk.f32.mxu1 %vm365_vm2, %v14529_v1 }
 0x649   : > { %10339 = vmatmul.mubr.msk.f32.gmra.mrb[14].mxu1 %vm365_vm2, %v14530_v2 }
 0x64a   : > { %10341 = vmatprep.mubr.msk.f32.mxu1 %vm365_vm2, %v14531_v10 }
 0x64d   : > { %10342 = vmatmul.mubr.msk.f32.gmra.mrb[16].mxu1 %vm365_vm2, %v14498_v21 }
 0x64e   : > { %10344 = vmatprep.mubr.msk.f32.mxu1 %vm365_vm2, %v14532_v14 }
 0x651   : > { %10345 = vmatmul.mubr.msk.f32.gmra.mrb[18].mxu1 %vm365_vm2, %v14500_v38 }
 0x652   : > { %10347 = vmatprep.mubr.msk.f32.mxu1 %vm365_vm2, %v14533_v28 }
 0x655   : > { %10348 = vmatmul.mubr.msk.f32.gmra.mrb[20].mxu1 %vm365_vm2, %v14534_v9 }
 0x656   : > { %10350 = vmatprep.mubr.msk.f32.mxu1 %vm365_vm2, %v14535_v41 }
 0x659   : > { %10351 = vmatmul.mubr.msk.f32.gmra.mrb[22].mxu1 %vm365_vm2, %v14536_v62 }
 0x65a   : > { %10353 = vmatprep.mubr.msk.f32.mxu1 %vm365_vm2, %v14537_v20 }
 0x65d   : > { %10354 = vmatmul.mubr.msk.f32.gmra.mrb[24].mxu1 %vm365_vm2, %v14538_v51 }
 0x65e   : > { %10356 = vmatprep.mubr.msk.f32.mxu1 %vm365_vm2, %v14539_v13 }
 0x661   : > { %10357 = vmatmul.mubr.msk.f32.gmra.mrb[26].mxu1 %vm365_vm2, %v13258_v37 }
 0x662   : > { %10359 = vmatprep.mubr.msk.f32.mxu1 %vm365_vm2, %v14540_v11 }
 0x665   : > { %10360 = vmatmul.mubr.msk.f32.gmra.mrb[28].mxu1 %vm365_vm2, %v13463_v39 }
 0x666   : > { %10362 = vmatprep.mubr.msk.f32.mxu1 %vm365_vm2, %v7271_v24 }
 0x669   : > { %10363 = vmatmul.mubr.msk.f32.gmra.mrb[30].mxu1 %vm365_vm2, %v7272_v25 }
 0x700   : > { %v10319_v34 = vpop.f32.mrb[0].mxu1 }
 0x701   : > { %v13659_v36 = vadd.f32 %v10319_v34, %v13656_v22  ;;  %v7440_v29 = vpop.f32.mrb[1].mxu1 }
 0x702   : > { %v13662_v55 = vadd.f32 %v13656_v22, %v7440_v29 }
 0x703   : > { %v7671_v7 = vsel %vm365_vm2, %v13659_v36, 0.0 }
 0x704   : > { %v7670_v8 = vsel %vm365_vm2, %v13662_v55, 0.0  ;;  %v10322_v42 = vpop.f32.mrb[2].mxu1 }
 0x705   : > { %v7450_v37 = vpop.f32.mrb[3].mxu1  ;;  %v13669_v35 = vadd.f32 %v10322_v42, %v13656_v22  ;;  %v7672_v50 = vadd.f32 %v7671_v7, %v7670_v8 }
 0x706   : > { %v13672_v26 = vadd.f32 %v13656_v22, %v7450_v37 }
 0x707   : > { %v7675_v17 = vsel %vm365_vm2, %v13669_v35, 0.0 }
 0x708   : > { %v7673_v43 = vsel %vm365_vm2, %v13672_v26, 0.0  ;;  %v10325_v31 = vpop.f32.mrb[4].mxu1 }
 0x709   : > { %v7674_v38 = vadd.f32 %v7673_v43, %v7672_v50  ;;  %v7460_v19 = vpop.f32.mrb[5].mxu1  ;;  %v13679_v39 = vadd.f32 %v10325_v31, %v13656_v22 }
 0x70a   : > { %v13682_v40 = vadd.f32 %v13656_v22, %v7460_v19 }
 0x70b   : > { %v7676_v56 = vadd.f32 %v7675_v17, %v7674_v38  ;;  %v7679_v23 = vsel %vm365_vm2, %v13679_v39, 0.0 }
 0x70c   : > { %v7677_v21 = vsel %vm365_vm2, %v13682_v40, 0.0  ;;  %v10328_v53 = vpop.f32.mrb[6].mxu1 }
 0x70d   : > { %v7678_v58 = vadd.f32 %v7677_v21, %v7676_v56  ;;  %v7470_v12 = vpop.f32.mrb[7].mxu1  ;;  %v13689_v0 = vadd.f32 %v10328_v53, %v13656_v22 }
 0x70e   : > { %v13692_v16 = vadd.f32 %v13656_v22, %v7470_v12 }
 0x70f   : > { %v7680_v45 = vadd.f32 %v7679_v23, %v7678_v58  ;;  %v7683_v4 = vsel %vm365_vm2, %v13689_v0, 0.0 }
 0x710   : > { %v7681_v46 = vsel %vm365_vm2, %v13692_v16, 0.0  ;;  %v10331_v52 = vpop.f32.mrb[8].mxu1 }
 0x711   : > { %v7682_v27 = vadd.f32 %v7681_v46, %v7680_v45  ;;  %v7480_v44 = vpop.f32.mrb[9].mxu1  ;;  %v13699_v49 = vadd.f32 %v10331_v52, %v13656_v22 }
 0x712   : > { %v13702_v63 = vadd.f32 %v13656_v22, %v7480_v44 }
 0x713   : > { %v7684_v33 = vadd.f32 %v7683_v4, %v7682_v27  ;;  %v7687_v61 = vsel %vm365_vm2, %v13699_v49, 0.0 }
 0x714   : > { %v7685_v54 = vsel %vm365_vm2, %v13702_v63, 0.0  ;;  %v10334_v47 = vpop.f32.mrb[10].mxu1 }
 0x715   : > { %v7686_v57 = vadd.f32 %v7685_v54, %v7684_v33  ;;  %v7490_v59 = vpop.f32.mrb[11].mxu1  ;;  %v13709_v15 = vadd.f32 %v10334_v47, %v13656_v22 }
 0x716   : > { %v13712_v18 = vadd.f32 %v13656_v22, %v7490_v59 }
 0x717   : > { %v7688_v48 = vadd.f32 %v7687_v61, %v7686_v57  ;;  %v7691_v60 = vsel %vm365_vm2, %v13709_v15, 0.0 }
 0x718   : > { %v7689_v30 = vsel %vm365_vm2, %v13712_v18, 0.0  ;;  %v10337_v3 = vpop.f32.mrb[12].mxu1 }
 0x719   : > { %v7690_v5 = vadd.f32 %v7689_v30, %v7688_v48  ;;  %v7500_v6 = vpop.f32.mrb[13].mxu1  ;;  %v13719_v32 = vadd.f32 %v10337_v3, %v13656_v22 }
 0x71a   : > { %v13722_v1 = vadd.f32 %v13656_v22, %v7500_v6 }
 0x71b   : > { %v7692_v2 = vadd.f32 %v7691_v60, %v7690_v5  ;;  %v7695_v41 = vsel %vm365_vm2, %v13719_v32, 0.0 }
 0x71c   : > { %v7693_v10 = vsel %vm365_vm2, %v13722_v1, 0.0  ;;  %v10340_v14 = vpop.f32.mrb[14].mxu1 }
 0x71d   : > { %v7694_v28 = vadd.f32 %v7693_v10, %v7692_v2  ;;  %v7510_v9 = vpop.f32.mrb[15].mxu1  ;;  %v13729_v62 = vadd.f32 %v10340_v14, %v13656_v22 }
 0x71e   : > { %v13732_v20 = vadd.f32 %v13656_v22, %v7510_v9 }
 0x71f   : > { %v7696_v51 = vadd.f32 %v7695_v41, %v7694_v28  ;;  %v7699_v34 = vsel %vm365_vm2, %v13729_v62, 0.0 }
 0x720   : > { %v7697_v13 = vsel %vm365_vm2, %v13732_v20, 0.0  ;;  %v10343_v11 = vpop.f32.mrb[16].mxu1 }
 0x721   : > { %v7698_v24 = vadd.f32 %v7697_v13, %v7696_v51  ;;  %v7520_v25 = vpop.f32.mrb[17].mxu1  ;;  %v13739_v29 = vadd.f32 %v10343_v11, %v13656_v22 }
 0x722   : > { %v13742_v7 = vadd.f32 %v13656_v22, %v7520_v25 }
 0x723   : > { %v7700_v8 = vadd.f32 %v7699_v34, %v7698_v24  ;;  %v7703_v31 = vsel %vm365_vm2, %v13739_v29, 0.0 }
 0x724   : > { %v7701_v42 = vsel %vm365_vm2, %v13742_v7, 0.0  ;;  %v10346_v37 = vpop.f32.mrb[18].mxu1 }
 0x725   : > { %v7702_v50 = vadd.f32 %v7701_v42, %v7700_v8  ;;  %v7530_v43 = vpop.f32.mrb[19].mxu1  ;;  %v13749_v38 = vadd.f32 %v10346_v37, %v13656_v22 }
 0x726   : > { %v13752_v19 = vadd.f32 %v13656_v22, %v7530_v43 }
 0x727   : > { %v7704_v17 = vadd.f32 %v7703_v31, %v7702_v50  ;;  %v7707_v12 = vsel %vm365_vm2, %v13749_v38, 0.0 }
 0x728   : > { %v7705_v56 = vsel %vm365_vm2, %v13752_v19, 0.0  ;;  %v10349_v21 = vpop.f32.mrb[20].mxu1 }
 0x729   : > { %v7706_v53 = vadd.f32 %v7705_v56, %v7704_v17  ;;  %v7540_v58 = vpop.f32.mrb[21].mxu1  ;;  %v13759_v23 = vadd.f32 %v10349_v21, %v13656_v22 }
 0x72a   : > { %v13762_v45 = vadd.f32 %v13656_v22, %v7540_v58 }
 0x72b   : > { %v7708_v46 = vadd.f32 %v7707_v12, %v7706_v53  ;;  %v7711_v33 = vsel %vm365_vm2, %v13759_v23, 0.0 }
 0x72c   : > { %v7709_v52 = vsel %vm365_vm2, %v13762_v45, 0.0  ;;  %v10352_v27 = vpop.f32.mrb[22].mxu1 }
 0x72d   : > { %v7710_v44 = vadd.f32 %v7709_v52, %v7708_v46  ;;  %v7550_v4 = vpop.f32.mrb[23].mxu1  ;;  %v7661_v54 = vadd.f32 %v10352_v27, %v13656_v22 }
 0x72e   : > { %v7660_v47 = vadd.f32 %v13656_v22, %v7550_v4 }
 0x72f   : > { %v7712_v57 = vadd.f32 %v7711_v33, %v7710_v44  ;;  %v7715_v3 = vsel %vm365_vm2, %v7661_v54, 0.0 }
 0x730   : > { %v7713_v59 = vsel %vm365_vm2, %v7660_v47, 0.0  ;;  %v10355_v61 = vpop.f32.mrb[24].mxu1 }
 0x731   : > { %v7714_v48 = vadd.f32 %v7713_v59, %v7712_v57  ;;  %v7560_v30 = vpop.f32.mrb[25].mxu1  ;;  %v7663_v5 = vadd.f32 %v10355_v61, %v13656_v22 }
 0x732   : > { %v7662_v6 = vadd.f32 %v13656_v22, %v7560_v30 }
 0x733   : > { %v7716_v60 = vadd.f32 %v7715_v3, %v7714_v48  ;;  %v7719_v9 = vsel %vm365_vm2, %v7663_v5, 0.0 }
 0x734   : > { %v7717_v2 = vsel %vm365_vm2, %v7662_v6, 0.0  ;;  %v10358_v10 = vpop.f32.mrb[26].mxu1 }
 0x735   : > { %v7718_v14 = vadd.f32 %v7717_v2, %v7716_v60  ;;  %v7570_v28 = vpop.f32.mrb[27].mxu1  ;;  %v7665_v41 = vadd.f32 %v10358_v10, %v13656_v22 }
 0x736   : > { %v7664_v51 = vadd.f32 %v13656_v22, %v7570_v28 }
 0x737   : > { %v7720_v13 = vadd.f32 %v7719_v9, %v7718_v14  ;;  %v7723_v8 = vsel %vm365_vm2, %v7665_v41, 0.0 }
 0x738   : > { %v7721_v11 = vsel %vm365_vm2, %v7664_v51, 0.0  ;;  %v10361_v24 = vpop.f32.mrb[28].mxu1 }
 0x739   : > { %v7722_v25 = vadd.f32 %v7721_v11, %v7720_v13  ;;  %v7580_v34 = vpop.f32.mrb[29].mxu1  ;;  %v7667_v42 = vadd.f32 %v10361_v24, %v13656_v22 }
 0x73a   : > { %v7666_v37 = vadd.f32 %v13656_v22, %v7580_v34 }
 0x73b   : > { %v7724_v50 = vadd.f32 %v7723_v8, %v7722_v25  ;;  %v7727_v21 = vsel %vm365_vm2, %v7667_v42, 0.0 }
 0x73c   : > { %v7725_v43 = vsel %vm365_vm2, %v7666_v37, 0.0  ;;  %v10364_v31 = vpop.f32.mrb[30].mxu1 }
 0x73d   : > { %v7726_v17 = vadd.f32 %v7725_v43, %v7724_v50  ;;  %v7590_v56 = vpop.f32.mrb[31].mxu1  ;;  %v7669_v53 = vadd.f32 %v10364_v31, %v13656_v22 }
 0x73e   : > { %v7668_v58 = vadd.f32 %v13656_v22, %v7590_v56 }
 0x73f   : > { %v7728_v12 = vadd.f32 %v7727_v21, %v7726_v17  ;;  %v7731_v27 = vsel %vm365_vm2, %v7669_v53, 0.0 }
 0x740   : > { %v7729_v46 = vsel %vm365_vm2, %v7668_v58, 0.0 }
 0x741   : > { %v7730_v52 = vadd.f32 %v7729_v46, %v7728_v12 }
 0x743   : > { %v7732_v44 = vadd.f32 %v7731_v27, %v7730_v52 }
 0x745   : > { %v7733_v4 = vrot.slane %v7732_v44, 4 }
 0x747   : > { %v7734_v33 = vadd.f32 %v7733_v4, %v7732_v44 }
 0x749   : > { %v7735_v57 = vrot.slane %v7734_v33, 2 }
 0x74b   : > { %v7736_v59 = vadd.f32 %v7735_v57, %v7734_v33 }
 0x74d   : > { %v7737_v61 = vrot.slane %v7736_v59, 1 }
 0x74f   : > { %v7738_v48 = vadd.f32 %v7737_v61, %v7736_v59 }
 0x751   : > { %v7739_v30 = vmul.f32 0.00390625, %v7738_v48 }
 0x753   : > { %v13789_v3 = vsub.f32 %v13712_v18, %v7739_v30  ;;  %v13792_v60 = vsub.f32 %v13709_v15, %v7739_v30  ;;  %v13795_v22 = vsub.f32 %v13722_v1, %v7739_v30  ;;  %v13798_v2 = vsub.f32 %v13719_v32, %v7739_v30 }
 0x754   : > { %v13801_v10 = vsub.f32 %v13732_v20, %v7739_v30  ;;  %v13804_v14 = vsub.f32 %v13729_v62, %v7739_v30  ;;  %v13807_v28 = vsub.f32 %v13742_v7, %v7739_v30  ;;  %v13810_v18 = vsub.f32 %v13739_v29, %v7739_v30 }
 0x755   : > { %v13813_v15 = vsub.f32 %v13752_v19, %v7739_v30  ;;  %v13816_v1 = vsub.f32 %v13749_v38, %v7739_v30  ;;  %v13819_v32 = vsub.f32 %v13762_v45, %v7739_v30  ;;  %v13822_v20 = vsub.f32 %v13759_v23, %v7739_v30 }
 0x756   : > { %v13824_v62 = vsub.f32 %v7660_v47, %v7739_v30  ;;  %v13826_v9 = vsub.f32 %v7661_v54, %v7739_v30  ;;  %v13828_v7 = vsub.f32 %v7662_v6, %v7739_v30  ;;  %v13830_v29 = vsub.f32 %v7663_v5, %v7739_v30 }
 0x757   : > { %v13832_v13 = vsub.f32 %v7664_v51, %v7739_v30  ;;  %v13834_v19 = vsub.f32 %v7665_v41, %v7739_v30  ;;  %v13836_v38 = vsub.f32 %v7666_v37, %v7739_v30  ;;  %v13838_v11 = vsub.f32 %v7667_v42, %v7739_v30 }
 0x758   : > { %v13840_v45 = vsub.f32 %v7668_v58, %v7739_v30  ;;  %v13842_v23 = vsub.f32 %v7669_v53, %v7739_v30  ;;  %v13845_v47 = vsub.f32 %v13662_v55, %v7739_v30  ;;  %v13848_v54 = vsub.f32 %v13659_v36, %v7739_v30 }
 0x759   : > { %v13851_v5 = vsub.f32 %v13672_v26, %v7739_v30  ;;  %v13854_v6 = vsub.f32 %v13669_v35, %v7739_v30  ;;  %v13861_v24 = vsub.f32 %v13682_v40, %v7739_v30  ;;  %v13866_v36 = vsub.f32 %v13679_v39, %v7739_v30 }
 0x75a   : > { %v7772_v41 = vmul.f32 %v13845_v47, %v13845_v47  ;;  %v7773_v51 = vmul.f32 %v13848_v54, %v13848_v54  ;;  %v13873_v8 = vsub.f32 %v13692_v16, %v7739_v30  ;;  %v13879_v39 = vsub.f32 %v13689_v0, %v7739_v30 }
 0x75b   : > { %v7774_v55 = vmul.f32 %v13851_v5, %v13851_v5  ;;  %v7775_v26 = vmul.f32 %v13854_v6, %v13854_v6  ;;  %v7776_v40 = vmul.f32 %v13861_v24, %v13861_v24  ;;  %v7777_v50 = vmul.f32 %v13866_v36, %v13866_v36 }
 0x75c   : > { %v7804_v35 = vsel %vm365_vm2, %v7772_v41, 0.0  ;;  %v7805_v25 = vsel %vm365_vm2, %v7773_v51, 0.0  ;;  %v13885_v17 = vsub.f32 %v13702_v63, %v7739_v30  ;;  %v7778_v16 = vmul.f32 %v13873_v8, %v13873_v8 }
 0x75d   : > { %v7806_v34 = vadd.f32 %v7805_v25, %v7804_v35  ;;  %v7807_v42 = vsel %vm365_vm2, %v7774_v55, 0.0  ;;  %v7809_v43 = vsel %vm365_vm2, %v7775_v26, 0.0  ;;  %v7811_v56 = vsel %vm365_vm2, %v7776_v40, 0.0 }
 0x75e   : > { %v13891_v53 = vsub.f32 %v13699_v49, %v7739_v30  ;;  %v7779_v0 = vmul.f32 %v13879_v39, %v13879_v39  ;;  %v7813_v58 = vsel %vm365_vm2, %v7777_v50, 0.0  ;;  %v7780_v46 = vmul.f32 %v13885_v17, %v13885_v17 }
 0x75f   : > { %v7808_v37 = vadd.f32 %v7807_v42, %v7806_v34  ;;  %v7815_v63 = vsel %vm365_vm2, %v7778_v16, 0.0  ;;  %v7782_v49 = vmul.f32 %v13789_v3, %v13789_v3  ;;  %v7783_v59 = vmul.f32 %v13792_v60, %v13792_v60 }
 0x760   : > { %v7781_v27 = vmul.f32 %v13891_v53, %v13891_v53  ;;  %v7817_v44 = vsel %vm365_vm2, %v7779_v0, 0.0  ;;  %v7819_v33 = vsel %vm365_vm2, %v7780_v46, 0.0  ;;  %v7784_v30 = vmul.f32 %v13795_v22, %v13795_v22 }
 0x761   : > { %v7810_v31 = vadd.f32 %v7809_v43, %v7808_v37  ;;  %v7823_v41 = vsel %vm365_vm2, %v7782_v49, 0.0  ;;  %v7785_v55 = vmul.f32 %v13798_v2, %v13798_v2  ;;  %v7825_v26 = vsel %vm365_vm2, %v7783_v59, 0.0 }
 0x762   : > { %v7821_v61 = vsel %vm365_vm2, %v7781_v27, 0.0  ;;  %v7786_v25 = vmul.f32 %v13801_v10, %v13801_v10  ;;  %v7827_v34 = vsel %vm365_vm2, %v7784_v30, 0.0  ;;  %v7787_v42 = vmul.f32 %v13804_v14, %v13804_v14 }
 0x763   : > { %v7812_v21 = vadd.f32 %v7811_v56, %v7810_v31  ;;  %v7829_v37 = vsel %vm365_vm2, %v7785_v55, 0.0  ;;  %v7788_v43 = vmul.f32 %v13807_v28, %v13807_v28  ;;  %v7789_v56 = vmul.f32 %v13810_v18, %v13810_v18 }
 0x764   : > { %v7831_v31 = vsel %vm365_vm2, %v7786_v25, 0.0 }
 0x765   : > { %v7814_v12 = vadd.f32 %v7813_v58, %v7812_v21  ;;  %v7833_v21 = vsel %vm365_vm2, %v7787_v42, 0.0  ;;  %v7790_v58 = vmul.f32 %v13813_v15, %v13813_v15 }
 0x767   : > { %v7816_v52 = vadd.f32 %v7815_v63, %v7814_v12  ;;  %v7835_v12 = vsel %vm365_vm2, %v7788_v43, 0.0  ;;  %v7791_v63 = vmul.f32 %v13816_v1, %v13816_v1 }
 0x769   : > { %v7818_v4 = vadd.f32 %v7817_v44, %v7816_v52  ;;  %v7837_v52 = vsel %vm365_vm2, %v7789_v56, 0.0  ;;  %v7792_v44 = vmul.f32 %v13819_v32, %v13819_v32 }
 0x76b   : > { %v7820_v57 = vadd.f32 %v7819_v33, %v7818_v4  ;;  %v7839_v4 = vsel %vm365_vm2, %v7790_v58, 0.0  ;;  %v7793_v33 = vmul.f32 %v13822_v20, %v13822_v20 }
 0x76d   : > { %v7822_v48 = vadd.f32 %v7821_v61, %v7820_v57  ;;  %v7841_v57 = vsel %vm365_vm2, %v7791_v63, 0.0  ;;  %v7794_v61 = vmul.f32 %v13824_v62, %v13824_v62 }
 0x76f   : > { %v7824_v51 = vadd.f32 %v7823_v41, %v7822_v48  ;;  %v7843_v48 = vsel %vm365_vm2, %v7792_v44, 0.0  ;;  %v7795_v41 = vmul.f32 %v13826_v9, %v13826_v9 }
 0x771   : > { %v7826_v35 = vadd.f32 %v7825_v26, %v7824_v51  ;;  %v7845_v51 = vsel %vm365_vm2, %v7793_v33, 0.0  ;;  %v7796_v26 = vmul.f32 %v13828_v7, %v13828_v7 }
 0x773   : > { %v7828_v40 = vadd.f32 %v7827_v34, %v7826_v35  ;;  %v7847_v35 = vsel %vm365_vm2, %v7794_v61, 0.0  ;;  %v7797_v34 = vmul.f32 %v13830_v29, %v13830_v29 }
 0x775   : > { %v7830_v50 = vadd.f32 %v7829_v37, %v7828_v40  ;;  %v7849_v40 = vsel %vm365_vm2, %v7795_v41, 0.0  ;;  %v7798_v37 = vmul.f32 %v13832_v13, %v13832_v13 }
 0x777   : > { %v7832_v16 = vadd.f32 %v7831_v31, %v7830_v50  ;;  %v7851_v50 = vsel %vm365_vm2, %v7796_v26, 0.0  ;;  %v7799_v31 = vmul.f32 %v13834_v19, %v13834_v19 }
 0x779   : > { %v7834_v0 = vadd.f32 %v7833_v21, %v7832_v16  ;;  %v7853_v16 = vsel %vm365_vm2, %v7797_v34, 0.0  ;;  %v7800_v21 = vmul.f32 %v13836_v38, %v13836_v38 }
 0x77b   : > { %v7836_v46 = vadd.f32 %v7835_v12, %v7834_v0  ;;  %v7855_v0 = vsel %vm365_vm2, %v7798_v37, 0.0  ;;  %v7801_v12 = vmul.f32 %v13838_v11, %v13838_v11 }
 0x77d   : > { %v7838_v27 = vadd.f32 %v7837_v52, %v7836_v46  ;;  %v7857_v46 = vsel %vm365_vm2, %v7799_v31, 0.0  ;;  %v7802_v52 = vmul.f32 %v13840_v45, %v13840_v45 }
 0x77f   : > { %v7840_v49 = vadd.f32 %v7839_v4, %v7838_v27  ;;  %v7859_v27 = vsel %vm365_vm2, %v7800_v21, 0.0  ;;  %v7803_v4 = vmul.f32 %v13842_v23, %v13842_v23 }
 0x781   : > { %v7842_v59 = vadd.f32 %v7841_v57, %v7840_v49  ;;  %v7861_v49 = vsel %vm365_vm2, %v7801_v12, 0.0  ;;  %v7863_v57 = vsel %vm365_vm2, %v7802_v52, 0.0  ;;  %v7865_v61 = vsel %vm365_vm2, %v7803_v4, 0.0  ;;  %v14541_v12 = vld [vmem:[#allocation51_spill] sm:$0xff]  ;;  %v14542_v4 = vld [vmem:[#allocation13_spill] sm:$0xff] }
 0x783   : > { %v7844_v30 = vadd.f32 %v7843_v48, %v7842_v59 }
 0x785   : > { %v7846_v55 = vadd.f32 %v7845_v51, %v7844_v30 }
 0x787   : > { %v7848_v25 = vadd.f32 %v7847_v35, %v7846_v55 }
 0x789   : > { %v7850_v42 = vadd.f32 %v7849_v40, %v7848_v25 }
 0x78b   : > { %v7852_v43 = vadd.f32 %v7851_v50, %v7850_v42 }
 0x78d   : > { %v7854_v56 = vadd.f32 %v7853_v16, %v7852_v43 }
 0x78f   : > { %v7856_v58 = vadd.f32 %v7855_v0, %v7854_v56 }
 0x791   : > { %v7858_v63 = vadd.f32 %v7857_v46, %v7856_v58 }
 0x793   : > { %v7860_v44 = vadd.f32 %v7859_v27, %v7858_v63 }
 0x795   : > { %v7862_v33 = vadd.f32 %v7861_v49, %v7860_v44 }
 0x797   : > { %v7864_v59 = vadd.f32 %v7863_v57, %v7862_v33 }
 0x799   : > { %v7866_v48 = vadd.f32 %v7865_v61, %v7864_v59 }
 0x79b   : > { %v7867_v30 = vrot.slane %v7866_v48, 4 }
 0x79d   : > { %v7868_v41 = vadd.f32 %v7867_v30, %v7866_v48 }
 0x79f   : > { %v7869_v51 = vrot.slane %v7868_v41, 2 }
 0x7a1   : > { %v7870_v55 = vadd.f32 %v7869_v51, %v7868_v41 }
 0x7a3   : > { %v7871_v26 = vrot.slane %v7870_v55, 1 }
 0x7a5   : > { %v7872_v35 = vadd.f32 %v7871_v26, %v7870_v55  ;;  %v14545_v55 = vld [vmem:[#allocation16_spill] sm:$0xff] }
 0x7a7   : > { %v7873_v25 = vmul.f32 0.00390625, %v7872_v35 }
 0x7a9   : > { %v7874_v34 = vadd.f32 1e-05, %v7873_v25 }
 0x7ab   : > { %11095 = vrsqrt.f32 %v7874_v34 }
 0x7b5   : > { %v11096_v40 = vpop.eup %11095 }
 0x7b6   : > { %v7906_v42 = vmul.f32 %v11096_v40, %v13840_v45  ;;  %v7876_v37 = vmul.f32 %v11096_v40, %v13845_v47  ;;  %v7877_v50 = vmul.f32 %v11096_v40, %v13848_v54  ;;  %v7878_v43 = vmul.f32 %v11096_v40, %v13851_v5 }
 0x7b7   : > { %v7879_v31 = vmul.f32 %v11096_v40, %v13854_v6  ;;  %v7880_v16 = vmul.f32 %v11096_v40, %v13861_v24  ;;  %v7881_v56 = vmul.f32 %v11096_v40, %v13866_v36  ;;  %v7882_v0 = vmul.f32 %v11096_v40, %v13873_v8 }
 0x7b8   : > { %v7938_v21 = vmul.f32 0.1, %v7906_v42  ;;  %v7883_v58 = vmul.f32 %v11096_v40, %v13879_v39  ;;  %v7884_v45 = vmul.f32 %v11096_v40, %v13885_v17  ;;  %v7885_v47 = vmul.f32 %v11096_v40, %v13891_v53 }
 0x7b9   : > { %v7886_v54 = vmul.f32 %v11096_v40, %v13789_v3  ;;  %v7887_v5 = vmul.f32 %v11096_v40, %v13792_v60  ;;  %v7888_v6 = vmul.f32 %v11096_v40, %v13795_v22  ;;  %v7889_v36 = vmul.f32 %v11096_v40, %v13798_v2 }
 0x7ba   : > { %v7970_v24 = vadd.f32 %v7938_v21, %v14541_v12  ;;  %v7890_v46 = vmul.f32 %v11096_v40, %v13801_v10  ;;  %v7891_v8 = vmul.f32 %v11096_v40, %v13804_v14  ;;  %v7892_v39 = vmul.f32 %v11096_v40, %v13807_v28 }
 0x7bb   : > { %v7893_v17 = vmul.f32 %v11096_v40, %v13810_v18  ;;  %v7894_v53 = vmul.f32 %v11096_v40, %v13813_v15  ;;  %v7895_v3 = vmul.f32 %v11096_v40, %v13816_v1  ;;  %v7896_v60 = vmul.f32 %v11096_v40, %v13819_v32 }
 0x7bc   : > { %8002 = vst.msk [vmem:[%s11490_s26 + $0xf0] sm:$0xff] %vm365_vm2, %v7970_v24  ;;  %v7897_v22 = vmul.f32 %v11096_v40, %v13822_v20  ;;  %v7898_v2 = vmul.f32 %v11096_v40, %v13824_v62  ;;  %v7900_v10 = vmul.f32 %v11096_v40, %v13828_v7  ;;  %v7901_v14 = vmul.f32 %v11096_v40, %v13830_v29 }
 0x7bd   : > { %v7902_v28 = vmul.f32 %v11096_v40, %v13832_v13  ;;  %v7903_v18 = vmul.f32 %v11096_v40, %v13834_v19  ;;  %v7904_v15 = vmul.f32 %v11096_v40, %v13836_v38  ;;  %v7905_v1 = vmul.f32 %v11096_v40, %v13838_v11  ;;  %v14543_v11 = vld [vmem:[#allocation14_spill] sm:$0xff] }
 0x7be   : > { %v7907_v63 = vmul.f32 %v11096_v40, %v13842_v23  ;;  %v7908_v52 = vmul.f32 0.1, %v7876_v37  ;;  %v7909_v32 = vmul.f32 0.1, %v7877_v50  ;;  %v7899_v20 = vmul.f32 %v11096_v40, %v13826_v9  ;;  %v14544_v9 = vld [vmem:[#allocation15_spill] sm:$0xff]  ;;  %v14546_v40 = vld [vmem:[#allocation17_spill] sm:$0xff] }
 0x7bf   : > { %v7910_v62 = vmul.f32 0.1, %v7878_v43  ;;  %v7911_v27 = vmul.f32 0.1, %v7879_v31  ;;  %v7912_v7 = vmul.f32 0.1, %v7880_v16 }
 0x7c0   : > { %v7913_v44 = vmul.f32 0.1, %v7881_v56  ;;  %v7914_v29 = vmul.f32 0.1, %v7882_v0  ;;  %v7915_v13 = vmul.f32 0.1, %v7883_v58  ;;  %v7940_v19 = vadd.f32 %v7908_v52, %v14542_v4 }
 0x7c1   : > { %v7916_v49 = vmul.f32 0.1, %v7884_v45  ;;  %v7917_v38 = vmul.f32 0.1, %v7885_v47  ;;  %v7918_v33 = vmul.f32 0.1, %v7886_v54  ;;  %v7941_v23 = vadd.f32 %v7909_v32, %v14543_v11 }
 0x7c2   : > { %v7919_v57 = vmul.f32 0.1, %v7887_v5  ;;  %v7920_v59 = vmul.f32 0.1, %v7888_v6  ;;  %v7921_v61 = vmul.f32 0.1, %v7889_v36  ;;  %v7942_v48 = vadd.f32 %v7910_v62, %v14544_v9 }
 0x7c3   : > { %7972 = vst.msk [vmem:[%s11490_s26] sm:$0xff] %vm365_vm2, %v7940_v19  ;;  %v7922_v30 = vmul.f32 0.1, %v7890_v46  ;;  %v7923_v41 = vmul.f32 0.1, %v7891_v8  ;;  %v7943_v26 = vadd.f32 %v7911_v27, %v14545_v55  ;;  %7973 = vst.msk [vmem:[%s11490_s26 + $0x8] sm:$0xff] %vm365_vm2, %v7941_v23  ;;  %v7944_v42 = vadd.f32 %v7912_v7, %v14546_v40 }
 0x7c4   : > { %v7924_v51 = vmul.f32 0.1, %v7892_v39  ;;  %v7925_v35 = vmul.f32 0.1, %v7893_v17  ;;  %v7926_v25 = vmul.f32 0.1, %v7894_v53 }
 0x7c5   : > { %v7927_v34 = vmul.f32 0.1, %v7895_v3  ;;  %7974 = vst.msk [vmem:[%s11490_s26 + $0x10] sm:$0xff] %vm365_vm2, %v7942_v48  ;;  %v7928_v37 = vmul.f32 0.1, %v7896_v60  ;;  %v14547_v31 = vld [vmem:[#allocation18_spill] sm:$0xff] }
 0x7c6   : > { %v7929_v50 = vmul.f32 0.1, %v7897_v22  ;;  %v7930_v43 = vmul.f32 0.1, %v7898_v2  ;;  %v7945_v16 = vadd.f32 %v7913_v44, %v14547_v31  ;;  %7975 = vst.msk [vmem:[%s11490_s26 + $0x18] sm:$0xff] %vm365_vm2, %v7943_v26  ;;  %v14548_v58 = vld [vmem:[#allocation19_spill] sm:$0xff] }
 0x7c7   : > { %v7931_v56 = vmul.f32 0.1, %v7899_v20  ;;  %v7932_v21 = vmul.f32 0.1, %v7900_v10  ;;  %v7933_v0 = vmul.f32 0.1, %v7901_v14  ;;  %v7946_v45 = vadd.f32 %v7914_v29, %v14548_v58 }
 0x7c8   : > { %7976 = vst.msk [vmem:[%s11490_s26 + $0x20] sm:$0xff] %vm365_vm2, %v7944_v42  ;;  %v7934_v47 = vmul.f32 0.1, %v7902_v28  ;;  %v7935_v54 = vmul.f32 0.1, %v7903_v18  ;;  %v14549_v6 = vld [vmem:[#allocation20_spill] sm:$0xff] }
 0x7c9   : > { %v7936_v5 = vmul.f32 0.1, %v7904_v15  ;;  %v7947_v12 = vadd.f32 %v7915_v13, %v14549_v6  ;;  %7977 = vst.msk [vmem:[%s11490_s26 + $0x28] sm:$0xff] %vm365_vm2, %v7945_v16  ;;  %v7937_v24 = vmul.f32 0.1, %v7905_v1  ;;  %v14550_v46 = vld [vmem:[#allocation21_spill] sm:$0xff] }
 0x7ca   : > { %v7939_v36 = vmul.f32 0.1, %v7907_v63  ;;  %v7948_v8 = vadd.f32 %v7916_v49, %v14550_v46  ;;  %v14551_v39 = vld [vmem:[#allocation22_spill] sm:$0xff]  ;;  %7978 = vst.msk [vmem:[%s11490_s26 + $0x30] sm:$0xff] %vm365_vm2, %v7946_v45  ;;  %v14552_v53 = vld [vmem:[#allocation23_spill] sm:$0xff]  ;;  %v14553_v60 = vld [vmem:[#allocation24_spill] sm:$0xff] }
 0x7cb   : > { %v7949_v17 = vadd.f32 %v7917_v38, %v14551_v39  ;;  %v7950_v3 = vadd.f32 %v7918_v33, %v14552_v53  ;;  %v7951_v22 = vadd.f32 %v7919_v57, %v14553_v60  ;;  %v14554_v2 = vld [vmem:[#allocation25_spill] sm:$0xff]  ;;  %v14555_v14 = vld [vmem:[#allocation26_spill] sm:$0xff]  ;;  %7979 = vst.msk [vmem:[%s11490_s26 + $0x38] sm:$0xff] %vm365_vm2, %v7947_v12  ;;  %v14556_v18 = vld [vmem:[#allocation27_spill] sm:$0xff] }
 0x7cc   : > { %v7952_v10 = vadd.f32 %v7920_v59, %v14554_v2  ;;  %v7953_v28 = vadd.f32 %v7921_v61, %v14555_v14  ;;  %v7954_v15 = vadd.f32 %v7922_v30, %v14556_v18  ;;  %v14557_v1 = vld [vmem:[#allocation28_spill] sm:$0xff]  ;;  %v14558_v52 = vld [vmem:[#allocation29_spill] sm:$0xff]  ;;  %v14559_v20 = vld [vmem:[#allocation30_spill] sm:$0xff]  ;;  %7980 = vst.msk [vmem:[%s11490_s26 + $0x40] sm:$0xff] %vm365_vm2, %v7948_v8 }
 0x7cd   : > { %v7955_v63 = vadd.f32 %v7923_v41, %v14557_v1  ;;  %v7956_v32 = vadd.f32 %v7924_v51, %v14558_v52  ;;  %v7957_v62 = vadd.f32 %v7925_v35, %v14559_v20  ;;  %7981 = vst.msk [vmem:[%s11490_s26 + $0x48] sm:$0xff] %vm365_vm2, %v7949_v17  ;;  %v14560_v27 = vld [vmem:[#allocation31_spill] sm:$0xff]  ;;  %v14561_v44 = vld [vmem:[#allocation32_spill] sm:$0xff]  ;;  %v14562_v13 = vld [vmem:[#allocation33_spill] sm:$0xff] }
 0x7ce   : > { %v7958_v7 = vadd.f32 %v7926_v25, %v14560_v27  ;;  %v7959_v29 = vadd.f32 %v7927_v34, %v14561_v44  ;;  %v7960_v4 = vadd.f32 %v7928_v37, %v14562_v13  ;;  %v14563_v19 = vld [vmem:[#allocation34_spill] sm:$0xff]  ;;  %7982 = vst.msk [vmem:[%s11490_s26 + $0x50] sm:$0xff] %vm365_vm2, %v7950_v3  ;;  %7983 = vst.msk [vmem:[%s11490_s26 + $0x58] sm:$0xff] %vm365_vm2, %v7951_v22  ;;  %v14564_v38 = vld [vmem:[#allocation35_spill] sm:$0xff] }
 0x7cf   : > { %v7961_v49 = vadd.f32 %v7929_v50, %v14563_v19  ;;  %7984 = vst.msk [vmem:[%s11490_s26 + $0x60] sm:$0xff] %vm365_vm2, %v7952_v10  ;;  %7985 = vst.msk [vmem:[%s11490_s26 + $0x68] sm:$0xff] %vm365_vm2, %v7953_v28  ;;  %v7962_v33 = vadd.f32 %v7930_v43, %v14564_v38  ;;  %v14565_v11 = vld [vmem:[#allocation36_spill] sm:$0xff]  ;;  %v14566_v57 = vld [vmem:[#allocation37_spill] sm:$0xff] }
 0x7d0   : > { %v7963_v23 = vadd.f32 %v7931_v56, %v14565_v11  ;;  %v7964_v59 = vadd.f32 %v7932_v21, %v14566_v57  ;;  %v14567_v61 = vld [vmem:[#allocation38_spill] sm:$0xff]  ;;  %7986 = vst.msk [vmem:[%s11490_s26 + $0x70] sm:$0xff] %vm365_vm2, %v7954_v15  ;;  %7987 = vst.msk [vmem:[%s11490_s26 + $0x78] sm:$0xff] %vm365_vm2, %v7955_v63  ;;  %v14568_v48 = vld [vmem:[#allocation39_spill] sm:$0xff] }
 0x7d1   : > { %v7965_v9 = vadd.f32 %v7933_v0, %v14567_v61  ;;  %7988 = vst.msk [vmem:[%s11490_s26 + $0x80] sm:$0xff] %vm365_vm2, %v7956_v32  ;;  %7989 = vst.msk [vmem:[%s11490_s26 + $0x88] sm:$0xff] %vm365_vm2, %v7957_v62  ;;  %v7966_v30 = vadd.f32 %v7934_v47, %v14568_v48  ;;  %v14569_v41 = vld [vmem:[#allocation40_spill] sm:$0xff]  ;;  %v14570_v55 = vld [vmem:[#allocation41_spill] sm:$0xff] }
 0x7d2   : > { %v7967_v51 = vadd.f32 %v7935_v54, %v14569_v41  ;;  %v7968_v26 = vadd.f32 %v7936_v5, %v14570_v55  ;;  %v14571_v35 = vld [vmem:[#allocation42_spill] sm:$0xff]  ;;  %7990 = vst.msk [vmem:[%s11490_s26 + $0x90] sm:$0xff] %vm365_vm2, %v7958_v7  ;;  %7991 = vst.msk [vmem:[%s11490_s26 + $0x98] sm:$0xff] %vm365_vm2, %v7959_v29  ;;  %v14572_v34 = vld [vmem:[#allocation52_spill] sm:$0xff] }
 0x7d3   : > { %v7969_v25 = vadd.f32 %v7937_v24, %v14571_v35  ;;  %7992 = vst.msk [vmem:[%s11490_s26 + $0xa0] sm:$0xff] %vm365_vm2, %v7960_v4  ;;  %7993 = vst.msk [vmem:[%s11490_s26 + $0xa8] sm:$0xff] %vm365_vm2, %v7961_v49  ;;  %v7971_v40 = vadd.f32 %v7939_v36, %v14572_v34 }
 0x7d4   : > { %7994 = vst.msk [vmem:[%s11490_s26 + $0xb0] sm:$0xff] %vm365_vm2, %v7962_v33  ;;  %7995 = vst.msk [vmem:[%s11490_s26 + $0xb8] sm:$0xff] %vm365_vm2, %v7963_v23 }
 0x7d5   : > { %7996 = vst.msk [vmem:[%s11490_s26 + $0xc0] sm:$0xff] %vm365_vm2, %v7964_v59  ;;  %7997 = vst.msk [vmem:[%s11490_s26 + $0xc8] sm:$0xff] %vm365_vm2, %v7965_v9 }
 0x7d6   : > { %7998 = vst.msk [vmem:[%s11490_s26 + $0xd0] sm:$0xff] %vm365_vm2, %v7966_v30  ;;  %7999 = vst.msk [vmem:[%s11490_s26 + $0xd8] sm:$0xff] %vm365_vm2, %v7967_v51 }
 0x7d7   : > { %8000 = vst.msk [vmem:[%s11490_s26 + $0xe0] sm:$0xff] %vm365_vm2, %v7968_v26  ;;  %8001 = vst.msk [vmem:[%s11490_s26 + $0xe8] sm:$0xff] %vm365_vm2, %v7969_v25 }
 0x7d8   : > { %8003 = vst.msk [vmem:[%s11490_s26 + $0xf8] sm:$0xff] %vm365_vm2, %v7971_v40 }
 0x7d9   : > { %11196 = shalt.err (!%p11193_p0)
}
 0x7da   : > { %s11197_s9 = scalar_lea.hbm %s14084_s30, 4096  ;;  %s11201_s15 = scalar_lea.hbm %s14154_s5, 8192 }
 0x7db   : > { %p11198_p6 = scmp.ne.s32.totalorder %s14084_s30, %s11197_s9  ;;  %p11202_p5 = scmp.lt.u32.totalorder %s14084_s30, %s14154_s5 }
 0x7dc   : > { %p11203_p9 = scmp.lt.u32.totalorder %s11201_s15, %s11197_s9  ;;  %p11205_p3 = scmp.lt.u32.totalorder %s11197_s9, %s14084_s30 }
 0x7dd   : > { %p11199_p8 = pnand %p11198_p6, %p14573_p2 }
 0x7de   : > { %p11204_p12 = por %p11203_p9, %p11202_p5 }
 0x7df   : > { %p11200_p4 = pneg %p11199_p8 }
 0x7e0   : > { %p11206_p11 = por %p11205_p3, %p11204_p12 }
 0x7e2   : > { %p11207_p7 = pnand %p11206_p11, %p11200_p4 }
 0x7e4   : > { %11210 = shalt.err (!%p11207_p7)
}
 0x7e5   : > { %s11262_s28 = smov 128   ;;  %s11263_s22 = smov 8  }
 0x7e6   : > { %11031 = dma.vmem_to_hbm [thread:$0]  (%p14573_p2), %s14086_s12, 4096, %s14084_s30, %s8005_s11, %s11262_s28, %s11262_s28, %s11263_s22  }
 0x7e7 PF: > { %s8033_s13 = sand.u32 1, %s11241_s18   ;;  %p14574_p10 = scmp.ne.s32.totalorder %s14322_s25, 0 }
 0x7e8   : > { %p14575_p13 = scmp.ge.s32.totalorder %s11253_s21, 2  ;;  %s8034_s17 = scalar_lea.sflag [#allocation5], %s8033_s13 }
 0x7ea   : > { %p11045_p1 = pnand %p14575_p13, %p14574_p10 }
 0x7ec   : > { %11236 = dma.done.wait (!%p11045_p1), %s8034_s17, 4096  }
 0x7ed   : > { %11238 = vsyncadd (!%p11045_p1), %s8034_s17, 4294963200  ;;  %p19_p0 = scmp.ge.s32.totalorder %s11411_s29, 4   ;;  %s14576_s18 = smov %s11245_s19 }
 0x7ee   : > { %s14577_s19 = smov %s11249_s20  ;;  %s14578_s20 = smov %s11427_s27 }
 0x7ef   : > { %s14579_s21 = smov %s11411_s29  ;;  %21 = sbr.rel (!%p19_p0) target bundleno = 6 (0x6), region = 115 }
 0x7f6   :  { %8039 = vsyncpa [#allocation4], 1 }
 0x7f7   :  { %8041 = vsyncpa [#allocation4 + $0x1], 1 }
 0x7f8   :  { %8042 = vsyncpa [#allocation7], 1 }
 0x7f9   :  { %8043 = vsyncpa [#allocation5], 1 }
 0x7fa   :  { %8045 = vsyncpa [#allocation5 + $0x1], 1 }

</bundles_post_ra>
